<compile_context>
chip_gen: v7x
topology: tpu7x:2x2x1
jax: 0.10.0
libtpu: 0.0.40
codegen_flags: <defaults>
</compile_context>

<pallas_src>
import functools

import numpy as np

import jax
import jax.numpy as jnp
from jax.experimental import pallas as pl
from jax.experimental.pallas import tpu as pltpu


def _round_up(x, m):
    return ((x + m - 1) // m) * m


# ----------------------------------------------------------------------------
# Fused kernel: all GIN layers + fused masked k-sum for one graph per grid step.
# ----------------------------------------------------------------------------
def _gin_phi_fused_kernel(sizes_ref, a_ref, x_ref, *args,
                          n_layers, n_k, n_pad, one_plus_eps):
    """
    sizes_ref : SMEM [B] int32              -- scalar-prefetched per-graph node counts
    a_ref     : VMEM [1, n_pad, n_pad] bf16 -- this graph's adjacency block (A[dst, src])
    x_ref     : VMEM [1, n_k*n_pad, M] f32  -- k-major node-feature slab
    args      : 4 refs per layer (W1 bf16, b1 f32, W2 bf16, b2 f32), then the output ref
    """
    o_ref = args[-1]
    w_refs = args[:-1]

    g = pl.program_id(0)
    ng = sizes_ref[g]                                    # node count of this graph (int32)

    a = a_ref[0]                                         # [n_pad, n_pad] bf16 (pre-cast)
    x = x_ref[0]                                         # [K*n_pad, D_in] f32

    for l in range(n_layers):
        w1 = w_refs[4 * l][...]                          # [D_in, Dh]   bf16
        b1 = w_refs[4 * l + 1][...]                      # [1, Dh]      f32
        w2 = w_refs[4 * l + 2][...]                      # [Dh, D_out]  bf16
        b2 = w_refs[4 * l + 3][...]                      # [1, D_out]   f32

        # --- sum aggregation over edges, per k channel: S_k = A @ X_k -----------------
        # Correct FLOPs (no Kron-expanded adjacency/weights); all dots are plain 2-D MXU
        # matmuls with a 128-wide contraction.
        xb = x.astype(jnp.bfloat16)
        z_parts = []
        for k in range(n_k):
            xk = x[k * n_pad:(k + 1) * n_pad, :]
            sk = jnp.dot(a, xb[k * n_pad:(k + 1) * n_pad, :],
                         preferred_element_type=jnp.float32)
            z_parts.append(one_plus_eps[l] * xk + sk)    # f32 elementwise
        z = jnp.concatenate(z_parts, axis=0)             # [K*n_pad, D_in] f32

        # --- MLP first half: ONE matmul over all K*n_pad rows -------------------------
        h = jnp.maximum(
            jnp.dot(z.astype(jnp.bfloat16), w1,
                    preferred_element_type=jnp.float32) + b1, 0.0)

        if l < n_layers - 1:
            x = jnp.dot(h.astype(jnp.bfloat16), w2,
                        preferred_element_type=jnp.float32) + b2
            # No per-layer masking needed: invalid (node, k) positions never feed valid
            # ones (adjacency columns of padded nodes are zero and k channels never mix);
            # they are masked out of the final k-sum below.
        else:
            # --- fused masked k-sum + last W2:  PE = (sum_{k<ng} h_k) @ W2 + ng * b2 ---
            row = jax.lax.broadcasted_iota(jnp.int32, (n_k * n_pad, 1), 0)
            hm = jnp.where(row < ng * n_pad, h, 0.0)     # zero invalid-k row blocks
            acc = hm[0:n_pad, :]
            for k in range(1, n_k):
                acc = acc + hm[k * n_pad:(k + 1) * n_pad, :]
            pe = (jnp.dot(acc.astype(jnp.bfloat16), w2,
                          preferred_element_type=jnp.float32)
                  + ng.astype(jnp.float32) * b2)
            o_ref[0] = pe                                # [n_pad, out_pad] lane-dense store


# ----------------------------------------------------------------------------
# Wrapper: per-graph packing (plain JAX glue) + fused pallas_call
# ----------------------------------------------------------------------------
def gin_phi_forward(W_list, edge_index, batch, params, num_graphs):
    sizes = [int(W.shape[0]) for W in W_list]
    B = len(sizes)
    K = max(sizes)                                # n_max: padded-column / channel count
    M = int(W_list[0].shape[2])
    n_layers = len(params)
    hidden = int(params[0]["W1"].shape[1])
    out_dims = int(params[-1]["W2"].shape[1])
    out_pad = _round_up(out_dims, 128)            # lane-dense output width
    n_pad = _round_up(K, 128)                     # MXU-native aggregation contraction width

    offsets = np.concatenate([[0], np.cumsum(sizes)]).astype(np.int32)

    # ---- per-graph k-major feature slab: X0[g, k*n_pad + n, :] = W_g[n, k, :] ----------
    X0 = jnp.zeros((B, K * n_pad, M), jnp.float32)
    for g, n in enumerate(sizes):
        Wg = jnp.asarray(W_list[g], jnp.float32)                      # [n, n, M]
        Wg = jnp.pad(Wg, ((0, n_pad - n), (0, K - n), (0, 0)))        # [n_pad, K, M]
        X0 = X0.at[g].set(jnp.transpose(Wg, (1, 0, 2)).reshape(K * n_pad, M))

    # ---- per-graph adjacency blocks A[g, dst_local, src_local], pre-cast to bf16 -------
    # (edge multiplicities are 0/1 here; integers <= 256 are exact in bf16)
    off_arr = jnp.asarray(offsets[:-1], jnp.int32)
    src, dst = edge_index[0], edge_index[1]
    g_of_e = batch[src]
    ls = src - off_arr[g_of_e]
    ld = dst - off_arr[g_of_e]
    A = jnp.zeros((B, n_pad, n_pad), jnp.float32).at[g_of_e, ld, ls].add(1.0)
    A = A.astype(jnp.bfloat16)

    # ---- small MLP weights (bf16) / biases (f32); pad last layer output to 128 lanes ---
    w_inputs, one_plus_eps = [], []
    for l, p in enumerate(params):
        W1, b1, W2, b2 = p["W1"], p["b1"], p["W2"], p["b2"]
        if l == n_layers - 1:
            W2 = jnp.pad(W2, ((0, 0), (0, out_pad - out_dims)))
            b2 = jnp.pad(b2, ((0, 0), (0, out_pad - out_dims)))
        w_inputs += [W1.astype(jnp.bfloat16), b1.astype(jnp.float32),
                     W2.astype(jnp.bfloat16), b2.astype(jnp.float32)]
        one_plus_eps.append(float(p["one_plus_eps"]))
    # TODO(synk): pass one_plus_eps via SMEM instead of baking it so retrained eps values
    # do not force a recompile.

    sizes_arr = jnp.asarray(sizes, jnp.int32)

    kernel = functools.partial(_gin_phi_fused_kernel, n_layers=n_layers, n_k=K,
                               n_pad=n_pad, one_plus_eps=tuple(one_plus_eps))

    def _tile_spec(arr):     # one block per graph along the grid
        return pl.BlockSpec((1,) + arr.shape[1:], lambda g, sz: (g, 0, 0))

    def _const_spec(arr):    # grid-invariant (weights / biases)
        nd = arr.ndim
        return pl.BlockSpec(arr.shape, lambda g, sz: (0,) * nd)

    # explicit VMEM budget (review: size the resident set against v7x's 64 MiB)
    block_bytes = 2 * (n_pad * n_pad * 2 + K * n_pad * M * 4 + n_pad * out_pad * 4)
    weight_bytes = sum(int(np.prod(w.shape)) * w.dtype.itemsize for w in w_inputs)
    act_bytes = 6 * K * n_pad * max(M, hidden, out_pad) * 4
    vmem_limit = int(min(max(2 * (block_bytes + weight_bytes + act_bytes), 16 << 20),
                         64 << 20))

    pe_pad = pl.pallas_call(
        kernel,
        out_shape=jax.ShapeDtypeStruct((B, n_pad, out_pad), jnp.float32),
        grid_spec=pltpu.PrefetchScalarGridSpec(
            num_scalar_prefetch=1,
            grid=(B,),
            in_specs=[_tile_spec(A), _tile_spec(X0)] + [_const_spec(w) for w in w_inputs],
            out_specs=pl.BlockSpec((1, n_pad, out_pad), lambda g, sz: (g, 0, 0)),
        ),
        compiler_params=pltpu.CompilerParams(
            dimension_semantics=("parallel",),      # graphs shard across TCs (2x on v7x)
            vmem_limit_bytes=vmem_limit),
    )(sizes_arr, A, X0, *w_inputs)

    # gather valid rows back to the concatenated [N_sum, out_dims] layout
    PE = jnp.concatenate([pe_pad[g, :sizes[g], :out_dims] for g in range(B)], axis=0)

    # TODO(synk): GIN_PH's topo_emb branch is not in the provided source; approximate it
    # as per-graph sum pooling of the node-wise PE.
    topo_emb = jnp.zeros((num_graphs, out_dims), jnp.float32).at[batch].add(PE)
    return PE, topo_emb


# ----------------------------------------------------------------------------
# Pure-JAX reference (concatenated layout, dense global adjacency) for validation.
# matmul_dtype=bf16 + fuse_last_sum=True mirrors the kernel's math exactly.
# ----------------------------------------------------------------------------
def pad_and_mask(W_list):
    n_max = max(int(W.shape[0]) for W in W_list)
    W_pads, masks = [], []
    for W in W_list:
        n = int(W.shape[0])
        W_pads.append(jnp.pad(jnp.asarray(W, jnp.float32),
                              ((0, 0), (0, n_max - int(W.shape[1])), (0, 0))))
        masks.append(jnp.tile((jnp.arange(n_max) < n)[None, :], (n, 1)))
    return jnp.concatenate(W_pads, axis=0), jnp.concatenate(masks, axis=0)


def gin_phi_forward_ref(W_list, edge_index, batch, params, num_graphs,
                        matmul_dtype=jnp.float32, fuse_last_sum=False):
    Wcat, mask = pad_and_mask(W_list)                    # [N, K, M], [N, K]
    N, K, M = Wcat.shape
    A = jnp.zeros((N, N), jnp.float32).at[edge_index[1], edge_index[0]].add(1.0)
    X = jnp.transpose(Wcat, (1, 0, 2))                   # [K, N, M]
    maskf = jnp.transpose(mask).astype(jnp.float32)[:, :, None]   # [K, N, 1]
    cast = lambda t: t.astype(matmul_dtype)
    L = len(params)
    PE = None
    for l, p in enumerate(params):
        S = jnp.einsum("nj,kjd->knd", cast(A), cast(X),
                       preferred_element_type=jnp.float32)
        Z = p["one_plus_eps"] * X + S
        H = jnp.maximum(
            jnp.einsum("knd,dh->knh", cast(Z), cast(p["W1"]),
                       preferred_element_type=jnp.float32) + p["b1"], 0.0)
        if fuse_last_sum and l == L - 1:
            Hs = jnp.sum(H * maskf, axis=0)              # [N, Dh]
            nvalid = jnp.sum(maskf, axis=0)              # [N, 1]
            PE = (jnp.einsum("nh,ho->no", cast(Hs), cast(p["W2"]),
                             preferred_element_type=jnp.float32) + nvalid * p["b2"])
        else:
            X = (jnp.einsum("knh,ho->kno", cast(H), cast(p["W2"]),
                            preferred_element_type=jnp.float32) + p["b2"]) * maskf
    if PE is None:
        PE = jnp.sum(X * maskf, axis=0)
    topo_emb = jnp.zeros((num_graphs, PE.shape[-1]), jnp.float32).at[batch].add(PE)
    return PE, topo_emb


def init_params(key, n_layers, in_dims, hidden_dims, out_dims):
    # Deterministic synthetic parameters (mirrors GIN_PH: per-layer eps + 2-layer MLP, bn=False).
    params = []
    d_in = in_dims
    for i in range(n_layers):
        d_out = out_dims if i == n_layers - 1 else hidden_dims
        key, k1, k2, k3 = jax.random.split(key, 4)
        W1 = jax.random.normal(k1, (d_in, hidden_dims), jnp.float32) / jnp.sqrt(float(d_in))
        b1 = jnp.zeros((1, hidden_dims), jnp.float32)
        W2 = jax.random.normal(k2, (hidden_dims, d_out), jnp.float32) / jnp.sqrt(float(hidden_dims))
        b2 = jnp.zeros((1, d_out), jnp.float32)
        eps = float(jax.random.normal(k3, ()) * 0.1)
        params.append(dict(W1=W1, b1=b1, W2=W2, b2=b2, one_plus_eps=1.0 + eps))
        d_in = d_out
    return params


# ----------------------------------------------------------------------------
if __name__ == "__main__":
    key = jax.random.PRNGKey(0)

    # Two small graphs: sizes 5 and 3 -> N_sum = 8, n_max = 5
    sizes = [5, 3]
    M = 4          # in_dims  (number of psi_l eigenvalue filters)
    hidden = 16    # hidden_dims
    out_dims = 8   # out_dims (D_pe)
    n_layers = 2

    kW, kP = jax.random.split(key)
    W_list = []
    for n in sizes:
        kW, kk = jax.random.split(kW)
        Wi = jax.random.normal(kk, (n, n, M), jnp.float32)
        W_list.append(0.5 * (Wi + jnp.transpose(Wi, (1, 0, 2))))  # symmetric like V psi(L) V^T

    # COO edges: chain on graph 0 (nodes 0..4), triangle on graph 1 (nodes 5..7), bidirectional
    e_src = [0, 1, 1, 2, 2, 3, 3, 4, 5, 6, 6, 7, 7, 5]
    e_dst = [1, 0, 2, 1, 3, 2, 4, 3, 6, 5, 7, 6, 5, 7]
    edge_index = jnp.array([e_src, e_dst], dtype=jnp.int32)
    batch = jnp.array([0] * 5 + [1] * 3, dtype=jnp.int32)

    params = init_params(kP, n_layers, M, hidden, out_dims)

    PE, topo = gin_phi_forward(W_list, edge_index, batch, params, num_graphs=2)
    jax.block_until_ready((PE, topo))

    # Precision-matched reference (bf16 matmul operands, f32 accumulate, fused last k-sum).
    PE_m, topo_m = gin_phi_forward_ref(W_list, edge_index, batch, params, 2,
                                       matmul_dtype=jnp.bfloat16, fuse_last_sum=True)
    # Full-f32 reference with per-layer masking (module semantics); bounds bf16 rounding error.
    PE_f, _ = gin_phi_forward_ref(W_list, edge_index, batch, params, 2)

    assert PE.shape == (sum(sizes), out_dims)
    assert topo.shape == (2, out_dims)
    assert jnp.allclose(PE, PE_m, atol=5e-2, rtol=5e-2), float(jnp.max(jnp.abs(PE - PE_m)))
    assert jnp.allclose(topo, topo_m, atol=2e-1, rtol=1e-1)
    assert jnp.allclose(PE, PE_f, atol=2e-1, rtol=2e-1), float(jnp.max(jnp.abs(PE - PE_f)))

    print("KERNEL_OK")
</pallas_src>

<mosaic_0001>
module attributes {stable_mosaic.version = 11 : i64} {
  func.func @_gin_phi_fused_kernel(%arg0: i32, %arg1: memref<2xi32, #tpu.memory_space<smem>>, %arg2: memref<1x128x128xbf16, #tpu.memory_space<vmem>>, %arg3: memref<1x640x4xf32, #tpu.memory_space<vmem>>, %arg4: memref<4x16xbf16, #tpu.memory_space<vmem>>, %arg5: memref<1x16xf32, #tpu.memory_space<vmem>>, %arg6: memref<16x16xbf16, #tpu.memory_space<vmem>>, %arg7: memref<1x16xf32, #tpu.memory_space<vmem>>, %arg8: memref<16x16xbf16, #tpu.memory_space<vmem>>, %arg9: memref<1x16xf32, #tpu.memory_space<vmem>>, %arg10: memref<16x128xbf16, #tpu.memory_space<vmem>>, %arg11: memref<1x128xf32, #tpu.memory_space<vmem>>, %arg12: memref<1x128x128xf32, #tpu.memory_space<vmem>>) attributes {dimension_semantics = [#tpu.dimension_semantics<parallel>], iteration_bounds = array<i64: 2>, scalar_prefetch = 1 : i64, scratch_operands = 0 : i64, tpu.core_type = #tpu.core_type<tc>, window_params = [{transform_indices = @transform_0, window_bounds = array<i64: 1, 128, 128>}, {transform_indices = @transform_1, window_bounds = array<i64: 1, 640, 4>}, {pipeline_mode = #tpu.pipeline_mode<synchronous>, transform_indices = @transform_2, window_bounds = array<i64: 4, 16>}, {pipeline_mode = #tpu.pipeline_mode<synchronous>, transform_indices = @transform_3, window_bounds = array<i64: 1, 16>}, {pipeline_mode = #tpu.pipeline_mode<synchronous>, transform_indices = @transform_4, window_bounds = array<i64: 16, 16>}, {pipeline_mode = #tpu.pipeline_mode<synchronous>, transform_indices = @transform_5, window_bounds = array<i64: 1, 16>}, {pipeline_mode = #tpu.pipeline_mode<synchronous>, transform_indices = @transform_6, window_bounds = array<i64: 16, 16>}, {pipeline_mode = #tpu.pipeline_mode<synchronous>, transform_indices = @transform_7, window_bounds = array<i64: 1, 16>}, {pipeline_mode = #tpu.pipeline_mode<synchronous>, transform_indices = @transform_8, window_bounds = array<i64: 16, 128>}, {pipeline_mode = #tpu.pipeline_mode<synchronous>, transform_indices = @transform_9, window_bounds = array<i64: 1, 128>}, {transform_indices = @transform_10, window_bounds = array<i64: 1, 128, 128>}]} {
    %0 = arith.index_cast %arg0 : i32 to index
    %1 = memref.load %arg1[%0] : memref<2xi32, #tpu.memory_space<smem>>
    %c0 = arith.constant 0 : index
    %c0_0 = arith.constant 0 : index
    %c0_1 = arith.constant 0 : index
    %2 = vector.load %arg2[%c0, %c0_0, %c0_1] : memref<1x128x128xbf16, #tpu.memory_space<vmem>>, vector<1x128x128xbf16>
    %3 = vector.shape_cast %2 : vector<1x128x128xbf16> to vector<128x128xbf16>
    %c0_2 = arith.constant 0 : index
    %c0_3 = arith.constant 0 : index
    %c0_4 = arith.constant 0 : index
    %4 = vector.load %arg3[%c0_2, %c0_3, %c0_4] : memref<1x640x4xf32, #tpu.memory_space<vmem>>, vector<1x640x4xf32>
    %5 = vector.shape_cast %4 : vector<1x640x4xf32> to vector<640x4xf32>
    %c0_5 = arith.constant 0 : index
    %c0_6 = arith.constant 0 : index
    %6 = vector.load %arg4[%c0_5, %c0_6] : memref<4x16xbf16, #tpu.memory_space<vmem>>, vector<4x16xbf16>
    %c0_7 = arith.constant 0 : index
    %c0_8 = arith.constant 0 : index
    %7 = vector.load %arg5[%c0_7, %c0_8] : memref<1x16xf32, #tpu.memory_space<vmem>>, vector<1x16xf32>
    %c0_9 = arith.constant 0 : index
    %c0_10 = arith.constant 0 : index
    %8 = vector.load %arg6[%c0_9, %c0_10] : memref<16x16xbf16, #tpu.memory_space<vmem>>, vector<16x16xbf16>
    %c0_11 = arith.constant 0 : index
    %c0_12 = arith.constant 0 : index
    %9 = vector.load %arg7[%c0_11, %c0_12] : memref<1x16xf32, #tpu.memory_space<vmem>>, vector<1x16xf32>
    %10 = arith.truncf %5 : vector<640x4xf32> to vector<640x4xbf16>
    %11 = vector.extract_strided_slice %5 {offsets = [0, 0], sizes = [128, 4], strides = [1, 1]} : vector<640x4xf32> to vector<128x4xf32>
    %12 = vector.extract_strided_slice %10 {offsets = [0, 0], sizes = [128, 4], strides = [1, 1]} : vector<640x4xbf16> to vector<128x4xbf16>
    %cst = arith.constant dense<0.000000e+00> : vector<128x4xf32>
    %13 = tpu.matmul %3, %12, %cst {dimension_numbers = #tpu.dot_dimension_numbers<[1], [0], [0], [1], [0, 0, 1, 1], [], []>} : vector<128x128xbf16>, vector<128x4xbf16>, vector<128x4xf32> -> vector<128x4xf32>
    %cst_13 = arith.constant 1.16608763 : f32
    %14 = vector.broadcast %cst_13 : f32 to vector<128x4xf32>
    %15 = arith.mulf %14, %11 : vector<128x4xf32>
    %16 = arith.addf %15, %13 : vector<128x4xf32>
    %17 = vector.extract_strided_slice %5 {offsets = [128, 0], sizes = [128, 4], strides = [1, 1]} : vector<640x4xf32> to vector<128x4xf32>
    %18 = vector.extract_strided_slice %10 {offsets = [128, 0], sizes = [128, 4], strides = [1, 1]} : vector<640x4xbf16> to vector<128x4xbf16>
    %cst_14 = arith.constant dense<0.000000e+00> : vector<128x4xf32>
    %19 = tpu.matmul %3, %18, %cst_14 {dimension_numbers = #tpu.dot_dimension_numbers<[1], [0], [0], [1], [0, 0, 1, 1], [], []>} : vector<128x128xbf16>, vector<128x4xbf16>, vector<128x4xf32> -> vector<128x4xf32>
    %cst_15 = arith.constant 1.16608763 : f32
    %20 = vector.broadcast %cst_15 : f32 to vector<128x4xf32>
    %21 = arith.mulf %20, %17 : vector<128x4xf32>
    %22 = arith.addf %21, %19 : vector<128x4xf32>
    %23 = vector.extract_strided_slice %5 {offsets = [256, 0], sizes = [128, 4], strides = [1, 1]} : vector<640x4xf32> to vector<128x4xf32>
    %24 = vector.extract_strided_slice %10 {offsets = [256, 0], sizes = [128, 4], strides = [1, 1]} : vector<640x4xbf16> to vector<128x4xbf16>
    %cst_16 = arith.constant dense<0.000000e+00> : vector<128x4xf32>
    %25 = tpu.matmul %3, %24, %cst_16 {dimension_numbers = #tpu.dot_dimension_numbers<[1], [0], [0], [1], [0, 0, 1, 1], [], []>} : vector<128x128xbf16>, vector<128x4xbf16>, vector<128x4xf32> -> vector<128x4xf32>
    %cst_17 = arith.constant 1.16608763 : f32
    %26 = vector.broadcast %cst_17 : f32 to vector<128x4xf32>
    %27 = arith.mulf %26, %23 : vector<128x4xf32>
    %28 = arith.addf %27, %25 : vector<128x4xf32>
    %29 = vector.extract_strided_slice %5 {offsets = [384, 0], sizes = [128, 4], strides = [1, 1]} : vector<640x4xf32> to vector<128x4xf32>
    %30 = vector.extract_strided_slice %10 {offsets = [384, 0], sizes = [128, 4], strides = [1, 1]} : vector<640x4xbf16> to vector<128x4xbf16>
    %cst_18 = arith.constant dense<0.000000e+00> : vector<128x4xf32>
    %31 = tpu.matmul %3, %30, %cst_18 {dimension_numbers = #tpu.dot_dimension_numbers<[1], [0], [0], [1], [0, 0, 1, 1], [], []>} : vector<128x128xbf16>, vector<128x4xbf16>, vector<128x4xf32> -> vector<128x4xf32>
    %cst_19 = arith.constant 1.16608763 : f32
    %32 = vector.broadcast %cst_19 : f32 to vector<128x4xf32>
    %33 = arith.mulf %32, %29 : vector<128x4xf32>
    %34 = arith.addf %33, %31 : vector<128x4xf32>
    %35 = vector.extract_strided_slice %5 {offsets = [512, 0], sizes = [128, 4], strides = [1, 1]} : vector<640x4xf32> to vector<128x4xf32>
    %36 = vector.extract_strided_slice %10 {offsets = [512, 0], sizes = [128, 4], strides = [1, 1]} : vector<640x4xbf16> to vector<128x4xbf16>
    %cst_20 = arith.constant dense<0.000000e+00> : vector<128x4xf32>
    %37 = tpu.matmul %3, %36, %cst_20 {dimension_numbers = #tpu.dot_dimension_numbers<[1], [0], [0], [1], [0, 0, 1, 1], [], []>} : vector<128x128xbf16>, vector<128x4xbf16>, vector<128x4xf32> -> vector<128x4xf32>
    %cst_21 = arith.constant 1.16608763 : f32
    %38 = vector.broadcast %cst_21 : f32 to vector<128x4xf32>
    %39 = arith.mulf %38, %35 : vector<128x4xf32>
    %40 = arith.addf %39, %37 : vector<128x4xf32>
    %41 = tpu.concatenate %16, %22, %28, %34, %40 in 0 : vector<128x4xf32>, vector<128x4xf32>, vector<128x4xf32>, vector<128x4xf32>, vector<128x4xf32> -> vector<640x4xf32>
    %42 = arith.truncf %41 : vector<640x4xf32> to vector<640x4xbf16>
    %cst_22 = arith.constant dense<0.000000e+00> : vector<640x16xf32>
    %43 = tpu.matmul %42, %6, %cst_22 {dimension_numbers = #tpu.dot_dimension_numbers<[1], [0], [0], [1], [0, 0, 1, 1], [], []>} : vector<640x4xbf16>, vector<4x16xbf16>, vector<640x16xf32> -> vector<640x16xf32>
    %44 = vector.broadcast %7 : vector<1x16xf32> to vector<640x16xf32>
    %45 = arith.addf %43, %44 : vector<640x16xf32>
    %cst_23 = arith.constant 0.000000e+00 : f32
    %46 = vector.broadcast %cst_23 : f32 to vector<640x16xf32>
    %47 = arith.maximumf %45, %46 : vector<640x16xf32>
    %48 = arith.truncf %47 : vector<640x16xf32> to vector<640x16xbf16>
    %cst_24 = arith.constant dense<0.000000e+00> : vector<640x16xf32>
    %49 = tpu.matmul %48, %8, %cst_24 {dimension_numbers = #tpu.dot_dimension_numbers<[1], [0], [0], [1], [0, 0, 1, 1], [], []>} : vector<640x16xbf16>, vector<16x16xbf16>, vector<640x16xf32> -> vector<640x16xf32>
    %50 = vector.broadcast %9 : vector<1x16xf32> to vector<640x16xf32>
    %51 = arith.addf %49, %50 : vector<640x16xf32>
    %c0_25 = arith.constant 0 : index
    %c0_26 = arith.constant 0 : index
    %52 = vector.load %arg8[%c0_25, %c0_26] : memref<16x16xbf16, #tpu.memory_space<vmem>>, vector<16x16xbf16>
    %c0_27 = arith.constant 0 : index
    %c0_28 = arith.constant 0 : index
    %53 = vector.load %arg9[%c0_27, %c0_28] : memref<1x16xf32, #tpu.memory_space<vmem>>, vector<1x16xf32>
    %c0_29 = arith.constant 0 : index
    %c0_30 = arith.constant 0 : index
    %54 = vector.load %arg10[%c0_29, %c0_30] : memref<16x128xbf16, #tpu.memory_space<vmem>>, vector<16x128xbf16>
    %c0_31 = arith.constant 0 : index
    %c0_32 = arith.constant 0 : index
    %55 = vector.load %arg11[%c0_31, %c0_32] : memref<1x128xf32, #tpu.memory_space<vmem>>, vector<1x128xf32>
    %56 = arith.truncf %51 : vector<640x16xf32> to vector<640x16xbf16>
    %57 = vector.extract_strided_slice %51 {offsets = [0, 0], sizes = [128, 16], strides = [1, 1]} : vector<640x16xf32> to vector<128x16xf32>
    %58 = vector.extract_strided_slice %56 {offsets = [0, 0], sizes = [128, 16], strides = [1, 1]} : vector<640x16xbf16> to vector<128x16xbf16>
    %cst_33 = arith.constant dense<0.000000e+00> : vector<128x16xf32>
    %59 = tpu.matmul %3, %58, %cst_33 {dimension_numbers = #tpu.dot_dimension_numbers<[1], [0], [0], [1], [0, 0, 1, 1], [], []>} : vector<128x128xbf16>, vector<128x16xbf16>, vector<128x16xf32> -> vector<128x16xf32>
    %cst_34 = arith.constant 1.01934576 : f32
    %60 = vector.broadcast %cst_34 : f32 to vector<128x16xf32>
    %61 = arith.mulf %60, %57 : vector<128x16xf32>
    %62 = arith.addf %61, %59 : vector<128x16xf32>
    %63 = vector.extract_strided_slice %51 {offsets = [128, 0], sizes = [128, 16], strides = [1, 1]} : vector<640x16xf32> to vector<128x16xf32>
    %64 = vector.extract_strided_slice %56 {offsets = [128, 0], sizes = [128, 16], strides = [1, 1]} : vector<640x16xbf16> to vector<128x16xbf16>
    %cst_35 = arith.constant dense<0.000000e+00> : vector<128x16xf32>
    %65 = tpu.matmul %3, %64, %cst_35 {dimension_numbers = #tpu.dot_dimension_numbers<[1], [0], [0], [1], [0, 0, 1, 1], [], []>} : vector<128x128xbf16>, vector<128x16xbf16>, vector<128x16xf32> -> vector<128x16xf32>
    %cst_36 = arith.constant 1.01934576 : f32
    %66 = vector.broadcast %cst_36 : f32 to vector<128x16xf32>
    %67 = arith.mulf %66, %63 : vector<128x16xf32>
    %68 = arith.addf %67, %65 : vector<128x16xf32>
    %69 = vector.extract_strided_slice %51 {offsets = [256, 0], sizes = [128, 16], strides = [1, 1]} : vector<640x16xf32> to vector<128x16xf32>
    %70 = vector.extract_strided_slice %56 {offsets = [256, 0], sizes = [128, 16], strides = [1, 1]} : vector<640x16xbf16> to vector<128x16xbf16>
    %cst_37 = arith.constant dense<0.000000e+00> : vector<128x16xf32>
    %71 = tpu.matmul %3, %70, %cst_37 {dimension_numbers = #tpu.dot_dimension_numbers<[1], [0], [0], [1], [0, 0, 1, 1], [], []>} : vector<128x128xbf16>, vector<128x16xbf16>, vector<128x16xf32> -> vector<128x16xf32>
    %cst_38 = arith.constant 1.01934576 : f32
    %72 = vector.broadcast %cst_38 : f32 to vector<128x16xf32>
    %73 = arith.mulf %72, %69 : vector<128x16xf32>
    %74 = arith.addf %73, %71 : vector<128x16xf32>
    %75 = vector.extract_strided_slice %51 {offsets = [384, 0], sizes = [128, 16], strides = [1, 1]} : vector<640x16xf32> to vector<128x16xf32>
    %76 = vector.extract_strided_slice %56 {offsets = [384, 0], sizes = [128, 16], strides = [1, 1]} : vector<640x16xbf16> to vector<128x16xbf16>
    %cst_39 = arith.constant dense<0.000000e+00> : vector<128x16xf32>
    %77 = tpu.matmul %3, %76, %cst_39 {dimension_numbers = #tpu.dot_dimension_numbers<[1], [0], [0], [1], [0, 0, 1, 1], [], []>} : vector<128x128xbf16>, vector<128x16xbf16>, vector<128x16xf32> -> vector<128x16xf32>
    %cst_40 = arith.constant 1.01934576 : f32
    %78 = vector.broadcast %cst_40 : f32 to vector<128x16xf32>
    %79 = arith.mulf %78, %75 : vector<128x16xf32>
    %80 = arith.addf %79, %77 : vector<128x16xf32>
    %81 = vector.extract_strided_slice %51 {offsets = [512, 0], sizes = [128, 16], strides = [1, 1]} : vector<640x16xf32> to vector<128x16xf32>
    %82 = vector.extract_strided_slice %56 {offsets = [512, 0], sizes = [128, 16], strides = [1, 1]} : vector<640x16xbf16> to vector<128x16xbf16>
    %cst_41 = arith.constant dense<0.000000e+00> : vector<128x16xf32>
    %83 = tpu.matmul %3, %82, %cst_41 {dimension_numbers = #tpu.dot_dimension_numbers<[1], [0], [0], [1], [0, 0, 1, 1], [], []>} : vector<128x128xbf16>, vector<128x16xbf16>, vector<128x16xf32> -> vector<128x16xf32>
    %cst_42 = arith.constant 1.01934576 : f32
    %84 = vector.broadcast %cst_42 : f32 to vector<128x16xf32>
    %85 = arith.mulf %84, %81 : vector<128x16xf32>
    %86 = arith.addf %85, %83 : vector<128x16xf32>
    %87 = tpu.concatenate %62, %68, %74, %80, %86 in 0 : vector<128x16xf32>, vector<128x16xf32>, vector<128x16xf32>, vector<128x16xf32>, vector<128x16xf32> -> vector<640x16xf32>
    %88 = arith.truncf %87 : vector<640x16xf32> to vector<640x16xbf16>
    %cst_43 = arith.constant dense<0.000000e+00> : vector<640x16xf32>
    %89 = tpu.matmul %88, %52, %cst_43 {dimension_numbers = #tpu.dot_dimension_numbers<[1], [0], [0], [1], [0, 0, 1, 1], [], []>} : vector<640x16xbf16>, vector<16x16xbf16>, vector<640x16xf32> -> vector<640x16xf32>
    %90 = vector.broadcast %53 : vector<1x16xf32> to vector<640x16xf32>
    %91 = arith.addf %89, %90 : vector<640x16xf32>
    %cst_44 = arith.constant 0.000000e+00 : f32
    %92 = vector.broadcast %cst_44 : f32 to vector<640x16xf32>
    %93 = arith.maximumf %91, %92 : vector<640x16xf32>
    %94 = tpu.iota {dimensions = array<i32: 0>} : vector<640x1xi32>
    %c128_i32 = arith.constant 128 : i32
    %95 = arith.muli %1, %c128_i32 : i32
    %96 = vector.broadcast %95 : i32 to vector<640x1xi32>
    %97 = arith.cmpi slt, %94, %96 : vector<640x1xi32>
    %cst_45 = arith.constant 0.000000e+00 : f32
    %98 = vector.shape_cast %97 : vector<640x1xi1> to vector<640x1xi1>
    %99 = vector.broadcast %98 : vector<640x1xi1> to vector<640x16xi1>
    %100 = vector.broadcast %cst_45 : f32 to vector<640x16xf32>
    %101 = arith.select %99, %93, %100 : vector<640x16xi1>, vector<640x16xf32>
    %102 = vector.extract_strided_slice %101 {offsets = [0, 0], sizes = [128, 16], strides = [1, 1]} : vector<640x16xf32> to vector<128x16xf32>
    %103 = vector.extract_strided_slice %101 {offsets = [128, 0], sizes = [128, 16], strides = [1, 1]} : vector<640x16xf32> to vector<128x16xf32>
    %104 = arith.addf %102, %103 : vector<128x16xf32>
    %105 = vector.extract_strided_slice %101 {offsets = [256, 0], sizes = [128, 16], strides = [1, 1]} : vector<640x16xf32> to vector<128x16xf32>
    %106 = arith.addf %104, %105 : vector<128x16xf32>
    %107 = vector.extract_strided_slice %101 {offsets = [384, 0], sizes = [128, 16], strides = [1, 1]} : vector<640x16xf32> to vector<128x16xf32>
    %108 = arith.addf %106, %107 : vector<128x16xf32>
    %109 = vector.extract_strided_slice %101 {offsets = [512, 0], sizes = [128, 16], strides = [1, 1]} : vector<640x16xf32> to vector<128x16xf32>
    %110 = arith.addf %108, %109 : vector<128x16xf32>
    %111 = arith.truncf %110 : vector<128x16xf32> to vector<128x16xbf16>
    %cst_46 = arith.constant dense<0.000000e+00> : vector<128x128xf32>
    %112 = tpu.matmul %111, %54, %cst_46 {dimension_numbers = #tpu.dot_dimension_numbers<[1], [0], [0], [1], [0, 0, 1, 1], [], []>} : vector<128x16xbf16>, vector<16x128xbf16>, vector<128x128xf32> -> vector<128x128xf32>
    %113 = arith.sitofp %1 : i32 to f32
    %114 = vector.broadcast %113 : f32 to vector<1x128xf32>
    %115 = arith.mulf %114, %55 : vector<1x128xf32>
    %116 = vector.broadcast %115 : vector<1x128xf32> to vector<128x128xf32>
    %117 = arith.addf %112, %116 : vector<128x128xf32>
    %c0_47 = arith.constant 0 : index
    %c0_48 = arith.constant 0 : index
    %c0_49 = arith.constant 0 : index
    %118 = vector.load %arg12[%c0_47, %c0_48, %c0_49] : memref<1x128x128xf32, #tpu.memory_space<vmem>>, vector<1x128x128xf32>
    %119 = vector.shape_cast %118 : vector<1x128x128xf32> to vector<128x128xf32>
    %120 = vector.shape_cast %117 : vector<128x128xf32> to vector<1x128x128xf32>
    tpu.vector_store %arg12[%c0_47, %c0_48, %c0_49], %120 {strides = array<i32>} : memref<1x128x128xf32, #tpu.memory_space<vmem>>, vector<1x128x128xf32>,
    return
  }
  func.func @transform_0(%arg0: i32, %arg1: memref<2xi32, #tpu.memory_space<smem>>) -> (i32, i32, i32) {
    %c0_i32 = arith.constant 0 : i32
    %c0_i32_0 = arith.constant 0 : i32
    %c0_i32_1 = arith.constant 0 : i32
    return %arg0, %c0_i32, %c0_i32_0 : i32, i32, i32
  }
  func.func @transform_1(%arg0: i32, %arg1: memref<2xi32, #tpu.memory_space<smem>>) -> (i32, i32, i32) {
    %c0_i32 = arith.constant 0 : i32
    %c0_i32_0 = arith.constant 0 : i32
    %c0_i32_1 = arith.constant 0 : i32
    return %arg0, %c0_i32, %c0_i32_0 : i32, i32, i32
  }
  func.func @transform_2(%arg0: i32, %arg1: memref<2xi32, #tpu.memory_space<smem>>) -> (i32, i32) {
    %c0_i32 = arith.constant 0 : i32
    %c0_i32_0 = arith.constant 0 : i32
    %c0_i32_1 = arith.constant 0 : i32
    return %c0_i32, %c0_i32_0 : i32, i32
  }
  func.func @transform_3(%arg0: i32, %arg1: memref<2xi32, #tpu.memory_space<smem>>) -> (i32, i32) {
    %c0_i32 = arith.constant 0 : i32
    %c0_i32_0 = arith.constant 0 : i32
    %c0_i32_1 = arith.constant 0 : i32
    return %c0_i32, %c0_i32_0 : i32, i32
  }
  func.func @transform_4(%arg0: i32, %arg1: memref<2xi32, #tpu.memory_space<smem>>) -> (i32, i32) {
    %c0_i32 = arith.constant 0 : i32
    %c0_i32_0 = arith.constant 0 : i32
    %c0_i32_1 = arith.constant 0 : i32
    return %c0_i32, %c0_i32_0 : i32, i32
  }
  func.func @transform_5(%arg0: i32, %arg1: memref<2xi32, #tpu.memory_space<smem>>) -> (i32, i32) {
    %c0_i32 = arith.constant 0 : i32
    %c0_i32_0 = arith.constant 0 : i32
    %c0_i32_1 = arith.constant 0 : i32
    return %c0_i32, %c0_i32_0 : i32, i32
  }
  func.func @transform_6(%arg0: i32, %arg1: memref<2xi32, #tpu.memory_space<smem>>) -> (i32, i32) {
    %c0_i32 = arith.constant 0 : i32
    %c0_i32_0 = arith.constant 0 : i32
    %c0_i32_1 = arith.constant 0 : i32
    return %c0_i32, %c0_i32_0 : i32, i32
  }
  func.func @transform_7(%arg0: i32, %arg1: memref<2xi32, #tpu.memory_space<smem>>) -> (i32, i32) {
    %c0_i32 = arith.constant 0 : i32
    %c0_i32_0 = arith.constant 0 : i32
    %c0_i32_1 = arith.constant 0 : i32
    return %c0_i32, %c0_i32_0 : i32, i32
  }
  func.func @transform_8(%arg0: i32, %arg1: memref<2xi32, #tpu.memory_space<smem>>) -> (i32, i32) {
    %c0_i32 = arith.constant 0 : i32
    %c0_i32_0 = arith.constant 0 : i32
    %c0_i32_1 = arith.constant 0 : i32
    return %c0_i32, %c0_i32_0 : i32, i32
  }
  func.func @transform_9(%arg0: i32, %arg1: memref<2xi32, #tpu.memory_space<smem>>) -> (i32, i32) {
    %c0_i32 = arith.constant 0 : i32
    %c0_i32_0 = arith.constant 0 : i32
    %c0_i32_1 = arith.constant 0 : i32
    return %c0_i32, %c0_i32_0 : i32, i32
  }
  func.func @transform_10(%arg0: i32, %arg1: memref<2xi32, #tpu.memory_space<smem>>) -> (i32, i32, i32) {
    %c0_i32 = arith.constant 0 : i32
    %c0_i32_0 = arith.constant 0 : i32
    %c0_i32_1 = arith.constant 0 : i32
    return %arg0, %c0_i32, %c0_i32_0 : i32, i32, i32
  }
}

</mosaic_0001>

<bundles_post_ra>
// kernel: tpu_custom_call.1
= control target key start
LH: loop header
LB: loop body
LE: loop exit
PB: predicated region body
PF: predicated region fallthrough
CT: control target
= control target key end

     0   :  { %s7715_s0 = inlined_call_operand.vmem [shape: s32[2], index: 0, kind: input, shape index: {}]   ;;  %s7716_s1 = inlined_call_operand.vmem [shape: bf16[2,128,128], index: 1, kind: input, shape index: {}]   ;;  %s7717_s2 = inlined_call_operand.vmem [shape: f32[2,640,4], index: 2, kind: input, shape index: {}]   ;;  %s7718_s3 = inlined_call_operand.vmem [shape: bf16[4,16], index: 3, kind: input, shape index: {}]   ;;  %s7719_s4 = inlined_call_operand.vmem [shape: f32[1,16], index: 4, kind: input, shape index: {}]   ;;  %s7720_s5 = inlined_call_operand.vmem [shape: bf16[16,16], index: 5, kind: input, shape index: {}]   ;;  %s7721_s6 = inlined_call_operand.vmem [shape: f32[1,16], index: 6, kind: input, shape index: {}]   ;;  %s7722_s7 = inlined_call_operand.vmem [shape: bf16[16,16], index: 7, kind: input, shape index: {}]   ;;  %s7723_s8 = inlined_call_operand.vmem [shape: f32[1,16], index: 8, kind: input, shape index: {}]   ;;  %s7724_s9 = inlined_call_operand.vmem [shape: bf16[16,128], index: 9, kind: input, shape index: {}]   ;;  %s7725_s10 = inlined_call_operand.vmem [shape: f32[1,128], index: 10, kind: input, shape index: {}]   ;;  %s7726_s11 = inlined_call_operand.hbm [shape: f32[2,128,128], index: 11, kind: output, shape index: {}]  }
   0x1   :  { %s16_s19 = sshll.u32 %s7715_s0, 4  ;;  %s17_s19 = int_to_ptr.vmem [resolvable:$true] %s16_s19 }
   0x2   :  { %s5462_s20 = scalar_lea.vmem %s17_s19, 16  ;;  %p5467_p1 = scmp.lt.s32.totalorder %s17_s19, %s17_s19 }
   0x3   :  { %p5463_p0 = scmp.ne.s32.totalorder %s17_s19, %s5462_s20  ;;  %p5468_p2 = scmp.lt.s32.totalorder %s5462_s20, %s5462_s20 }
   0x5   :  { %p5469_p3 = por %p5468_p2, %p5467_p1 }
   0x7   :  { %p5470_p4 = pnand %p5469_p3, %p5463_p0 }
   0x9   :  { %5473 = shalt.err (!%p5470_p4)  }
   0xa   :  { %s5540_s21 = smov [#allocation3]  }
   0xb   :  { %19 = dma.vmem_to_smem %s17_s19, 16, %s5540_s21, [#allocation2] }
   0xc   :  { %5518 = dma.done.wait [#allocation2], 16 }
   0xd   :  { %5519 = vsyncadd [#allocation2], 4294967280 }
   0xe   :  { %21 = sfence }
   0xf   :  { %22 = vsyncpa [#allocation5], 0 }
  0x10   :  { %24 = vsyncpa [#allocation5 + $0x1], 0  ;;  %s5607_s22 = smov 0   ;;  %s5609_s23 = smov 0  }
  0x11   :  { %s5611_s0 = smov 0   ;;  %s5613_s24 = smov 0  }
  0x12 LB: > { %s5628_s25 = sadd.s32 4294967295, %s5538_s24   ;;  %s4362_s26 = sadd.s32 4294967294, %s5538_s24   ;;  %s5538_s24 = sphi %s5613_s24, %s7930_s24   ;;  %s5534_s0 = sphi %s5611_s0, %s7929_s0   ;;  %s5530_s23 = sphi %s5609_s23, %s7928_s23   ;;  %s5526_s22 = sphi %s5607_s22, %s7927_s22  }
  0x13   : > { %s5632_s27 = sadd.s32 1, %s5538_s24   ;;  %s257_s28 = sadd.s32 1, %s5534_s0 }
  0x14   : > { %s254_s29 = ssub.s32 %s5538_s24, %s5632_s27  ;;  %p267_p5 = scmp.ne.s32.totalorder %s5534_s0, %s5530_s23 }
  0x15   : > { %p255_p6 = scmp.eq.s32.totalorder %s254_s29, 0  ;;  %p268_p7 = scmp.eq.s32.totalorder %s5628_s25, 1 }
  0x16   : > { %p273_p8 = scmp.ne.s32.totalorder %s5530_s23, %s5526_s22  ;;  %p274_p9 = scmp.eq.s32.totalorder %s4362_s26, 1 }
  0x17   : > { %s5643_s30 = scalar_select %p255_p6, %s5534_s0, %s257_s28  }
  0x18   : > { %p5645_p10 = por %p268_p7, %p267_p5  ;;  %p5649_p11 = por %p274_p9, %p273_p8 }
  0x19   : > { %p4365_p12 = scmp.ge.s32.totalorder %s5538_s24, 1  ;;  %p332_p13 = scmp.lt.s32.totalorder %s5538_s24, 3 }
  0x1b   : > { %p333_p0 = pnand %p4365_p12, %p332_p13 }
  0x1d   : > { %336 = sbr.rel (%p333_p0) target bundleno = 1600 (0x640), region = 60 }
  0x24   : > { %p375_p1 = scmp.lt.s32.totalorder %s5628_s25, 1  ;;  %vm1388_vm0 = vcmask 1041408   ;;  %vm1267_vm1 = vcmask 31744   ;;  %vm1877_vm2 = vcmask 130048   ;;  %s7055_s29 = sld [smem:[#allocation3 + %s5628_s25]] }
  0x26   : > { %s376_s14 = scalar_select %p375_p1, %s5628_s25, 1 }
  0x28   : > { %s5399_s15 = smul.u32 640, %s376_s14  ;;  %s4518_s16 = sshll.u32 %s376_s14, 6 }
  0x29   : > { %s5660_s19 = scalar_lea.vmem %s7716_s1, %s4518_s16 }
  0x2a   : > { %s5665_s26 = scalar_lea.vmem %s7717_s2, %s5399_s15  ;;  %v5668_v0 = vld [vmem:[%s5660_s19] sm:$0xff]   ;;  %v5815_v54 = vld [vmem:[%s5660_s19 + $0x8] sm:$0xff]   ;;  %v5824_v57 = vld [vmem:[%s5660_s19 + $0x10] sm:$0xff]   ;;  %s4503_s14 = sshll.u32 %s7055_s29, 7 }
  0x2b   : > { %v5671_v1 = vld [vmem:[%s5665_s26] sm:$0xff]  ;;  %v5674_v2 = vld [vmem:[%s5665_s26 + $0x8] sm:$0xff]  ;;  %v5677_v3 = vld [vmem:[%s5665_s26 + $0x10] sm:$0xff]  ;;  %4828 = vmatprep.mubr.bf16.mxu0 %v5668_v0  ;;  %4860 = vmatprep.mubr.bf16.mxu1 %v5668_v0  ;;  %s4122_s20 = scvt.s32.f32 %s7055_s29  ;;  %s4519_s29 = sshll.u32 %s5628_s25, 11 }
  0x2c   : > { %v488_v4 = vpack.c.bf16 %v5674_v2, %v5671_v1  ;;  %v5682_v5 = vld [vmem:[%s5665_s26 + $0x18] sm:$0xff]  ;;  %v5689_v7 = vld [vmem:[%s5665_s26 + $0x20] sm:$0xff]  ;;  %v5692_v8 = vld [vmem:[%s5665_s26 + $0x28] sm:$0xff]  ;;  %s7665_s18 = scalar_lea.hbm %s7726_s11, %s4519_s29 }
  0x2d   : > { %v489_v6 = vpack.c.bf16 %v5682_v5, %v5677_v3  ;;  %v490_v9 = vpack.c.bf16 %v5692_v8, %v5689_v7  ;;  %v5697_v10 = vld [vmem:[%s5665_s26 + $0x30] sm:$0xff]  ;;  %v5700_v11 = vld [vmem:[%s5665_s26 + $0x80] sm:$0xff]  ;;  %v5703_v12 = vld [vmem:[%s5665_s26 + $0x88] sm:$0xff] }
  0x2e   : > { %4812 = vmatprep.subr.bf16.mxu0 %v488_v4  ;;  %v5706_v13 = vld [vmem:[%s5665_s26 + $0x38] sm:$0xff]  ;;  %v496_v14 = vpack.c.bf16 %v5703_v12, %v5700_v11  ;;  %v5711_v15 = vld [vmem:[%s5665_s26 + $0x90] sm:$0xff]  ;;  %v5717_v17 = vld [vmem:[%s5665_s26 + $0xa0] sm:$0xff] }
  0x2f   : > { %4813 = vmatpush3.bf16.msra.mxu0 %v488_v4  ;;  %v5714_v16 = vld [vmem:[%s5665_s26 + $0x98] sm:$0xff]  ;;  %v5722_v19 = vld [vmem:[%s5665_s26 + $0xa8] sm:$0xff]  ;;  %v491_v20 = vpack.c.bf16 %v5706_v13, %v5697_v10  ;;  %v5727_v21 = vld [vmem:[%s5665_s26 + $0x40] sm:$0xff] }
  0x30   : > { %4814 = vmatprep.subr.bf16.mxu0 %v489_v6  ;;  %4844 = vmatprep.subr.bf16.mxu1 %v496_v14  ;;  %v497_v18 = vpack.c.bf16 %v5714_v16, %v5711_v15  ;;  %v5730_v22 = vld [vmem:[%s5665_s26 + $0x48] sm:$0xff]  ;;  %v498_v23 = vpack.c.bf16 %v5722_v19, %v5717_v17  ;;  %v5735_v24 = vld [vmem:[%s5665_s26 + $0xb0] sm:$0xff]  ;;  %v5738_v25 = vld [vmem:[%s5665_s26 + $0xb8] sm:$0xff] }
  0x31   : > { %4845 = vmatpush3.bf16.msra.mxu1 %v496_v14  ;;  %v492_v26 = vpack.c.bf16 %v5730_v22, %v5727_v21  ;;  %v5743_v27 = vld [vmem:[%s5665_s26 + $0x50] sm:$0xff]  ;;  %v5746_v28 = vld [vmem:[%s5665_s26 + $0x58] sm:$0xff]  ;;  %v499_v29 = vpack.c.bf16 %v5738_v25, %v5735_v24  ;;  %v5751_v30 = vld [vmem:[%s5665_s26 + $0xc0] sm:$0xff] }
  0x32   : > { %4846 = vmatprep.subr.bf16.mxu1 %v497_v18  ;;  %v5754_v31 = vld [vmem:[%s5665_s26 + $0xc8] sm:$0xff]  ;;  %v493_v32 = vpack.c.bf16 %v5746_v28, %v5743_v27  ;;  %v5759_v33 = vld [vmem:[%s5665_s26 + $0x60] sm:$0xff]  ;;  %v5767_v36 = vld [vmem:[%s5665_s26 + $0xd0] sm:$0xff] }
  0x33   : > { %4815 = vmatpush3.bf16.msra.mxu0 %v489_v6  ;;  %v5762_v34 = vld [vmem:[%s5665_s26 + $0x68] sm:$0xff]  ;;  %v500_v35 = vpack.c.bf16 %v5754_v31, %v5751_v30  ;;  %v5770_v37 = vld [vmem:[%s5665_s26 + $0xd8] sm:$0xff]  ;;  %v5775_v39 = vld [vmem:[%s5665_s26 + $0x70] sm:$0xff] }
  0x34   : > { %4816 = vmatprep.subr.bf16.mxu0 %v490_v9  ;;  %v494_v38 = vpack.c.bf16 %v5762_v34, %v5759_v33  ;;  %v5778_v40 = vld [vmem:[%s5665_s26 + $0x78] sm:$0xff]  ;;  %v501_v41 = vpack.c.bf16 %v5770_v37, %v5767_v36  ;;  %v5783_v42 = vld [vmem:[%s5665_s26 + $0xe0] sm:$0xff]  ;;  %v5786_v43 = vld [vmem:[%s5665_s26 + $0xe8] sm:$0xff] }
  0x35   : > { %4847 = vmatpush3.bf16.msra.mxu1 %v497_v18  ;;  %v495_v44 = vpack.c.bf16 %v5778_v40, %v5775_v39  ;;  %v502_v45 = vpack.c.bf16 %v5786_v43, %v5783_v42  ;;  %v5793_v46 = vld [vmem:[%s5665_s26 + $0x100] sm:$0xff]  ;;  %v5796_v47 = vld [vmem:[%s5665_s26 + $0x108] sm:$0xff]  ;;  %v5799_v48 = vld [vmem:[%s5665_s26 + $0xf0] sm:$0xff] }
  0x36   : > { %4848 = vmatprep.subr.bf16.mxu1 %v498_v23  ;;  %v5802_v49 = vld [vmem:[%s5665_s26 + $0xf8] sm:$0xff]  ;;  %v504_v50 = vpack.c.bf16 %v5796_v47, %v5793_v46  ;;  %v5809_v52 = vld [vmem:[%s5665_s26 + $0x110] sm:$0xff]  ;;  %v5818_v55 = vld [vmem:[%s5665_s26 + $0x180] sm:$0xff] }
  0x37   : > { %4817 = vmatpush3.bf16.msra.mxu0 %v490_v9  ;;  %v503_v51 = vpack.c.bf16 %v5802_v49, %v5799_v48  ;;  %v5812_v53 = vld [vmem:[%s5665_s26 + $0x118] sm:$0xff]  ;;  %v5821_v56 = vld [vmem:[%s5665_s26 + $0x188] sm:$0xff]  ;;  %v5829_v59 = vld [vmem:[%s5665_s26 + $0x120] sm:$0xff] }
  0x38   : > { %4818 = vmatprep.subr.bf16.mxu0 %v491_v20  ;;  %v505_v58 = vpack.c.bf16 %v5812_v53, %v5809_v52  ;;  %v5832_v60 = vld [vmem:[%s5665_s26 + $0x128] sm:$0xff]  ;;  %v512_v61 = vpack.c.bf16 %v5821_v56, %v5818_v55  ;;  %v5839_v62 = vld [vmem:[%s5665_s26 + $0x190] sm:$0xff]  ;;  %v5842_v63 = vld [vmem:[%s5665_s26 + $0x198] sm:$0xff] }
  0x39   : > { %4849 = vmatpush3.bf16.msra.mxu1 %v498_v23  ;;  %7794 = vst [vmem:[#allocation8_spill] sm:$0xff] %v5832_v60  ;;  %v506_v4 = vpack.c.bf16 %v5832_v60, %v5829_v59  ;;  %v5847_v6 = vld [vmem:[%s5665_s26 + $0x130] sm:$0xff]  ;;  %v5850_v9 = vld [vmem:[%s5665_s26 + $0x138] sm:$0xff]  ;;  %v513_v18 = vpack.c.bf16 %v5842_v63, %v5839_v62  ;;  %v5862_v23 = vld [vmem:[%s5665_s26 + $0x1a0] sm:$0xff] }
  0x3a   : > { %4850 = vmatprep.subr.bf16.mxu1 %v499_v29  ;;  %v5853_v14 = vld [vmem:[%s5660_s19 + $0x18] sm:$0xff]   ;;  %7795 = vst [vmem:[#allocation9_spill] sm:$0xff] %v5862_v23 }
  0x3b   : > { %4819 = vmatpush3.bf16.msra.mxu0 %v491_v20  ;;  %v5858_v20 = vld [vmem:[%s5660_s19 + $0x20] sm:$0xff]   ;;  %v5965_v60 = vld [vmem:[%s5665_s26 + $0x1f8] sm:$0xff] }
  0x3c   : > { %4820 = vmatprep.subr.bf16.mxu0 %v492_v26 }
  0x3d   : > { %4851 = vmatpush3.bf16.msra.mxu1 %v499_v29  ;;  %v507_v29 = vpack.c.bf16 %v5850_v9, %v5847_v6 }
  0x3e   : > { %4852 = vmatprep.subr.bf16.mxu1 %v500_v35 }
  0x3f   : > { %4821 = vmatpush3.bf16.msra.mxu0 %v492_v26  ;;  %v5865_v26 = vld [vmem:[%s5665_s26 + $0x1a8] sm:$0xff] }
  0x40   : > { %4822 = vmatprep.subr.bf16.mxu0 %v493_v32  ;;  %7796 = vst [vmem:[#allocation10_spill] sm:$0xff] %v5865_v26 }
  0x41   : > { %4853 = vmatpush3.bf16.msra.mxu1 %v500_v35  ;;  %v5874_v35 = vld [vmem:[%s5665_s26 + $0x148] sm:$0xff] }
  0x42   : > { %4854 = vmatprep.subr.bf16.mxu1 %v501_v41  ;;  %7798 = vst [vmem:[#allocation12_spill] sm:$0xff] %v5874_v35 }
  0x43   : > { %4823 = vmatpush3.bf16.msra.mxu0 %v493_v32  ;;  %v5871_v32 = vld [vmem:[%s5665_s26 + $0x140] sm:$0xff] }
  0x44   : > { %4824 = vmatprep.subr.bf16.mxu0 %v494_v38  ;;  %7797 = vst [vmem:[#allocation11_spill] sm:$0xff] %v5871_v32 }
  0x45   : > { %4855 = vmatpush3.bf16.msra.mxu1 %v501_v41  ;;  %v5881_v41 = vld [vmem:[%s5665_s26 + $0x1b0] sm:$0xff] }
  0x46   : > { %4856 = vmatprep.subr.bf16.mxu1 %v502_v45  ;;  %7799 = vst [vmem:[#allocation13_spill] sm:$0xff] %v5881_v41 }
  0x47   : > { %4825 = vmatpush3.bf16.msra.mxu0 %v494_v38  ;;  %v514_v38 = vpack.c.bf16 %v5865_v26, %v5862_v23  ;;  %v5907_v26 = vld [vmem:[%s5665_s26 + $0x1c8] sm:$0xff]  ;;  %v5923_v23 = vld [vmem:[%s5665_s26 + $0x1d0] sm:$0xff] }
  0x48   : > { %4826 = vmatprep.subr.bf16.mxu0 %v495_v44  ;;  %7804 = vst [vmem:[#allocation18_spill] sm:$0xff] %v5907_v26  ;;  %7807 = vst [vmem:[#allocation21_spill] sm:$0xff] %v5923_v23 }
  0x49   : > { %4857 = vmatpush3.bf16.msra.mxu1 %v502_v45  ;;  %v508_v45 = vpack.c.bf16 %v5874_v35, %v5871_v32  ;;  %v5904_v35 = vld [vmem:[%s5665_s26 + $0x1c0] sm:$0xff] }
  0x4a   : > { %4858 = vmatprep.subr.bf16.mxu1 %v503_v51  ;;  %7803 = vst [vmem:[#allocation17_spill] sm:$0xff] %v5904_v35  ;;  %v5913_v32 = vld [vmem:[%s5665_s26 + $0x160] sm:$0xff] }
  0x4b   : > { %4827 = vmatpush3.bf16.msra.mxu0 %v495_v44  ;;  %v5884_v44 = vld [vmem:[%s5665_s26 + $0x1b8] sm:$0xff]  ;;  %7805 = vst [vmem:[#allocation19_spill] sm:$0xff] %v5913_v32 }
  0x4c   : > { %4876 = vmatprep.subr.bf16.mxu0 %v504_v50  ;;  %7800 = vst [vmem:[#allocation14_spill] sm:$0xff] %v5884_v44 }
  0x4d   : > { %4859 = vmatpush3.bf16.msra.mxu1 %v503_v51  ;;  %v5892_v51 = vld [vmem:[%s5665_s26 + $0x158] sm:$0xff] }
  0x4e   : > { %4829 = vmatmul.mubr.bf16.vlgmr.msra.gmra.mrb[0].mxu0 %v5815_v54  ;;  %4908 = vmatprep.subr.bf16.mxu1 %v512_v61  ;;  %7802 = vst [vmem:[#allocation16_spill] sm:$0xff] %v5892_v51 }
  0x4f   : > { %4832 = vmatprep.mubr.bf16.mxu0 %v5824_v57  ;;  %4877 = vmatpush3.bf16.msra.mxu0 %v504_v50  ;;  %v5889_v50 = vld [vmem:[%s5665_s26 + $0x150] sm:$0xff] }
  0x50   : > { %4878 = vmatprep.subr.bf16.mxu0 %v505_v58  ;;  %4861 = vmatmul.mubr.bf16.vlgmr.msra.gmra.mrb[0].mxu1 %v5815_v54  ;;  %7801 = vst [vmem:[#allocation15_spill] sm:$0xff] %v5889_v50 }
  0x51   : > { %4864 = vmatprep.mubr.bf16.mxu1 %v5824_v57  ;;  %4909 = vmatpush3.bf16.msra.mxu1 %v512_v61  ;;  %v515_v61 = vpack.c.bf16 %v5884_v44, %v5881_v41  ;;  %v5916_v44 = vld [vmem:[%s5665_s26 + $0x168] sm:$0xff]  ;;  %v5934_v41 = vld [vmem:[%s5665_s26 + $0x178] sm:$0xff] }
  0x52   : > { %4910 = vmatprep.subr.bf16.mxu1 %v513_v18  ;;  %7806 = vst [vmem:[#allocation20_spill] sm:$0xff] %v5916_v44  ;;  %7810 = vst [vmem:[#allocation24_spill] sm:$0xff] %v5934_v41 }
  0x53   : > { %4879 = vmatpush3.bf16.msra.mxu0 %v505_v58  ;;  %v5895_v58 = vld [vmem:[%s5660_s19 + $0x28] sm:$0xff]  }
  0x54   : > { %4880 = vmatprep.subr.bf16.mxu0 %v506_v4 }
  0x55   : > { %4911 = vmatpush3.bf16.msra.mxu1 %v513_v18  ;;  %v509_v18 = vpack.c.bf16 %v5892_v51, %v5889_v50  ;;  %v5926_v51 = vld [vmem:[%s5665_s26 + $0x1d8] sm:$0xff]  ;;  %v5931_v50 = vld [vmem:[%s5665_s26 + $0x170] sm:$0xff] }
  0x56   : > { %4833 = vmatmul.mubr.bf16.gmra.mrb[4].mxu0 %v5853_v14  ;;  %4912 = vmatprep.subr.bf16.mxu1 %v514_v38  ;;  %7808 = vst [vmem:[#allocation22_spill] sm:$0xff] %v5926_v51  ;;  %7809 = vst [vmem:[#allocation23_spill] sm:$0xff] %v5931_v50 }
  0x57   : > { %4836 = vmatprep.mubr.bf16.mxu0 %v5858_v20  ;;  %4881 = vmatpush3.bf16.msra.mxu0 %v506_v4  ;;  %v5900_v4 = vld [vmem:[%s5660_s19 + $0x30] sm:$0xff]  }
  0x58   : > { %4882 = vmatprep.subr.bf16.mxu0 %v507_v29  ;;  %4865 = vmatmul.mubr.bf16.gmra.mrb[4].mxu1 %v5853_v14 }
  0x59   : > { %4868 = vmatprep.mubr.bf16.mxu1 %v5858_v20  ;;  %4913 = vmatpush3.bf16.msra.mxu1 %v514_v38  ;;  %v510_v38 = vpack.c.bf16 %v5916_v44, %v5913_v32  ;;  %v5946_v44 = vld [vmem:[%s5665_s26 + $0x1e8] sm:$0xff]  ;;  %v5952_v32 = vld [vmem:[%s5665_s26 + $0x200] sm:$0xff] }
  0x5a   : > { %4914 = vmatprep.subr.bf16.mxu1 %v515_v61  ;;  %7811 = vst [vmem:[#allocation25_spill] sm:$0xff] %v5946_v44  ;;  %7812 = vst [vmem:[#allocation26_spill] sm:$0xff] %v5952_v32 }
  0x5b   : > { %4883 = vmatpush3.bf16.msra.mxu0 %v507_v29  ;;  %v516_v29 = vpack.c.bf16 %v5907_v26, %v5904_v35  ;;  %v5937_v26 = vld [vmem:[%s5660_s19 + $0x38] sm:$0xff]   ;;  %v5943_v35 = vld [vmem:[%s5665_s26 + $0x1e0] sm:$0xff] }
  0x5c   : > { %4884 = vmatprep.subr.bf16.mxu0 %v508_v45 }
  0x5d   : > { %4915 = vmatpush3.bf16.msra.mxu1 %v515_v61  ;;  %v511_v61 = vpack.c.bf16 %v5934_v41, %v5931_v50  ;;  %v5970_v41 = vld [vmem:[%s5665_s26 + $0x210] sm:$0xff]  ;;  %v5973_v50 = vld [vmem:[%s5665_s26 + $0x218] sm:$0xff] }
  0x5e   : > { %4837 = vmatmul.mubr.bf16.gmra.mrb[8].mxu0 %v5895_v58  ;;  %4916 = vmatprep.subr.bf16.mxu1 %v516_v29  ;;  %7814 = vst [vmem:[#allocation28_spill] sm:$0xff] %v5973_v50 }
  0x5f   : > { %4840 = vmatprep.mubr.bf16.mxu0 %v5900_v4  ;;  %4885 = vmatpush3.bf16.msra.mxu0 %v508_v45  ;;  %v517_v45 = vpack.c.bf16 %v5926_v51, %v5923_v23  ;;  %v5955_v51 = vld [vmem:[%s5665_s26 + $0x208] sm:$0xff]  ;;  %v5962_v23 = vld [vmem:[%s5665_s26 + $0x1f0] sm:$0xff] }
  0x60   : > { %4886 = vmatprep.subr.bf16.mxu0 %v509_v18  ;;  %4869 = vmatmul.mubr.bf16.gmra.mrb[8].mxu1 %v5895_v58  ;;  %7813 = vst [vmem:[#allocation27_spill] sm:$0xff] %v5955_v51 }
  0x61   : > { %4872 = vmatprep.mubr.bf16.mxu1 %v5900_v4  ;;  %4917 = vmatpush3.bf16.msra.mxu1 %v516_v29  ;;  %v520_v29 = vpack.c.bf16 %v5955_v51, %v5952_v32  ;;  %v521_v51 = vpack.c.bf16 %v5973_v50, %v5970_v41  ;;  %v5985_v32 = vld [vmem:[%s5665_s26 + $0x228] sm:$0xff]  ;;  %v5995_v50 = vld [vmem:[%s5665_s26 + $0x238] sm:$0xff] }
  0x62   : > { %4918 = vmatprep.subr.bf16.mxu1 %v517_v45  ;;  %7816 = vst [vmem:[#allocation30_spill] sm:$0xff] %v5985_v32  ;;  %7818 = vst [vmem:[#allocation32_spill] sm:$0xff] %v5995_v50 }
  0x63   : > { %4887 = vmatpush3.bf16.msra.mxu0 %v509_v18  ;;  %v518_v18 = vpack.c.bf16 %v5946_v44, %v5943_v35 }
  0x64   : > { %4888 = vmatprep.subr.bf16.mxu0 %v510_v38 }
  0x65   : > { %4919 = vmatpush3.bf16.msra.mxu1 %v517_v45  ;;  %v5982_v45 = vld [vmem:[%s5665_s26 + $0x220] sm:$0xff] }
  0x66   : > { %4841 = vmatmul.mubr.bf16.gmra.mrb[12].mxu0 %v5937_v26  ;;  %4920 = vmatprep.subr.bf16.mxu1 %v518_v18  ;;  %7815 = vst [vmem:[#allocation29_spill] sm:$0xff] %v5982_v45 }
  0x67   : > { %4889 = vmatpush3.bf16.msra.mxu0 %v510_v38  ;;  %4892 = vmatprep.mubr.bf16.mxu0 %v5668_v0  ;;  %v519_v38 = vpack.c.bf16 %v5965_v60, %v5962_v23 }
  0x68   : > { %4890 = vmatprep.subr.bf16.mxu0 %v511_v61  ;;  %4873 = vmatmul.mubr.bf16.gmra.mrb[12].mxu1 %v5937_v26 }
  0x69   : > { %4924 = vmatprep.mubr.bf16.mxu1 %v5668_v0  ;;  %4921 = vmatpush3.bf16.msra.mxu1 %v518_v18  ;;  %v5992_v18 = vld [vmem:[%s5665_s26 + $0x230] sm:$0xff] }
  0x6a   : > { %4922 = vmatprep.subr.bf16.mxu1 %v519_v38  ;;  %7817 = vst [vmem:[#allocation31_spill] sm:$0xff] %v5992_v18  ;;  %v523_v44 = vpack.c.bf16 %v5995_v50, %v5992_v18  ;;  %v6015_v50 = vld [vmem:[%s5665_s26 + $0x258] sm:$0xff]  ;;  %v6025_v18 = vld [vmem:[%s5665_s26 + $0x268] sm:$0xff] }
  0x6b   : > { %4891 = vmatpush3.bf16.msra.mxu0 %v511_v61  ;;  %v522_v61 = vpack.c.bf16 %v5985_v32, %v5982_v45  ;;  %v6005_v32 = vld [vmem:[%s5665_s26 + $0x248] sm:$0xff]  ;;  %7822 = vst [vmem:[#allocation36_spill] sm:$0xff] %v6015_v50  ;;  %7824 = vst [vmem:[#allocation38_spill] sm:$0xff] %v6025_v18 }
  0x6c   : > { %4940 = vmatprep.subr.bf16.mxu0 %v520_v29  ;;  %7820 = vst [vmem:[#allocation34_spill] sm:$0xff] %v6005_v32 }
  0x6d   : > { %4923 = vmatpush3.bf16.msra.mxu1 %v519_v38  ;;  %v6012_v38 = vld [vmem:[%s5665_s26 + $0x250] sm:$0xff] }
  0x6e   : > { %4893 = vmatmul.mubr.bf16.vlgmr.msra.gmra.mrb[16].mxu0 %v5815_v54  ;;  %7821 = vst [vmem:[#allocation35_spill] sm:$0xff] %v6012_v38  ;;  %v525_v45 = vpack.c.bf16 %v6015_v50, %v6012_v38 }
  0x6f   : > { %4896 = vmatprep.mubr.bf16.mxu0 %v5824_v57  ;;  %4941 = vmatpush3.bf16.msra.mxu0 %v520_v29  ;;  %v6002_v29 = vld [vmem:[%s5665_s26 + $0x240] sm:$0xff] }
  0x70   : > { %4942 = vmatprep.subr.bf16.mxu0 %v521_v51  ;;  %4925 = vmatmul.mubr.bf16.vlgmr.msra.gmra.mrb[16].mxu1 %v5815_v54  ;;  %7819 = vst [vmem:[#allocation33_spill] sm:$0xff] %v6002_v29 }
  0x71   : > { %4928 = vmatprep.mubr.bf16.mxu1 %v5824_v57 }
  0x73   : > { %4943 = vmatpush3.bf16.msra.mxu0 %v521_v51  ;;  %v524_v51 = vpack.c.bf16 %v6005_v32, %v6002_v29  ;;  %v6032_v32 = vld [vmem:[%s5665_s26 + $0x270] sm:$0xff]  ;;  %v6035_v29 = vld [vmem:[%s5665_s26 + $0x278] sm:$0xff] }
  0x74   : > { %4944 = vmatprep.subr.bf16.mxu0 %v522_v61  ;;  %7825 = vst [vmem:[#allocation39_spill] sm:$0xff] %v6032_v32  ;;  %7826 = vst [vmem:[#allocation40_spill] sm:$0xff] %v6035_v29  ;;  %v527_v50 = vpack.c.bf16 %v6035_v29, %v6032_v32 }
  0x76   : > { %4897 = vmatmul.mubr.bf16.gmra.mrb[20].mxu0 %v5853_v14 }
  0x77   : > { %4900 = vmatprep.mubr.bf16.mxu0 %v5858_v20  ;;  %4945 = vmatpush3.bf16.msra.mxu0 %v522_v61  ;;  %v6022_v61 = vld [vmem:[%s5665_s26 + $0x260] sm:$0xff]  ;;  %s372_s26 = sand.u32 1, %s5530_s23  }
  0x78   : > { %4946 = vmatprep.subr.bf16.mxu0 %v523_v44  ;;  %4929 = vmatmul.mubr.bf16.gmra.mrb[20].mxu1 %v5853_v14  ;;  %7823 = vst [vmem:[#allocation37_spill] sm:$0xff] %v6022_v61  ;;  %s4366_s28 = sshll.u32 %s372_s26, 7  ;;  %s7674_s25 = scalar_lea.sflag [#allocation5], %s372_s26 }
  0x79   : > { %4932 = vmatprep.mubr.bf16.mxu1 %v5858_v20 }
  0x7b   : > { %4947 = vmatpush3.bf16.msra.mxu0 %v523_v44  ;;  %v526_v44 = vpack.c.bf16 %v6025_v18, %v6022_v61 }
  0x7c   : > { %4948 = vmatprep.subr.bf16.mxu0 %v524_v51 }
  0x7e   : > { %4901 = vmatmul.mubr.bf16.gmra.mrb[24].mxu0 %v5895_v58 }
  0x7f   : > { %4904 = vmatprep.mubr.bf16.mxu0 %v5900_v4  ;;  %4949 = vmatpush3.bf16.msra.mxu0 %v524_v51  ;;  %v804_v51 = vmul.f32 1.1660876, %v5711_v15  ;;  %v679_v15 = vmul.f32 1.1660876, %v5697_v10 }
  0x80   : > { %4950 = vmatprep.subr.bf16.mxu0 %v525_v45  ;;  %4933 = vmatmul.mubr.bf16.gmra.mrb[24].mxu1 %v5895_v58 }
  0x81   : > { %4936 = vmatprep.mubr.bf16.mxu1 %v5900_v4 }
  0x83   : > { %4951 = vmatpush3.bf16.msra.mxu0 %v525_v45 }
  0x84   : > { %4952 = vmatprep.subr.bf16.mxu0 %v526_v44 }
  0x86   : > { %4905 = vmatmul.mubr.bf16.gmra.mrb[28].mxu0 %v5937_v26 }
  0x87   : > { %4953 = vmatpush3.bf16.msra.mxu0 %v526_v44  ;;  %4956 = vmatprep.mubr.bf16.mxu0 %v5668_v0  ;;  %v483_v0 = vld [vmem:[%s7718_s3] sm:$0x3] }
  0x88   : > { %4954 = vmatprep.subr.bf16.mxu0 %v527_v50  ;;  %4937 = vmatmul.mubr.bf16.gmra.mrb[28].mxu1 %v5937_v26 }
  0x89   : > { %5398 = vmatprep.subr.msk.bf16.mxu1 %vm1388_vm0, %v483_v0 }
  0x8b   : > { %4955 = vmatpush3.bf16.msra.mxu0 %v527_v50  ;;  %v1390_v50 = vsel %vm1388_vm0, %v483_v0, 0 }
  0x8c   : > { %4973 = vmatpush3.bf16.msra.mxu1 %v1390_v50 }
  0x8e   : > { %4957 = vmatmul.mubr.bf16.vlgmr.msra.gmra.mrb[32].mxu0 %v5815_v54  ;;  %v675_v54 = vmul.f32 1.1660876, %v5677_v3  ;;  %v805_v3 = vmul.f32 1.1660876, %v5714_v16  ;;  %v677_v16 = vmul.f32 1.1660876, %v5689_v7 }
  0x8f   : > { %4960 = vmatprep.mubr.bf16.mxu0 %v5824_v57  ;;  %v676_v57 = vmul.f32 1.1660876, %v5682_v5 }
  0x96   : > { %4961 = vmatmul.mubr.bf16.gmra.mrb[36].mxu0 %v5853_v14 }
  0x97   : > { %4964 = vmatprep.mubr.bf16.mxu0 %v5858_v20  ;;  %v673_v20 = vmul.f32 1.1660876, %v5671_v1  ;;  %v803_v1 = vmul.f32 1.1660876, %v5703_v12 }
  0x9e   : > { %4965 = vmatmul.mubr.bf16.gmra.mrb[40].mxu0 %v5895_v58  ;;  %v674_v58 = vmul.f32 1.1660876, %v5674_v2 }
  0x9f   : > { %4968 = vmatprep.mubr.bf16.mxu0 %v5900_v4 }
  0xa6   : > { %4969 = vmatmul.mubr.bf16.gmra.mrb[44].mxu0 %v5937_v26  ;;  %v802_v26 = vmul.f32 1.1660876, %v5700_v11 }
 0x121   : > { %v4830_v14 = vpop.f32.mrb[0].mxu0 }
 0x122   : > { %v610_v4 = vpop.f32.mrb[1].mxu0  ;;  %v691_v44 = vadd.f32 %v4830_v14, %v675_v54  ;;  %v680_v54 = vmul.f32 1.1660876, %v5706_v13 }
 0x123   : > { %v4831_v45 = vpop.f32.mrb[2].mxu0  ;;  %v689_v0 = vadd.f32 %v673_v20, %v610_v4  ;;  %v4862_v5 = vpop.f32.mrb[0].mxu1 }
 0x124   : > { %v692_v18 = vadd.f32 %v4831_v45, %v676_v57  ;;  %v613_v29 = vpop.f32.mrb[3].mxu0  ;;  %v6062_v2 = vadd.f32 %v4862_v5, %v804_v51  ;;  %v739_v38 = vpop.f32.mrb[1].mxu1 }
 0x125   : > { %v690_v50 = vadd.f32 %v674_v58, %v613_v29  ;;  %v6066_v57 = vadd.f32 %v802_v26, %v739_v38  ;;  %v4863_v11 = vpop.f32.mrb[2].mxu1  ;;  %v808_v38 = vmul.f32 1.1660876, %v5735_v24 }
 0x126   : > { %v1222_v61 = vpack.c.bf16 %v692_v18, %v691_v44  ;;  %v678_v18 = vmul.f32 1.1660876, %v5692_v8  ;;  %v6071_v29 = vadd.f32 %v4863_v11, %v805_v3  ;;  %v742_v12 = vpop.f32.mrb[3].mxu1  ;;  %v806_v8 = vmul.f32 1.1660876, %v5717_v17 }
 0x127   : > { %v1221_v32 = vpack.c.bf16 %v690_v50, %v689_v0  ;;  %v6074_v58 = vadd.f32 %v803_v1, %v742_v12  ;;  %v807_v50 = vmul.f32 1.1660876, %v5722_v19  ;;  %v683_v1 = vmul.f32 1.1660876, %v5743_v27 }
 0x128   : > { %v1230_v13 = vpack.c.bf16 %v6071_v29, %v6062_v2 }
 0x129   : > { %v4834_v14 = vpop.f32.mrb[4].mxu0  ;;  %4974 = vmatprep.mubr.msk.bf16.mxu1 %vm1267_vm1, %v1221_v32  ;;  %v1229_v7 = vpack.c.bf16 %v6074_v58, %v6066_v57  ;;  %v1060_v57 = vmul.f32 1.1660876, %v5818_v55 }
 0x12a   : > { %v626_v20 = vpop.f32.mrb[5].mxu0  ;;  %4975 = vmatmul.mubr.msk.bf16.vlgmr.msra.gmra.mrb[32].mxu1 %vm1267_vm1, %v1222_v61  ;;  %v695_v4 = vadd.f32 %v4834_v14, %v679_v15  ;;  %v809_v61 = vmul.f32 1.1660876, %v5738_v25  ;;  %v684_v15 = vmul.f32 1.1660876, %v5746_v28 }
 0x12b   : > { %v4835_v10 = vpop.f32.mrb[6].mxu0  ;;  %v693_v51 = vadd.f32 %v677_v16, %v626_v20  ;;  %v4866_v0 = vpop.f32.mrb[4].mxu1  ;;  %v681_v25 = vmul.f32 1.1660876, %v5727_v21  ;;  %v682_v14 = vmul.f32 1.1660876, %v5730_v22 }
 0x12c   : > { %v696_v32 = vadd.f32 %v4835_v10, %v680_v54  ;;  %v629_v45 = vpop.f32.mrb[7].mxu0  ;;  %v6084_v5 = vadd.f32 %v4866_v0, %v808_v38  ;;  %v755_v24 = vpop.f32.mrb[5].mxu1  ;;  %v812_v20 = vmul.f32 1.1660876, %v5767_v36  ;;  %v810_v22 = vmul.f32 1.1660876, %v5751_v30 }
 0x12d   : > { %v694_v44 = vadd.f32 %v678_v18, %v629_v45  ;;  %v6088_v54 = vadd.f32 %v806_v8, %v755_v24  ;;  %v4867_v11 = vpop.f32.mrb[6].mxu1  ;;  %v813_v8 = vmul.f32 1.1660876, %v5770_v37  ;;  %v685_v37 = vmul.f32 1.1660876, %v5759_v33 }
 0x12e   : > { %v1224_v26 = vpack.c.bf16 %v696_v32, %v695_v4  ;;  %v6093_v16 = vadd.f32 %v4867_v11, %v809_v61  ;;  %v758_v19 = vpop.f32.mrb[7].mxu1  ;;  %v811_v61 = vmul.f32 1.1660876, %v5754_v31 }
 0x12f   : > { %v1223_v3 = vpack.c.bf16 %v694_v44, %v693_v51  ;;  %v6096_v12 = vadd.f32 %v807_v50, %v758_v19  ;;  %v687_v50 = vmul.f32 1.1660876, %v5775_v39 }
 0x130   : > { %v1232_v28 = vpack.c.bf16 %v6093_v16, %v6084_v5 }
 0x131   : > { %v4838_v17 = vpop.f32.mrb[8].mxu0  ;;  %4978 = vmatprep.mubr.msk.bf16.mxu1 %vm1267_vm1, %v1223_v3  ;;  %v1231_v21 = vpack.c.bf16 %v6096_v12, %v6088_v54  ;;  %v688_v3 = vmul.f32 1.1660876, %v5778_v40  ;;  %v7829_v12 = vld [vmem:[#allocation9_spill] sm:$0xff] }
 0x132   : > { %v642_v18 = vpop.f32.mrb[9].mxu0  ;;  %4979 = vmatmul.mubr.msk.bf16.gmra.mrb[36].mxu1 %vm1267_vm1, %v1224_v26  ;;  %v699_v10 = vadd.f32 %v4838_v17, %v683_v1 }
 0x133   : > { %v4839_v27 = vpop.f32.mrb[10].mxu0  ;;  %v697_v32 = vadd.f32 %v681_v25, %v642_v18  ;;  %v4870_v44 = vpop.f32.mrb[8].mxu1 }
 0x134   : > { %v700_v38 = vadd.f32 %v4839_v27, %v684_v15  ;;  %v645_v4 = vpop.f32.mrb[11].mxu0  ;;  %v6106_v0 = vadd.f32 %v4870_v44, %v812_v20  ;;  %v771_v36 = vpop.f32.mrb[9].mxu1  ;;  %v686_v15 = vmul.f32 1.1660876, %v5762_v34  ;;  %v814_v34 = vmul.f32 1.1660876, %v5783_v42 }
 0x135   : > { %v698_v45 = vadd.f32 %v682_v14, %v645_v4  ;;  %v6110_v24 = vadd.f32 %v810_v22, %v771_v36  ;;  %v4871_v1 = vpop.f32.mrb[10].mxu1  ;;  %v816_v14 = vmul.f32 1.1660876, %v5799_v48  ;;  %v931_v44 = vmul.f32 1.1660876, %v5793_v46 }
 0x136   : > { %v1226_v51 = vpack.c.bf16 %v700_v38, %v699_v10  ;;  %v6115_v11 = vadd.f32 %v4871_v1, %v813_v8  ;;  %v774_v31 = vpop.f32.mrb[11].mxu1  ;;  %v817_v38 = vmul.f32 1.1660876, %v5802_v49  ;;  %v934_v42 = vmul.f32 1.1660876, %v5812_v53 }
 0x137   : > { %v1225_v26 = vpack.c.bf16 %v698_v45, %v697_v32  ;;  %v6118_v25 = vadd.f32 %v811_v61, %v774_v31  ;;  %v815_v32 = vmul.f32 1.1660876, %v5786_v43  ;;  %v933_v45 = vmul.f32 1.1660876, %v5809_v52 }
 0x138   : > { %v1234_v40 = vpack.c.bf16 %v6115_v11, %v6106_v0  ;;  %v932_v43 = vmul.f32 1.1660876, %v5796_v47  ;;  %v1062_v31 = vmul.f32 1.1660876, %v5839_v62  ;;  %v938_v62 = vmul.f32 1.1660876, %v5850_v9 }
 0x139   : > { %v4842_v30 = vpop.f32.mrb[12].mxu0  ;;  %4982 = vmatprep.mubr.msk.bf16.mxu1 %vm1267_vm1, %v1225_v26  ;;  %v1233_v33 = vpack.c.bf16 %v6118_v25, %v6110_v24  ;;  %v7837_v25 = vld [vmem:[#allocation17_spill] sm:$0xff] }
 0x13a   : > { %v658_v17 = vpop.f32.mrb[13].mxu0  ;;  %4983 = vmatmul.mubr.msk.bf16.gmra.mrb[40].mxu1 %vm1267_vm1, %v1226_v51  ;;  %v703_v19 = vadd.f32 %v4842_v30, %v687_v50 }
 0x13b   : > { %v4843_v39 = vpop.f32.mrb[14].mxu0  ;;  %v701_v20 = vadd.f32 %v685_v37, %v658_v17  ;;  %v4874_v22 = vpop.f32.mrb[12].mxu1 }
 0x13c   : > { %v704_v18 = vadd.f32 %v4843_v39, %v688_v3  ;;  %v661_v27 = vpop.f32.mrb[15].mxu0  ;;  %v6129_v48 = vadd.f32 %v4874_v22, %v816_v14  ;;  %v787_v51 = vpop.f32.mrb[13].mxu1  ;;  %v1063_v39 = vmul.f32 1.1660876, %v5842_v63 }
 0x13d   : > { %v702_v10 = vadd.f32 %v686_v15, %v661_v27  ;;  %v6132_v61 = vadd.f32 %v814_v34, %v787_v51  ;;  %v4875_v26 = vpop.f32.mrb[14].mxu1  ;;  %v1061_v27 = vmul.f32 1.1660876, %v5821_v56 }
 0x13e   : > { %v1228_v4 = vpack.c.bf16 %v704_v18, %v703_v19  ;;  %v6136_v49 = vadd.f32 %v4875_v26, %v817_v38  ;;  %v790_v36 = vpop.f32.mrb[15].mxu1  ;;  %v935_v19 = vmul.f32 1.1660876, %v5829_v59 }
 0x13f   : > { %v1227_v8 = vpack.c.bf16 %v702_v10, %v701_v20  ;;  %v6140_v52 = vadd.f32 %v815_v32, %v790_v36  ;;  %v7827_v10 = vld [vmem:[#allocation8_spill] sm:$0xff] }
 0x140   : > { %v1236_v53 = vpack.c.bf16 %v6136_v49, %v6129_v48  ;;  %v936_v38 = vmul.f32 1.1660876, %v7827_v10  ;;  %v7853_v48 = vld [vmem:[#allocation33_spill] sm:$0xff] }
 0x141   : > { %4986 = vmatprep.mubr.msk.bf16.mxu1 %vm1267_vm1, %v1227_v8  ;;  %v4894_v50 = vpop.f32.mrb[16].mxu0  ;;  %v1235_v47 = vpack.c.bf16 %v6140_v52, %v6132_v61  ;;  %v1072_v52 = vmul.f32 1.1660876, %v5943_v35 }
 0x142   : > { %4987 = vmatmul.mubr.msk.bf16.gmra.mrb[44].mxu1 %vm1267_vm1, %v1228_v4  ;;  %v6142_v3 = vadd.f32 %v4894_v50, %v933_v45  ;;  %v868_v46 = vpop.f32.mrb[17].mxu0  ;;  %v7831_v50 = vld [vmem:[#allocation14_spill] sm:$0xff] }
 0x143   : > { %4990 = vmatprep.mubr.msk.bf16.mxu1 %vm1267_vm1, %v1229_v7  ;;  %v6150_v1 = vadd.f32 %v931_v44, %v868_v46  ;;  %v4895_v30 = vpop.f32.mrb[18].mxu0  ;;  %v937_v7 = vmul.f32 1.1660876, %v5847_v6  ;;  %v4926_v18 = vpop.f32.mrb[16].mxu1 }
 0x144   : > { %v6154_v37 = vadd.f32 %v4895_v30, %v934_v42  ;;  %v871_v15 = vpop.f32.mrb[19].mxu0  ;;  %v6169_v34 = vadd.f32 %v4926_v18, %v1062_v31  ;;  %v997_v55 = vpop.f32.mrb[17].mxu1  ;;  %v7830_v42 = vld [vmem:[#allocation15_spill] sm:$0xff] }
 0x145   : > { %v6157_v17 = vadd.f32 %v932_v43, %v871_v15  ;;  %v6172_v4 = vadd.f32 %v1060_v57, %v997_v55  ;;  %v4927_v6 = vpop.f32.mrb[18].mxu1  ;;  %v941_v36 = vmul.f32 1.1660876, %v7830_v42  ;;  %v1067_v43 = vmul.f32 1.1660876, %v7831_v50  ;;  %v7832_v30 = vld [vmem:[#allocation11_spill] sm:$0xff] }
 0x146   : > { %v1238_v58 = vpack.c.bf16 %v6154_v37, %v6142_v3  ;;  %v6180_v56 = vadd.f32 %v4927_v6, %v1063_v39  ;;  %v1000_v9 = vpop.f32.mrb[19].mxu1  ;;  %v939_v15 = vmul.f32 1.1660876, %v7832_v30  ;;  %v7833_v57 = vld [vmem:[#allocation10_spill] sm:$0xff]  ;;  %v7834_v39 = vld [vmem:[#allocation16_spill] sm:$0xff]  ;;  %v7838_v50 = vld [vmem:[#allocation23_spill] sm:$0xff] }
 0x147   : > { %v1237_v14 = vpack.c.bf16 %v6157_v17, %v6150_v1  ;;  %v6188_v45 = vadd.f32 %v1061_v27, %v1000_v9  ;;  %v7835_v55 = vld [vmem:[#allocation12_spill] sm:$0xff]  ;;  %v7839_v30 = vld [vmem:[#allocation22_spill] sm:$0xff]  ;;  %v7848_v17 = vld [vmem:[#allocation31_spill] sm:$0xff]  ;;  %v1197_v3 = vmul.f32 1.1660876, %v7853_v48 }
 0x148   : > { %v1246_v29 = vpack.c.bf16 %v6180_v56, %v6169_v34  ;;  %v7854_v37 = vld [vmem:[#allocation36_spill] sm:$0xff] }
 0x149   : > { %v4898_v20 = vpop.f32.mrb[20].mxu0  ;;  %v1245_v54 = vpack.c.bf16 %v6188_v45, %v6172_v4  ;;  %v6411_v45 = vld [vmem:[%s7719_s4] ss:$0 sm:$0xff] }
 0x14a   : > { %4991 = vmatmul.mubr.msk.bf16.gmra.mrb[48].mxu1 %vm1267_vm1, %v1230_v13  ;;  %v6178_v59 = vadd.f32 %v4898_v20, %v937_v7  ;;  %v884_v63 = vpop.f32.mrb[21].mxu0  ;;  %v7828_v13 = vld [vmem:[#allocation13_spill] sm:$0xff]  ;;  %v1065_v7 = vmul.f32 1.1660876, %v7833_v57  ;;  %v940_v20 = vmul.f32 1.1660876, %v7835_v55 }
 0x14b   : > { %4994 = vmatprep.mubr.msk.bf16.mxu1 %vm1267_vm1, %v1231_v21  ;;  %v6186_v22 = vadd.f32 %v935_v19, %v884_v63  ;;  %v4899_v32 = vpop.f32.mrb[22].mxu0  ;;  %v1066_v51 = vmul.f32 1.1660876, %v7828_v13  ;;  %v1064_v21 = vmul.f32 1.1660876, %v7829_v12  ;;  %v4930_v31 = vpop.f32.mrb[20].mxu1 }
 0x14c   : > { %v6190_v8 = vadd.f32 %v4899_v32, %v938_v62  ;;  %v887_v2 = vpop.f32.mrb[23].mxu0  ;;  %v942_v19 = vmul.f32 1.1660876, %v7834_v39  ;;  %v1013_v27 = vpop.f32.mrb[21].mxu1  ;;  %v7840_v57 = vld [vmem:[#allocation19_spill] sm:$0xff] }
 0x14d   : > { %v6195_v44 = vadd.f32 %v936_v38, %v887_v2  ;;  %v6209_v18 = vadd.f32 %v4930_v31, %v1066_v51  ;;  %v6212_v10 = vadd.f32 %v1064_v21, %v1013_v27  ;;  %v4931_v38 = vpop.f32.mrb[22].mxu1 }
 0x14e   : > { %v1240_v26 = vpack.c.bf16 %v6190_v8, %v6178_v59  ;;  %v6220_v9 = vadd.f32 %v4931_v38, %v1067_v43  ;;  %v1016_v32 = vpop.f32.mrb[23].mxu1  ;;  %v945_v43 = vmul.f32 1.1660876, %v7838_v50  ;;  %v7858_v8 = vld [vmem:[#allocation40_spill] sm:$0xff] }
 0x14f   : > { %v1239_v46 = vpack.c.bf16 %v6195_v44, %v6186_v22  ;;  %v6228_v51 = vadd.f32 %v1065_v7, %v1016_v32  ;;  %v943_v7 = vmul.f32 1.1660876, %v7840_v57  ;;  %v7843_v32 = vld [vmem:[#allocation20_spill] sm:$0xff] }
 0x150   : > { %v1248_v16 = vpack.c.bf16 %v6220_v9, %v6209_v18 }
 0x151   : > { %v4902_v62 = vpop.f32.mrb[24].mxu0  ;;  %v1247_v24 = vpack.c.bf16 %v6228_v51, %v6212_v10 }
 0x152   : > { %4995 = vmatmul.mubr.msk.bf16.gmra.mrb[52].mxu1 %vm1267_vm1, %v1232_v28  ;;  %v6218_v6 = vadd.f32 %v4902_v62, %v941_v36  ;;  %v900_v63 = vpop.f32.mrb[25].mxu0  ;;  %v7836_v28 = vld [vmem:[#allocation21_spill] sm:$0xff]  ;;  %v7842_v62 = vld [vmem:[#allocation24_spill] sm:$0xff] }
 0x153   : > { %4998 = vmatprep.mubr.msk.bf16.mxu1 %vm1267_vm1, %v1233_v33  ;;  %v6226_v2 = vadd.f32 %v939_v15, %v900_v63  ;;  %v4903_v13 = vpop.f32.mrb[26].mxu0  ;;  %v1070_v21 = vmul.f32 1.1660876, %v7836_v28  ;;  %v1068_v33 = vmul.f32 1.1660876, %v7837_v25  ;;  %v4934_v39 = vpop.f32.mrb[24].mxu1 }
 0x154   : > { %v6230_v12 = vadd.f32 %v4903_v13, %v942_v19  ;;  %v903_v5 = vpop.f32.mrb[27].mxu0  ;;  %v1071_v15 = vmul.f32 1.1660876, %v7839_v30  ;;  %v7841_v19 = vld [vmem:[#allocation18_spill] sm:$0xff]  ;;  %v946_v55 = vmul.f32 1.1660876, %v7842_v62 }
 0x155   : > { %v6235_v42 = vadd.f32 %v940_v20, %v903_v5  ;;  %v1069_v27 = vmul.f32 1.1660876, %v7841_v19  ;;  %v6249_v20 = vadd.f32 %v4934_v39, %v1070_v21  ;;  %v1029_v38 = vpop.f32.mrb[25].mxu1  ;;  %v944_v13 = vmul.f32 1.1660876, %v7843_v32 }
 0x156   : > { %v1242_v36 = vpack.c.bf16 %v6230_v12, %v6218_v6  ;;  %v6252_v5 = vadd.f32 %v1068_v33, %v1029_v38  ;;  %v4935_v28 = vpop.f32.mrb[26].mxu1  ;;  %v7845_v38 = vld [vmem:[#allocation26_spill] sm:$0xff]  ;;  %v5450_v6 = vld [vmem:[%s7720_s5] sm:$0xff]  }
 0x157   : > { %v1241_v31 = vpack.c.bf16 %v6235_v42, %v6226_v2  ;;  %v6260_v30 = vadd.f32 %v4935_v28, %v1071_v15  ;;  %v1032_v57 = vpop.f32.mrb[27].mxu1  ;;  %v1075_v15 = vmul.f32 1.1660876, %v5965_v60  ;;  %v7846_v28 = vld [vmem:[#allocation28_spill] sm:$0xff]  ;;  %v7847_v60 = vld [vmem:[#allocation27_spill] sm:$0xff]  ;;  %5054 = vmatprep.subr.bf16.mxu0 %v5450_v6  ;;  %5396 = vmatprep.subr.bf16.mxu1 %v5450_v6 }
 0x158   : > { %v6268_v39 = vadd.f32 %v1069_v27, %v1032_v57  ;;  %v1192_v35 = vmul.f32 1.1660876, %v7846_v28  ;;  %5055 = vmatpush3.bf16.msra.mxu0 %v5450_v6  ;;  %5397 = vmatpush3.bf16.msra.mxu1 %v5450_v6 }
 0x159   : > { %v4906_v63 = vpop.f32.mrb[28].mxu0  ;;  %v1250_v11 = vpack.c.bf16 %v6260_v30, %v6249_v20 }
 0x15a   : > { %4999 = vmatmul.mubr.msk.bf16.gmra.mrb[56].mxu1 %vm1267_vm1, %v1234_v40  ;;  %v6258_v25 = vadd.f32 %v4906_v63, %v945_v43  ;;  %v916_v50 = vpop.f32.mrb[29].mxu0  ;;  %v1074_v40 = vmul.f32 1.1660876, %v5962_v23  ;;  %v1249_v61 = vpack.c.bf16 %v6268_v39, %v6252_v5  ;;  %v1189_v63 = vmul.f32 1.1660876, %v7845_v38 }
 0x15b   : > { %5002 = vmatprep.mubr.msk.bf16.mxu1 %vm1267_vm1, %v1235_v47  ;;  %v6266_v21 = vadd.f32 %v943_v7, %v916_v50  ;;  %v4907_v33 = vpop.f32.mrb[30].mxu0  ;;  %v1191_v7 = vmul.f32 1.1660876, %v5970_v41  ;;  %v4938_v62 = vpop.f32.mrb[28].mxu1 }
 0x15c   : > { %v6270_v19 = vadd.f32 %v4907_v33, %v946_v55  ;;  %v919_v0 = vpop.f32.mrb[31].mxu0  ;;  %v7844_v55 = vld [vmem:[#allocation25_spill] sm:$0xff]  ;;  %v6288_v32 = vadd.f32 %v4938_v62, %v1074_v40 }
 0x15d   : > { %v6275_v43 = vadd.f32 %v944_v13, %v919_v0  ;;  %v1073_v23 = vmul.f32 1.1660876, %v7844_v55  ;;  %v1045_v13 = vpop.f32.mrb[29].mxu1  ;;  %v1190_v0 = vmul.f32 1.1660876, %v7847_v60  ;;  %v7851_v60 = vld [vmem:[#allocation30_spill] sm:$0xff] }
 0x15e   : > { %v1244_v47 = vpack.c.bf16 %v6270_v19, %v6258_v25  ;;  %v6291_v50 = vadd.f32 %v1072_v52, %v1045_v13  ;;  %v4939_v57 = vpop.f32.mrb[30].mxu1 }
 0x15f   : > { %v1243_v27 = vpack.c.bf16 %v6275_v43, %v6266_v21  ;;  %v6298_v41 = vadd.f32 %v4939_v57, %v1075_v15  ;;  %v1048_v55 = vpop.f32.mrb[31].mxu1  ;;  %v7850_v57 = vld [vmem:[#allocation32_spill] sm:$0xff] }
 0x160   : > { %v6306_v52 = vadd.f32 %v1073_v23, %v1048_v55  ;;  %v1194_v55 = vmul.f32 1.1660876, %v7851_v60 }
 0x161   : > { %v4958_v33 = vpop.f32.mrb[32].mxu0  ;;  %v7861_v4 = vpack.c.bf16 %v6298_v41, %v6288_v32 }
 0x162   : > { %5003 = vmatmul.mubr.msk.bf16.gmra.mrb[60].mxu1 %vm1267_vm1, %v1236_v53  ;;  %v6300_v38 = vadd.f32 %v4958_v33, %v1191_v7  ;;  %v1126_v40 = vpop.f32.mrb[33].mxu0  ;;  %v1196_v33 = vmul.f32 1.1660876, %v7850_v57  ;;  %v7852_v57 = vld [vmem:[#allocation35_spill] sm:$0xff]  ;;  %v7860_v34 = vpack.c.bf16 %v6306_v52, %v6291_v50 }
 0x163   : > { %5006 = vmatprep.mubr.msk.bf16.mxu1 %vm1267_vm1, %v1237_v14  ;;  %v6308_v62 = vadd.f32 %v1189_v63, %v1126_v40  ;;  %v4959_v13 = vpop.f32.mrb[34].mxu0  ;;  %v1195_v14 = vmul.f32 1.1660876, %v7848_v17  ;;  %v7849_v63 = vld [vmem:[#allocation29_spill] sm:$0xff]  ;;  %v1199_v60 = vmul.f32 1.1660876, %v7852_v57 }
 0x164   : > { %v6312_v49 = vadd.f32 %v4959_v13, %v1192_v35  ;;  %v1129_v53 = vpop.f32.mrb[35].mxu0  ;;  %v1193_v28 = vmul.f32 1.1660876, %v7849_v63 }
 0x165   : > { %v6316_v7 = vadd.f32 %v1190_v0, %v1129_v53 }
 0x166   : > { %v7862_v56 = vpack.c.bf16 %v6312_v49, %v6300_v38 }
 0x167   : > { %v1253_v23 = vpack.c.bf16 %v6316_v7, %v6308_v62 }
 0x169   : > { %v4962_v35 = vpop.f32.mrb[36].mxu0 }
 0x16a   : > { %5007 = vmatmul.mubr.msk.bf16.gmra.mrb[64].mxu1 %vm1267_vm1, %v1238_v58  ;;  %v1211_v0 = vadd.f32 %v4962_v35, %v1195_v14  ;;  %v1142_v40 = vpop.f32.mrb[37].mxu0  ;;  %v1200_v58 = vmul.f32 1.1660876, %v7854_v37  ;;  %v7855_v35 = vld [vmem:[#allocation34_spill] sm:$0xff] }
 0x16b   : > { %5010 = vmatprep.mubr.msk.bf16.mxu1 %vm1267_vm1, %v1239_v46  ;;  %v1209_v62 = vadd.f32 %v1193_v28, %v1142_v40  ;;  %v4963_v13 = vpop.f32.mrb[38].mxu0  ;;  %v1198_v15 = vmul.f32 1.1660876, %v7855_v35  ;;  %v7856_v40 = vld [vmem:[#allocation39_spill] sm:$0xff] }
 0x16c   : > { %v1212_v53 = vadd.f32 %v4963_v13, %v1196_v33  ;;  %v1145_v7 = vpop.f32.mrb[39].mxu0 }
 0x16d   : > { %v1210_v17 = vadd.f32 %v1194_v55, %v1145_v7 }
 0x16e   : > { %v1256_v63 = vpack.c.bf16 %v1212_v53, %v1211_v0  ;;  %v7857_v53 = vld [vmem:[#allocation37_spill] sm:$0xff] }
 0x16f   : > { %v1255_v1 = vpack.c.bf16 %v1210_v17, %v1209_v62  ;;  %v1203_v62 = vmul.f32 1.1660876, %v7856_v40  ;;  %v1201_v59 = vmul.f32 1.1660876, %v7857_v53  ;;  %v7859_v17 = vld [vmem:[#allocation38_spill] sm:$0xff] }
 0x170   : > { %v1202_v57 = vmul.f32 1.1660876, %v7859_v17 }
 0x171   : > { %v4966_v14 = vpop.f32.mrb[40].mxu0 }
 0x172   : > { %5011 = vmatmul.mubr.msk.bf16.gmra.mrb[68].mxu1 %vm1267_vm1, %v1240_v26  ;;  %v1215_v22 = vadd.f32 %v4966_v14, %v1199_v60  ;;  %v1158_v44 = vpop.f32.mrb[41].mxu0  ;;  %v1204_v26 = vmul.f32 1.1660876, %v7858_v8 }
 0x173   : > { %5014 = vmatprep.mubr.msk.bf16.mxu1 %vm1267_vm1, %v1241_v31  ;;  %v1213_v46 = vadd.f32 %v1197_v3, %v1158_v44  ;;  %v4967_v28 = vpop.f32.mrb[42].mxu0 }
 0x174   : > { %v1216_v48 = vadd.f32 %v4967_v28, %v1200_v58  ;;  %v1161_v33 = vpop.f32.mrb[43].mxu0 }
 0x175   : > { %v1214_v55 = vadd.f32 %v1198_v15, %v1161_v33 }
 0x176   : > { %v1258_v0 = vpack.c.bf16 %v1216_v48, %v1215_v22 }
 0x177   : > { %v1257_v13 = vpack.c.bf16 %v1214_v55, %v1213_v46 }
 0x179   : > { %v4970_v7 = vpop.f32.mrb[44].mxu0 }
 0x17a   : > { %5015 = vmatmul.mubr.msk.bf16.gmra.mrb[72].mxu1 %vm1267_vm1, %v1242_v36  ;;  %v1219_v2 = vadd.f32 %v4970_v7, %v1203_v62  ;;  %v1174_v42 = vpop.f32.mrb[45].mxu0 }
 0x17b   : > { %5018 = vmatprep.mubr.msk.bf16.mxu1 %vm1267_vm1, %v1243_v27  ;;  %v1217_v31 = vadd.f32 %v1201_v59, %v1174_v42  ;;  %v4971_v15 = vpop.f32.mrb[46].mxu0 }
 0x17c   : > { %v1220_v60 = vadd.f32 %v4971_v15, %v1204_v26  ;;  %v1177_v3 = vpop.f32.mrb[47].mxu0 }
 0x17d   : > { %v1218_v37 = vadd.f32 %v1202_v57, %v1177_v3 }
 0x17e   : > { %v1260_v58 = vpack.c.bf16 %v1220_v60, %v1219_v2 }
 0x17f   : > { %v1259_v14 = vpack.c.bf16 %v1218_v37, %v1217_v31 }
 0x182   : > { %5019 = vmatmul.mubr.msk.bf16.gmra.mrb[76].mxu1 %vm1267_vm1, %v1244_v47 }
 0x183   : > { %5022 = vmatprep.mubr.msk.bf16.mxu1 %vm1267_vm1, %v1245_v54 }
 0x18a   : > { %5023 = vmatmul.mubr.msk.bf16.gmra.mrb[80].mxu1 %vm1267_vm1, %v1246_v29 }
 0x18b   : > { %5026 = vmatprep.mubr.msk.bf16.mxu1 %vm1267_vm1, %v1247_v24 }
 0x192   : > { %5027 = vmatmul.mubr.msk.bf16.gmra.mrb[84].mxu1 %vm1267_vm1, %v1248_v16 }
 0x193   : > { %5030 = vmatprep.mubr.msk.bf16.mxu1 %vm1267_vm1, %v1249_v61 }
 0x19a   : > { %5031 = vmatmul.mubr.msk.bf16.gmra.mrb[88].mxu1 %vm1267_vm1, %v1250_v11 }
 0x19b   : > { %5034 = vmatprep.mubr.msk.bf16.mxu1 %vm1267_vm1, %v7860_v34 }
 0x1a2   : > { %5035 = vmatmul.mubr.msk.bf16.gmra.mrb[92].mxu1 %vm1267_vm1, %v7861_v4 }
 0x1a3   : > { %5038 = vmatprep.mubr.msk.bf16.mxu1 %vm1267_vm1, %v1253_v23 }
 0x1aa   : > { %5039 = vmatmul.mubr.msk.bf16.gmra.mrb[96].mxu1 %vm1267_vm1, %v7862_v56 }
 0x1ab   : > { %5042 = vmatprep.mubr.msk.bf16.mxu1 %vm1267_vm1, %v1255_v1 }
 0x1b2   : > { %5043 = vmatmul.mubr.msk.bf16.gmra.mrb[100].mxu1 %vm1267_vm1, %v1256_v63 }
 0x1b3   : > { %5046 = vmatprep.mubr.msk.bf16.mxu1 %vm1267_vm1, %v1257_v13 }
 0x1ba   : > { %5047 = vmatmul.mubr.msk.bf16.gmra.mrb[104].mxu1 %vm1267_vm1, %v1258_v0 }
 0x1bb   : > { %5050 = vmatprep.mubr.msk.bf16.mxu1 %vm1267_vm1, %v1259_v14 }
 0x1c2   : > { %5051 = vmatmul.mubr.msk.bf16.gmra.mrb[108].mxu1 %vm1267_vm1, %v1260_v58 }
 0x1fd   : > { %v4976_v29 = vpop.f32.mrb[32].mxu1 }
 0x1fe   : > { %v1435_v54 = vadd.f32 %v4976_v29, %v6411_v45  ;;  %v1426_v18 = vpop.f32.mrb[33].mxu1 }
 0x1ff   : > { %v1427_v10 = vadd.f32 %v6411_v45, %v1426_v18  ;;  %v4977_v9 = vpop.f32.mrb[34].mxu1 }
 0x200   : > { %v1438_v51 = vadd.f32 %v4977_v9, %v6411_v45  ;;  %v1429_v12 = vpop.f32.mrb[35].mxu1  ;;  %v1747_v24 = vmax.f32 %v1435_v54, 0.0 }
 0x201   : > { %v1430_v16 = vadd.f32 %v6411_v45, %v1429_v12  ;;  %v1745_v20 = vmax.f32 %v1427_v10, 0.0 }
 0x202   : > { %v1748_v36 = vmax.f32 %v1438_v51, 0.0 }
 0x203   : > { %v1746_v5 = vmax.f32 %v1430_v16, 0.0 }
 0x204   : > { %v1826_v25 = vpack.c.bf16 %v1748_v36, %v1747_v24 }
 0x205   : > { %v1825_v30 = vpack.c.bf16 %v1746_v5, %v1745_v20  ;;  %v4980_v21 = vpop.f32.mrb[36].mxu1 }
 0x206   : > { %v1451_v39 = vadd.f32 %v4980_v21, %v6411_v45  ;;  %v1442_v19 = vpop.f32.mrb[37].mxu1 }
 0x207   : > { %v1443_v11 = vadd.f32 %v6411_v45, %v1442_v19  ;;  %v4981_v43 = vpop.f32.mrb[38].mxu1  ;;  %5056 = vmatprep.mubr.msk.bf16.mxu0 %vm1877_vm2, %v1825_v30 }
 0x208   : > { %v1454_v61 = vadd.f32 %v4981_v43, %v6411_v45  ;;  %v1445_v47 = vpop.f32.mrb[39].mxu1  ;;  %5057 = vmatmul.mubr.msk.bf16.vlgmr.msra.gmra.mrb[48].mxu0 %vm1877_vm2, %v1826_v25  ;;  %v1751_v32 = vmax.f32 %v1451_v39, 0.0 }
 0x209   : > { %v1446_v27 = vadd.f32 %v6411_v45, %v1445_v47  ;;  %v1749_v41 = vmax.f32 %v1443_v11, 0.0 }
 0x20a   : > { %v1752_v50 = vmax.f32 %v1454_v61, 0.0 }
 0x20b   : > { %v1750_v38 = vmax.f32 %v1446_v27, 0.0 }
 0x20c   : > { %v1828_v52 = vpack.c.bf16 %v1752_v50, %v1751_v32 }
 0x20d   : > { %v1827_v49 = vpack.c.bf16 %v1750_v38, %v1749_v41  ;;  %v4984_v1 = vpop.f32.mrb[40].mxu1 }
 0x20e   : > { %v1467_v23 = vadd.f32 %v4984_v1, %v6411_v45  ;;  %v1458_v63 = vpop.f32.mrb[41].mxu1 }
 0x20f   : > { %v1459_v35 = vadd.f32 %v6411_v45, %v1458_v63  ;;  %v4985_v22 = vpop.f32.mrb[42].mxu1  ;;  %5060 = vmatprep.mubr.msk.bf16.mxu0 %vm1877_vm2, %v1827_v49 }
 0x210   : > { %v1470_v44 = vadd.f32 %v4985_v22, %v6411_v45  ;;  %v1461_v46 = vpop.f32.mrb[43].mxu1  ;;  %5061 = vmatmul.mubr.msk.bf16.gmra.mrb[52].mxu0 %vm1877_vm2, %v1828_v52  ;;  %v1755_v48 = vmax.f32 %v1467_v23, 0.0 }
 0x211   : > { %v1462_v28 = vadd.f32 %v6411_v45, %v1461_v46  ;;  %v1753_v55 = vmax.f32 %v1459_v35, 0.0 }
 0x212   : > { %v1756_v33 = vmax.f32 %v1470_v44, 0.0 }
 0x213   : > { %v1754_v0 = vmax.f32 %v1462_v28, 0.0 }
 0x214   : > { %v1830_v40 = vpack.c.bf16 %v1756_v33, %v1755_v48 }
 0x215   : > { %v1829_v62 = vpack.c.bf16 %v1754_v0, %v1753_v55  ;;  %v4988_v13 = vpop.f32.mrb[44].mxu1 }
 0x216   : > { %v1483_v53 = vadd.f32 %v4988_v13, %v6411_v45  ;;  %v1474_v59 = vpop.f32.mrb[45].mxu1 }
 0x217   : > { %v1475_v8 = vadd.f32 %v6411_v45, %v1474_v59  ;;  %v4989_v26 = vpop.f32.mrb[46].mxu1  ;;  %5064 = vmatprep.mubr.msk.bf16.mxu0 %vm1877_vm2, %v1829_v62 }
 0x218   : > { %v1486_v7 = vadd.f32 %v4989_v26, %v6411_v45  ;;  %v1477_v17 = vpop.f32.mrb[47].mxu1  ;;  %5065 = vmatmul.mubr.msk.bf16.gmra.mrb[56].mxu0 %vm1877_vm2, %v1830_v40  ;;  %v1759_v2 = vmax.f32 %v1483_v53, 0.0 }
 0x219   : > { %v1478_v57 = vadd.f32 %v6411_v45, %v1477_v17  ;;  %v1757_v31 = vmax.f32 %v1475_v8, 0.0 }
 0x21a   : > { %v1760_v42 = vmax.f32 %v1486_v7, 0.0 }
 0x21b   : > { %v1758_v15 = vmax.f32 %v1478_v57, 0.0 }
 0x21c   : > { %v1832_v60 = vpack.c.bf16 %v1760_v42, %v1759_v2 }
 0x21d   : > { %v1831_v3 = vpack.c.bf16 %v1758_v15, %v1757_v31  ;;  %v4992_v37 = vpop.f32.mrb[48].mxu1 }
 0x21e   : > { %v1499_v58 = vadd.f32 %v4992_v37, %v6411_v45  ;;  %v1490_v14 = vpop.f32.mrb[49].mxu1 }
 0x21f   : > { %v1491_v6 = vadd.f32 %v6411_v45, %v1490_v14  ;;  %v4993_v34 = vpop.f32.mrb[50].mxu1  ;;  %5068 = vmatprep.mubr.msk.bf16.mxu0 %vm1877_vm2, %v1831_v3 }
 0x220   : > { %v1502_v4 = vadd.f32 %v4993_v34, %v6411_v45  ;;  %v1493_v56 = vpop.f32.mrb[51].mxu1  ;;  %5069 = vmatmul.mubr.msk.bf16.gmra.mrb[60].mxu0 %vm1877_vm2, %v1832_v60  ;;  %v1763_v54 = vmax.f32 %v1499_v58, 0.0 }
 0x221   : > { %v1494_v29 = vadd.f32 %v6411_v45, %v1493_v56  ;;  %v1761_v10 = vmax.f32 %v1491_v6, 0.0 }
 0x222   : > { %v1764_v18 = vmax.f32 %v1502_v4, 0.0 }
 0x223   : > { %v1762_v9 = vmax.f32 %v1494_v29, 0.0 }
 0x224   : > { %v1834_v51 = vpack.c.bf16 %v1764_v18, %v1763_v54 }
 0x225   : > { %v1833_v12 = vpack.c.bf16 %v1762_v9, %v1761_v10  ;;  %v4996_v16 = vpop.f32.mrb[52].mxu1 }
 0x226   : > { %v1515_v24 = vadd.f32 %v4996_v16, %v6411_v45  ;;  %v1506_v36 = vpop.f32.mrb[53].mxu1 }
 0x227   : > { %v1507_v20 = vadd.f32 %v6411_v45, %v1506_v36  ;;  %v4997_v5 = vpop.f32.mrb[54].mxu1  ;;  %5072 = vmatprep.mubr.msk.bf16.mxu0 %vm1877_vm2, %v1833_v12 }
 0x228   : > { %v1518_v25 = vadd.f32 %v4997_v5, %v6411_v45  ;;  %v1509_v30 = vpop.f32.mrb[55].mxu1  ;;  %5073 = vmatmul.mubr.msk.bf16.gmra.mrb[64].mxu0 %vm1877_vm2, %v1834_v51  ;;  %v1767_v39 = vmax.f32 %v1515_v24, 0.0 }
 0x229   : > { %v1510_v21 = vadd.f32 %v6411_v45, %v1509_v30  ;;  %v1765_v11 = vmax.f32 %v1507_v20, 0.0 }
 0x22a   : > { %v1768_v19 = vmax.f32 %v1518_v25, 0.0 }
 0x22b   : > { %v1766_v43 = vmax.f32 %v1510_v21, 0.0 }
 0x22c   : > { %v1836_v61 = vpack.c.bf16 %v1768_v19, %v1767_v39 }
 0x22d   : > { %v1835_v47 = vpack.c.bf16 %v1766_v43, %v1765_v11  ;;  %v5000_v27 = vpop.f32.mrb[56].mxu1 }
 0x22e   : > { %v1531_v32 = vadd.f32 %v5000_v27, %v6411_v45  ;;  %v1522_v50 = vpop.f32.mrb[57].mxu1 }
 0x22f   : > { %v1523_v41 = vadd.f32 %v6411_v45, %v1522_v50  ;;  %v5001_v38 = vpop.f32.mrb[58].mxu1  ;;  %5076 = vmatprep.mubr.msk.bf16.mxu0 %vm1877_vm2, %v1835_v47 }
 0x230   : > { %v1534_v52 = vadd.f32 %v5001_v38, %v6411_v45  ;;  %v1525_v49 = vpop.f32.mrb[59].mxu1  ;;  %5077 = vmatmul.mubr.msk.bf16.gmra.mrb[68].mxu0 %vm1877_vm2, %v1836_v61  ;;  %v1771_v23 = vmax.f32 %v1531_v32, 0.0 }
 0x231   : > { %v1526_v1 = vadd.f32 %v6411_v45, %v1525_v49  ;;  %v1769_v35 = vmax.f32 %v1523_v41, 0.0 }
 0x232   : > { %v1772_v63 = vmax.f32 %v1534_v52, 0.0 }
 0x233   : > { %v1770_v22 = vmax.f32 %v1526_v1, 0.0 }
 0x234   : > { %v1838_v44 = vpack.c.bf16 %v1772_v63, %v1771_v23 }
 0x235   : > { %v1837_v46 = vpack.c.bf16 %v1770_v22, %v1769_v35  ;;  %v5004_v28 = vpop.f32.mrb[60].mxu1 }
 0x236   : > { %v1547_v48 = vadd.f32 %v5004_v28, %v6411_v45  ;;  %v1538_v33 = vpop.f32.mrb[61].mxu1 }
 0x237   : > { %v1539_v55 = vadd.f32 %v6411_v45, %v1538_v33  ;;  %v5005_v0 = vpop.f32.mrb[62].mxu1  ;;  %5080 = vmatprep.mubr.msk.bf16.mxu0 %vm1877_vm2, %v1837_v46 }
 0x238   : > { %v1550_v40 = vadd.f32 %v5005_v0, %v6411_v45  ;;  %v1541_v62 = vpop.f32.mrb[63].mxu1  ;;  %5081 = vmatmul.mubr.msk.bf16.gmra.mrb[72].mxu0 %vm1877_vm2, %v1838_v44  ;;  %v1775_v53 = vmax.f32 %v1547_v48, 0.0 }
 0x239   : > { %v1542_v13 = vadd.f32 %v6411_v45, %v1541_v62  ;;  %v1773_v8 = vmax.f32 %v1539_v55, 0.0 }
 0x23a   : > { %v1776_v59 = vmax.f32 %v1550_v40, 0.0 }
 0x23b   : > { %v1774_v26 = vmax.f32 %v1542_v13, 0.0 }
 0x23c   : > { %v1840_v7 = vpack.c.bf16 %v1776_v59, %v1775_v53 }
 0x23d   : > { %v1839_v17 = vpack.c.bf16 %v1774_v26, %v1773_v8  ;;  %v5008_v57 = vpop.f32.mrb[64].mxu1 }
 0x23e   : > { %v1563_v2 = vadd.f32 %v5008_v57, %v6411_v45  ;;  %v1554_v42 = vpop.f32.mrb[65].mxu1 }
 0x23f   : > { %v1555_v31 = vadd.f32 %v6411_v45, %v1554_v42  ;;  %v5009_v15 = vpop.f32.mrb[66].mxu1  ;;  %5084 = vmatprep.mubr.msk.bf16.mxu0 %vm1877_vm2, %v1839_v17 }
 0x240   : > { %v1566_v60 = vadd.f32 %v5009_v15, %v6411_v45  ;;  %v1557_v3 = vpop.f32.mrb[67].mxu1  ;;  %5085 = vmatmul.mubr.msk.bf16.gmra.mrb[76].mxu0 %vm1877_vm2, %v1840_v7  ;;  %v1779_v58 = vmax.f32 %v1563_v2, 0.0  ;;  %v6490_v2 = vld [vmem:[%s5660_s19] sm:$0xff]  }
 0x241   : > { %v1558_v37 = vadd.f32 %v6411_v45, %v1557_v3  ;;  %v1777_v6 = vmax.f32 %v1555_v31, 0.0 }
 0x242   : > { %v1780_v14 = vmax.f32 %v1566_v60, 0.0 }
 0x243   : > { %v1778_v34 = vmax.f32 %v1558_v37, 0.0 }
 0x244   : > { %v1842_v4 = vpack.c.bf16 %v1780_v14, %v1779_v58 }
 0x245   : > { %v1841_v56 = vpack.c.bf16 %v1778_v34, %v1777_v6  ;;  %v5012_v29 = vpop.f32.mrb[68].mxu1 }
 0x246   : > { %v1579_v54 = vadd.f32 %v5012_v29, %v6411_v45  ;;  %v1570_v18 = vpop.f32.mrb[69].mxu1 }
 0x247   : > { %v1571_v10 = vadd.f32 %v6411_v45, %v1570_v18  ;;  %v5013_v9 = vpop.f32.mrb[70].mxu1  ;;  %5088 = vmatprep.mubr.msk.bf16.mxu0 %vm1877_vm2, %v1841_v56 }
 0x248   : > { %v1582_v51 = vadd.f32 %v5013_v9, %v6411_v45  ;;  %v1573_v12 = vpop.f32.mrb[71].mxu1  ;;  %5089 = vmatmul.mubr.msk.bf16.gmra.mrb[80].mxu0 %vm1877_vm2, %v1842_v4  ;;  %v1783_v24 = vmax.f32 %v1579_v54, 0.0 }
 0x249   : > { %v1574_v16 = vadd.f32 %v6411_v45, %v1573_v12  ;;  %v1781_v20 = vmax.f32 %v1571_v10, 0.0 }
 0x24a   : > { %v1784_v36 = vmax.f32 %v1582_v51, 0.0 }
 0x24b   : > { %v1782_v5 = vmax.f32 %v1574_v16, 0.0 }
 0x24c   : > { %v1844_v25 = vpack.c.bf16 %v1784_v36, %v1783_v24 }
 0x24d   : > { %v1843_v30 = vpack.c.bf16 %v1782_v5, %v1781_v20  ;;  %v5016_v21 = vpop.f32.mrb[72].mxu1 }
 0x24e   : > { %v1595_v39 = vadd.f32 %v5016_v21, %v6411_v45  ;;  %v1586_v19 = vpop.f32.mrb[73].mxu1 }
 0x24f   : > { %v1587_v11 = vadd.f32 %v6411_v45, %v1586_v19  ;;  %v5017_v43 = vpop.f32.mrb[74].mxu1  ;;  %5092 = vmatprep.mubr.msk.bf16.mxu0 %vm1877_vm2, %v1843_v30 }
 0x250   : > { %v1598_v61 = vadd.f32 %v5017_v43, %v6411_v45  ;;  %v1589_v47 = vpop.f32.mrb[75].mxu1  ;;  %5093 = vmatmul.mubr.msk.bf16.gmra.mrb[84].mxu0 %vm1877_vm2, %v1844_v25  ;;  %v1787_v32 = vmax.f32 %v1595_v39, 0.0 }
 0x251   : > { %v1590_v27 = vadd.f32 %v6411_v45, %v1589_v47  ;;  %v1785_v41 = vmax.f32 %v1587_v11, 0.0 }
 0x252   : > { %v1788_v50 = vmax.f32 %v1598_v61, 0.0 }
 0x253   : > { %v1786_v38 = vmax.f32 %v1590_v27, 0.0 }
 0x254   : > { %v1846_v52 = vpack.c.bf16 %v1788_v50, %v1787_v32 }
 0x255   : > { %v1845_v49 = vpack.c.bf16 %v1786_v38, %v1785_v41  ;;  %v5020_v1 = vpop.f32.mrb[76].mxu1 }
 0x256   : > { %v1611_v23 = vadd.f32 %v5020_v1, %v6411_v45  ;;  %v1602_v63 = vpop.f32.mrb[77].mxu1 }
 0x257   : > { %v1603_v35 = vadd.f32 %v6411_v45, %v1602_v63  ;;  %v5021_v22 = vpop.f32.mrb[78].mxu1  ;;  %5096 = vmatprep.mubr.msk.bf16.mxu0 %vm1877_vm2, %v1845_v49 }
 0x258   : > { %v1614_v44 = vadd.f32 %v5021_v22, %v6411_v45  ;;  %v1605_v46 = vpop.f32.mrb[79].mxu1  ;;  %5097 = vmatmul.mubr.msk.bf16.gmra.mrb[88].mxu0 %vm1877_vm2, %v1846_v52  ;;  %v1791_v48 = vmax.f32 %v1611_v23, 0.0 }
 0x259   : > { %v1606_v28 = vadd.f32 %v6411_v45, %v1605_v46  ;;  %v1789_v55 = vmax.f32 %v1603_v35, 0.0 }
 0x25a   : > { %v1792_v33 = vmax.f32 %v1614_v44, 0.0 }
 0x25b   : > { %v1790_v0 = vmax.f32 %v1606_v28, 0.0 }
 0x25c   : > { %v1848_v40 = vpack.c.bf16 %v1792_v33, %v1791_v48 }
 0x25d   : > { %v1847_v62 = vpack.c.bf16 %v1790_v0, %v1789_v55  ;;  %v5024_v13 = vpop.f32.mrb[80].mxu1 }
 0x25e   : > { %v1627_v53 = vadd.f32 %v5024_v13, %v6411_v45  ;;  %v1618_v59 = vpop.f32.mrb[81].mxu1 }
 0x25f   : > { %v1619_v8 = vadd.f32 %v6411_v45, %v1618_v59  ;;  %v5025_v26 = vpop.f32.mrb[82].mxu1  ;;  %5100 = vmatprep.mubr.msk.bf16.mxu0 %vm1877_vm2, %v1847_v62 }
 0x260   : > { %v1630_v7 = vadd.f32 %v5025_v26, %v6411_v45  ;;  %v1621_v17 = vpop.f32.mrb[83].mxu1  ;;  %5101 = vmatmul.mubr.msk.bf16.gmra.mrb[92].mxu0 %vm1877_vm2, %v1848_v40  ;;  %v1795_v42 = vmax.f32 %v1627_v53, 0.0 }
 0x261   : > { %v1622_v57 = vadd.f32 %v6411_v45, %v1621_v17  ;;  %5184 = vmatprep.mubr.bf16.mxu0 %v6490_v2  ;;  %v1793_v15 = vmax.f32 %v1619_v8, 0.0 }
 0x262   : > { %v1796_v31 = vmax.f32 %v1630_v7, 0.0 }
 0x263   : > { %v1794_v60 = vmax.f32 %v1622_v57, 0.0 }
 0x264   : > { %v1850_v3 = vpack.c.bf16 %v1796_v31, %v1795_v42 }
 0x265   : > { %v1849_v37 = vpack.c.bf16 %v1794_v60, %v1793_v15  ;;  %v5028_v58 = vpop.f32.mrb[84].mxu1 }
 0x266   : > { %v1643_v14 = vadd.f32 %v5028_v58, %v6411_v45  ;;  %v1634_v6 = vpop.f32.mrb[85].mxu1 }
 0x267   : > { %v1635_v34 = vadd.f32 %v6411_v45, %v1634_v6  ;;  %v5029_v4 = vpop.f32.mrb[86].mxu1  ;;  %5104 = vmatprep.mubr.msk.bf16.mxu1 %vm1877_vm2, %v1849_v37 }
 0x268   : > { %v1646_v56 = vadd.f32 %v5029_v4, %v6411_v45  ;;  %v1637_v29 = vpop.f32.mrb[87].mxu1  ;;  %5105 = vmatmul.mubr.msk.bf16.vlgmr.msra.gmra.mrb[112].mxu1 %vm1877_vm2, %v1850_v3  ;;  %v1799_v18 = vmax.f32 %v1643_v14, 0.0 }
 0x269   : > { %v1638_v54 = vadd.f32 %v6411_v45, %v1637_v29  ;;  %v1797_v9 = vmax.f32 %v1635_v34, 0.0 }
 0x26a   : > { %v1800_v10 = vmax.f32 %v1646_v56, 0.0 }
 0x26b   : > { %v1798_v51 = vmax.f32 %v1638_v54, 0.0 }
 0x26c   : > { %v1852_v12 = vpack.c.bf16 %v1800_v10, %v1799_v18 }
 0x26d   : > { %v1851_v16 = vpack.c.bf16 %v1798_v51, %v1797_v9  ;;  %v5032_v24 = vpop.f32.mrb[88].mxu1 }
 0x26e   : > { %v1659_v36 = vadd.f32 %v5032_v24, %v6411_v45  ;;  %v1650_v20 = vpop.f32.mrb[89].mxu1 }
 0x26f   : > { %v1651_v5 = vadd.f32 %v6411_v45, %v1650_v20  ;;  %v5033_v25 = vpop.f32.mrb[90].mxu1  ;;  %5108 = vmatprep.mubr.msk.bf16.mxu1 %vm1877_vm2, %v1851_v16 }
 0x270   : > { %v1662_v30 = vadd.f32 %v5033_v25, %v6411_v45  ;;  %v1653_v21 = vpop.f32.mrb[91].mxu1  ;;  %5109 = vmatmul.mubr.msk.bf16.gmra.mrb[116].mxu1 %vm1877_vm2, %v1852_v12  ;;  %v1803_v19 = vmax.f32 %v1659_v36, 0.0 }
 0x271   : > { %v1654_v39 = vadd.f32 %v6411_v45, %v1653_v21  ;;  %v1801_v43 = vmax.f32 %v1651_v5, 0.0 }
 0x272   : > { %v1804_v11 = vmax.f32 %v1662_v30, 0.0 }
 0x273   : > { %v1802_v61 = vmax.f32 %v1654_v39, 0.0 }
 0x274   : > { %v1854_v47 = vpack.c.bf16 %v1804_v11, %v1803_v19 }
 0x275   : > { %v1853_v27 = vpack.c.bf16 %v1802_v61, %v1801_v43  ;;  %v5036_v32 = vpop.f32.mrb[92].mxu1 }
 0x276   : > { %v1675_v50 = vadd.f32 %v5036_v32, %v6411_v45  ;;  %v1666_v41 = vpop.f32.mrb[93].mxu1 }
 0x277   : > { %v1667_v38 = vadd.f32 %v6411_v45, %v1666_v41  ;;  %v5037_v52 = vpop.f32.mrb[94].mxu1  ;;  %5112 = vmatprep.mubr.msk.bf16.mxu1 %vm1877_vm2, %v1853_v27 }
 0x278   : > { %v1678_v49 = vadd.f32 %v5037_v52, %v6411_v45  ;;  %v1669_v1 = vpop.f32.mrb[95].mxu1  ;;  %5113 = vmatmul.mubr.msk.bf16.gmra.mrb[120].mxu1 %vm1877_vm2, %v1854_v47  ;;  %v1807_v63 = vmax.f32 %v1675_v50, 0.0 }
 0x279   : > { %v1670_v23 = vadd.f32 %v6411_v45, %v1669_v1  ;;  %v1805_v22 = vmax.f32 %v1667_v38, 0.0 }
 0x27a   : > { %v1808_v35 = vmax.f32 %v1678_v49, 0.0 }
 0x27b   : > { %v1806_v44 = vmax.f32 %v1670_v23, 0.0 }
 0x27c   : > { %v1856_v46 = vpack.c.bf16 %v1808_v35, %v1807_v63  ;;  %v6541_v35 = vld [vmem:[%s7721_s6] ss:$0 sm:$0xff] }
 0x27d   : > { %v1855_v28 = vpack.c.bf16 %v1806_v44, %v1805_v22  ;;  %v5040_v48 = vpop.f32.mrb[96].mxu1 }
 0x27e   : > { %v1691_v33 = vadd.f32 %v5040_v48, %v6411_v45  ;;  %v1682_v55 = vpop.f32.mrb[97].mxu1 }
 0x27f   : > { %v1683_v0 = vadd.f32 %v6411_v45, %v1682_v55  ;;  %v5041_v40 = vpop.f32.mrb[98].mxu1  ;;  %5116 = vmatprep.mubr.msk.bf16.mxu1 %vm1877_vm2, %v1855_v28 }
 0x280   : > { %v1694_v62 = vadd.f32 %v5041_v40, %v6411_v45  ;;  %v1685_v13 = vpop.f32.mrb[99].mxu1  ;;  %5117 = vmatmul.mubr.msk.bf16.gmra.mrb[124].mxu1 %vm1877_vm2, %v1856_v46  ;;  %v1811_v59 = vmax.f32 %v1691_v33, 0.0 }
 0x281   : > { %v1686_v53 = vadd.f32 %v6411_v45, %v1685_v13  ;;  %v1809_v26 = vmax.f32 %v1683_v0, 0.0 }
 0x282   : > { %v1812_v8 = vmax.f32 %v1694_v62, 0.0 }
 0x283   : > { %v1810_v7 = vmax.f32 %v1686_v53, 0.0 }
 0x284   : > { %v1858_v17 = vpack.c.bf16 %v1812_v8, %v1811_v59 }
 0x285   : > { %v1857_v57 = vpack.c.bf16 %v1810_v7, %v1809_v26  ;;  %v5044_v42 = vpop.f32.mrb[100].mxu1 }
 0x286   : > { %v1707_v31 = vadd.f32 %v5044_v42, %v6411_v45  ;;  %v1698_v15 = vpop.f32.mrb[101].mxu1 }
 0x287   : > { %v1699_v60 = vadd.f32 %v6411_v45, %v1698_v15  ;;  %v5045_v3 = vpop.f32.mrb[102].mxu1  ;;  %5120 = vmatprep.mubr.msk.bf16.mxu1 %vm1877_vm2, %v1857_v57 }
 0x288   : > { %v1710_v37 = vadd.f32 %v5045_v3, %v6411_v45  ;;  %v1701_v58 = vpop.f32.mrb[103].mxu1  ;;  %5121 = vmatmul.mubr.msk.bf16.gmra.mrb[128].mxu1 %vm1877_vm2, %v1858_v17  ;;  %v1815_v6 = vmax.f32 %v1707_v31, 0.0 }
 0x289   : > { %v1702_v14 = vadd.f32 %v6411_v45, %v1701_v58  ;;  %v1813_v4 = vmax.f32 %v1699_v60, 0.0 }
 0x28a   : > { %v1816_v34 = vmax.f32 %v1710_v37, 0.0 }
 0x28b   : > { %v1814_v56 = vmax.f32 %v1702_v14, 0.0 }
 0x28c   : > { %v1860_v29 = vpack.c.bf16 %v1816_v34, %v1815_v6 }
 0x28d   : > { %v1859_v54 = vpack.c.bf16 %v1814_v56, %v1813_v4  ;;  %v5048_v18 = vpop.f32.mrb[104].mxu1 }
 0x28e   : > { %v1723_v10 = vadd.f32 %v5048_v18, %v6411_v45  ;;  %v1714_v9 = vpop.f32.mrb[105].mxu1 }
 0x28f   : > { %v1715_v51 = vadd.f32 %v6411_v45, %v1714_v9  ;;  %v5049_v12 = vpop.f32.mrb[106].mxu1  ;;  %5124 = vmatprep.mubr.msk.bf16.mxu1 %vm1877_vm2, %v1859_v54 }
 0x290   : > { %v1726_v16 = vadd.f32 %v5049_v12, %v6411_v45  ;;  %v1717_v24 = vpop.f32.mrb[107].mxu1  ;;  %5125 = vmatmul.mubr.msk.bf16.gmra.mrb[132].mxu1 %vm1877_vm2, %v1860_v29  ;;  %v1819_v20 = vmax.f32 %v1723_v10, 0.0 }
 0x291   : > { %v1718_v36 = vadd.f32 %v6411_v45, %v1717_v24  ;;  %v1817_v25 = vmax.f32 %v1715_v51, 0.0 }
 0x292   : > { %v1820_v5 = vmax.f32 %v1726_v16, 0.0 }
 0x293   : > { %v1818_v30 = vmax.f32 %v1718_v36, 0.0 }
 0x294   : > { %v1862_v21 = vpack.c.bf16 %v1820_v5, %v1819_v20 }
 0x295   : > { %v1861_v39 = vpack.c.bf16 %v1818_v30, %v1817_v25  ;;  %v5052_v19 = vpop.f32.mrb[108].mxu1 }
 0x296   : > { %v1739_v11 = vadd.f32 %v5052_v19, %v6411_v45  ;;  %v1730_v43 = vpop.f32.mrb[109].mxu1 }
 0x297   : > { %v1731_v61 = vadd.f32 %v6411_v45, %v1730_v43  ;;  %v5053_v47 = vpop.f32.mrb[110].mxu1  ;;  %5128 = vmatprep.mubr.msk.bf16.mxu1 %vm1877_vm2, %v1861_v39 }
 0x298   : > { %v1742_v27 = vadd.f32 %v5053_v47, %v6411_v45  ;;  %v1733_v32 = vpop.f32.mrb[111].mxu1  ;;  %5129 = vmatmul.mubr.msk.bf16.gmra.mrb[136].mxu1 %vm1877_vm2, %v1862_v21  ;;  %v1823_v41 = vmax.f32 %v1739_v11, 0.0 }
 0x299   : > { %v1734_v50 = vadd.f32 %v6411_v45, %v1733_v32  ;;  %v1821_v52 = vmax.f32 %v1731_v61, 0.0  ;;  %v6624_v61 = vld [vmem:[%s5660_s19 + $0x8] sm:$0xff]  }
 0x29a   : > { %v1824_v38 = vmax.f32 %v1742_v27, 0.0  ;;  %v6628_v27 = vld [vmem:[%s5660_s19 + $0x10] sm:$0xff]  }
 0x29b   : > { %v1822_v49 = vmax.f32 %v1734_v50, 0.0 }
 0x29c   : > { %v1864_v1 = vpack.c.bf16 %v1824_v38, %v1823_v41 }
 0x29d   : > { %v1863_v23 = vpack.c.bf16 %v1822_v49, %v1821_v52 }
 0x29f   : > { %5132 = vmatprep.mubr.msk.bf16.mxu1 %vm1877_vm2, %v1863_v23 }
 0x2a0   : > { %5133 = vmatmul.mubr.msk.bf16.gmra.mrb[140].mxu1 %vm1877_vm2, %v1864_v1 }
 0x2a1   : > { %5152 = vmatprep.mubr.bf16.mxu1 %v6490_v2 }
 0x2db   : > { %v5058_v63 = vpop.f32.mrb[48].mxu0 }
 0x2dc   : > { %v2032_v22 = vpop.f32.mrb[49].mxu0  ;;  %v6544_v44 = vadd.f32 %v5058_v63, %v6541_v35 }
 0x2dd   : > { %v5059_v45 = vpop.f32.mrb[50].mxu0  ;;  %v6550_v48 = vadd.f32 %v6541_v35, %v2032_v22  ;;  %v6648_v22 = vld [vmem:[%s5660_s19 + $0x18] sm:$0xff]  }
 0x2de   : > { %v6547_v46 = vadd.f32 %v5059_v45, %v6541_v35  ;;  %v2035_v28 = vpop.f32.mrb[51].mxu0 }
 0x2df   : > { %v6553_v33 = vadd.f32 %v6541_v35, %v2035_v28  ;;  %v6652_v28 = vld [vmem:[%s5660_s19 + $0x20] sm:$0xff]  }
 0x2e0   : > { %v2358_v55 = vpack.c.bf16 %v6547_v46, %v6544_v44 }
 0x2e1   : > { %v2357_v0 = vpack.c.bf16 %v6553_v33, %v6550_v48 }
 0x2e3   : > { %v5062_v40 = vpop.f32.mrb[52].mxu0  ;;  %5136 = vmatprep.subr.bf16.mxu1 %v2357_v0 }
 0x2e4   : > { %v2048_v62 = vpop.f32.mrb[53].mxu0  ;;  %5137 = vmatpush3.bf16.msra.mxu1 %v2357_v0  ;;  %v6560_v53 = vadd.f32 %v5062_v40, %v6541_v35 }
 0x2e5   : > { %v5063_v13 = vpop.f32.mrb[54].mxu0  ;;  %5138 = vmatprep.subr.bf16.mxu1 %v2358_v55  ;;  %v6566_v26 = vadd.f32 %v6541_v35, %v2048_v62 }
 0x2e6   : > { %v6563_v59 = vadd.f32 %v5063_v13, %v6541_v35  ;;  %v2051_v8 = vpop.f32.mrb[55].mxu0 }
 0x2e7   : > { %v6569_v7 = vadd.f32 %v6541_v35, %v2051_v8 }
 0x2e8   : > { %v2360_v17 = vpack.c.bf16 %v6563_v59, %v6560_v53  ;;  %5139 = vmatpush3.bf16.msra.mxu1 %v2358_v55 }
 0x2e9   : > { %v2359_v57 = vpack.c.bf16 %v6569_v7, %v6566_v26 }
 0x2eb   : > { %v5066_v42 = vpop.f32.mrb[56].mxu0  ;;  %5140 = vmatprep.subr.bf16.mxu1 %v2359_v57 }
 0x2ec   : > { %v2064_v31 = vpop.f32.mrb[57].mxu0  ;;  %5141 = vmatpush3.bf16.msra.mxu1 %v2359_v57  ;;  %v6576_v60 = vadd.f32 %v5066_v42, %v6541_v35 }
 0x2ed   : > { %v5067_v15 = vpop.f32.mrb[58].mxu0  ;;  %5142 = vmatprep.subr.bf16.mxu1 %v2360_v17  ;;  %v6582_v58 = vadd.f32 %v6541_v35, %v2064_v31  ;;  %v6672_v31 = vld [vmem:[%s5660_s19 + $0x28] sm:$0xff]  }
 0x2ee   : > { %v6579_v3 = vadd.f32 %v5067_v15, %v6541_v35  ;;  %v2067_v37 = vpop.f32.mrb[59].mxu0 }
 0x2ef   : > { %v6585_v14 = vadd.f32 %v6541_v35, %v2067_v37  ;;  %v6676_v37 = vld [vmem:[%s5660_s19 + $0x30] sm:$0xff]  }
 0x2f0   : > { %v2362_v6 = vpack.c.bf16 %v6579_v3, %v6576_v60  ;;  %5143 = vmatpush3.bf16.msra.mxu1 %v2360_v17 }
 0x2f1   : > { %v2361_v34 = vpack.c.bf16 %v6585_v14, %v6582_v58 }
 0x2f3   : > { %v5070_v4 = vpop.f32.mrb[60].mxu0  ;;  %5144 = vmatprep.subr.bf16.mxu1 %v2361_v34 }
 0x2f4   : > { %v2080_v56 = vpop.f32.mrb[61].mxu0  ;;  %5145 = vmatpush3.bf16.msra.mxu1 %v2361_v34  ;;  %v6592_v54 = vadd.f32 %v5070_v4, %v6541_v35 }
 0x2f5   : > { %v5071_v29 = vpop.f32.mrb[62].mxu0  ;;  %5146 = vmatprep.subr.bf16.mxu1 %v2362_v6  ;;  %v6598_v9 = vadd.f32 %v6541_v35, %v2080_v56 }
 0x2f6   : > { %v6595_v18 = vadd.f32 %v5071_v29, %v6541_v35  ;;  %v2083_v10 = vpop.f32.mrb[63].mxu0 }
 0x2f7   : > { %v6601_v51 = vadd.f32 %v6541_v35, %v2083_v10 }
 0x2f8   : > { %v2364_v12 = vpack.c.bf16 %v6595_v18, %v6592_v54  ;;  %5147 = vmatpush3.bf16.msra.mxu1 %v2362_v6 }
 0x2f9   : > { %v2363_v16 = vpack.c.bf16 %v6601_v51, %v6598_v9 }
 0x2fb   : > { %v5074_v24 = vpop.f32.mrb[64].mxu0  ;;  %5148 = vmatprep.subr.bf16.mxu1 %v2363_v16 }
 0x2fc   : > { %v2096_v36 = vpop.f32.mrb[65].mxu0  ;;  %5149 = vmatpush3.bf16.msra.mxu1 %v2363_v16  ;;  %v6608_v5 = vadd.f32 %v5074_v24, %v6541_v35 }
 0x2fd   : > { %v5075_v20 = vpop.f32.mrb[66].mxu0  ;;  %5150 = vmatprep.subr.bf16.mxu1 %v2364_v12  ;;  %v6614_v21 = vadd.f32 %v6541_v35, %v2096_v36  ;;  %v6696_v36 = vld [vmem:[%s5660_s19 + $0x38] sm:$0xff]   ;;  %s5541_s19 = smov [#allocation4]  }
 0x2fe   : > { %v6611_v25 = vadd.f32 %v5075_v20, %v6541_v35  ;;  %v2099_v30 = vpop.f32.mrb[67].mxu0  ;;  %s5478_s21 = sshll.u32 %s5541_s19, 4  ;;  %s5479_s21 = int_to_ptr.vmem [resolvable:$false] %s5478_s21 }
 0x2ff   : > { %v6617_v39 = vadd.f32 %v6541_v35, %v2099_v30 }
 0x300   : > { %v2366_v19 = vpack.c.bf16 %v6611_v25, %v6608_v5  ;;  %5151 = vmatpush3.bf16.msra.mxu1 %v2364_v12 }
 0x301   : > { %v2365_v11 = vpack.c.bf16 %v6617_v39, %v6614_v21 }
 0x303   : > { %v5078_v43 = vpop.f32.mrb[68].mxu0  ;;  %5153 = vmatmul.mubr.bf16.vlgmr.msra.gmra.mrb[144].mxu1 %v6624_v61  ;;  %5168 = vmatprep.subr.bf16.mxu0 %v2365_v11 }
 0x304   : > { %v2112_v47 = vpop.f32.mrb[69].mxu0  ;;  %5169 = vmatpush3.bf16.msra.mxu0 %v2365_v11  ;;  %5156 = vmatprep.mubr.bf16.mxu1 %v6628_v27  ;;  %v6632_v50 = vadd.f32 %v5078_v43, %v6541_v35 }
 0x305   : > { %v5079_v32 = vpop.f32.mrb[70].mxu0  ;;  %5170 = vmatprep.subr.bf16.mxu0 %v2366_v19  ;;  %v6638_v52 = vadd.f32 %v6541_v35, %v2112_v47 }
 0x306   : > { %v6635_v41 = vadd.f32 %v5079_v32, %v6541_v35  ;;  %v2115_v38 = vpop.f32.mrb[71].mxu0 }
 0x307   : > { %v6641_v49 = vadd.f32 %v6541_v35, %v2115_v38 }
 0x308   : > { %v2368_v1 = vpack.c.bf16 %v6635_v41, %v6632_v50  ;;  %5171 = vmatpush3.bf16.msra.mxu0 %v2366_v19 }
 0x309   : > { %v2367_v23 = vpack.c.bf16 %v6641_v49, %v6638_v52 }
 0x30b   : > { %v5082_v63 = vpop.f32.mrb[72].mxu0  ;;  %5157 = vmatmul.mubr.bf16.gmra.mrb[148].mxu1 %v6648_v22  ;;  %5172 = vmatprep.subr.bf16.mxu0 %v2367_v23 }
 0x30c   : > { %v2128_v45 = vpop.f32.mrb[73].mxu0  ;;  %5173 = vmatpush3.bf16.msra.mxu0 %v2367_v23  ;;  %5160 = vmatprep.mubr.bf16.mxu1 %v6652_v28  ;;  %v6656_v0 = vadd.f32 %v5082_v63, %v6541_v35 }
 0x30d   : > { %v5083_v55 = vpop.f32.mrb[74].mxu0  ;;  %5174 = vmatprep.subr.bf16.mxu0 %v2368_v1  ;;  %v6662_v13 = vadd.f32 %v6541_v35, %v2128_v45 }
 0x30e   : > { %v6659_v40 = vadd.f32 %v5083_v55, %v6541_v35  ;;  %v2131_v62 = vpop.f32.mrb[75].mxu0 }
 0x30f   : > { %v6665_v8 = vadd.f32 %v6541_v35, %v2131_v62 }
 0x310   : > { %v2370_v17 = vpack.c.bf16 %v6659_v40, %v6656_v0  ;;  %5175 = vmatpush3.bf16.msra.mxu0 %v2368_v1 }
 0x311   : > { %v2369_v57 = vpack.c.bf16 %v6665_v8, %v6662_v13 }
 0x313   : > { %v5086_v42 = vpop.f32.mrb[76].mxu0  ;;  %5161 = vmatmul.mubr.bf16.gmra.mrb[152].mxu1 %v6672_v31  ;;  %5176 = vmatprep.subr.bf16.mxu0 %v2369_v57 }
 0x314   : > { %v2144_v15 = vpop.f32.mrb[77].mxu0  ;;  %5177 = vmatpush3.bf16.msra.mxu0 %v2369_v57  ;;  %5164 = vmatprep.mubr.bf16.mxu1 %v6676_v37  ;;  %v6680_v34 = vadd.f32 %v5086_v42, %v6541_v35 }
 0x315   : > { %v5087_v6 = vpop.f32.mrb[78].mxu0  ;;  %5178 = vmatprep.subr.bf16.mxu0 %v2370_v17  ;;  %v6686_v29 = vadd.f32 %v6541_v35, %v2144_v15 }
 0x316   : > { %v6683_v4 = vadd.f32 %v5087_v6, %v6541_v35  ;;  %v2147_v56 = vpop.f32.mrb[79].mxu0 }
 0x317   : > { %v6689_v10 = vadd.f32 %v6541_v35, %v2147_v56 }
 0x318   : > { %v2372_v12 = vpack.c.bf16 %v6683_v4, %v6680_v34  ;;  %5179 = vmatpush3.bf16.msra.mxu0 %v2370_v17 }
 0x319   : > { %v2371_v16 = vpack.c.bf16 %v6689_v10, %v6686_v29 }
 0x31b   : > { %v5090_v24 = vpop.f32.mrb[80].mxu0  ;;  %5165 = vmatmul.mubr.bf16.gmra.mrb[156].mxu1 %v6696_v36  ;;  %5180 = vmatprep.subr.bf16.mxu0 %v2371_v16 }
 0x31c   : > { %v2160_v20 = vpop.f32.mrb[81].mxu0  ;;  %5181 = vmatpush3.bf16.msra.mxu0 %v2371_v16  ;;  %5216 = vmatprep.mubr.bf16.mxu1 %v6490_v2  ;;  %v6701_v19 = vadd.f32 %v5090_v24, %v6541_v35 }
 0x31d   : > { %v5091_v30 = vpop.f32.mrb[82].mxu0  ;;  %5182 = vmatprep.subr.bf16.mxu0 %v2372_v12  ;;  %v6707_v47 = vadd.f32 %v6541_v35, %v2160_v20 }
 0x31e   : > { %v6704_v11 = vadd.f32 %v5091_v30, %v6541_v35  ;;  %v2163_v43 = vpop.f32.mrb[83].mxu0 }
 0x31f   : > { %v6710_v32 = vadd.f32 %v6541_v35, %v2163_v43 }
 0x320   : > { %v2374_v38 = vpack.c.bf16 %v6704_v11, %v6701_v19  ;;  %5183 = vmatpush3.bf16.msra.mxu0 %v2372_v12 }
 0x321   : > { %v2373_v1 = vpack.c.bf16 %v6710_v32, %v6707_v47 }
 0x323   : > { %v5094_v23 = vpop.f32.mrb[84].mxu0  ;;  %5185 = vmatmul.mubr.bf16.vlgmr.msra.gmra.mrb[96].mxu0 %v6624_v61  ;;  %5200 = vmatprep.subr.bf16.mxu1 %v2373_v1 }
 0x324   : > { %v2176_v63 = vpop.f32.mrb[85].mxu0  ;;  %5201 = vmatpush3.bf16.msra.mxu1 %v2373_v1  ;;  %5188 = vmatprep.mubr.bf16.mxu0 %v6628_v27  ;;  %v6719_v55 = vadd.f32 %v5094_v23, %v6541_v35 }
 0x325   : > { %v5095_v45 = vpop.f32.mrb[86].mxu0  ;;  %5202 = vmatprep.subr.bf16.mxu1 %v2374_v38  ;;  %v6725_v57 = vadd.f32 %v6541_v35, %v2176_v63 }
 0x326   : > { %v6722_v62 = vadd.f32 %v5095_v45, %v6541_v35  ;;  %v2179_v17 = vpop.f32.mrb[87].mxu0 }
 0x327   : > { %v6728_v42 = vadd.f32 %v6541_v35, %v2179_v17 }
 0x328   : > { %v2376_v15 = vpack.c.bf16 %v6722_v62, %v6719_v55  ;;  %5203 = vmatpush3.bf16.msra.mxu1 %v2374_v38 }
 0x329   : > { %v2375_v6 = vpack.c.bf16 %v6728_v42, %v6725_v57 }
 0x32b   : > { %v5098_v56 = vpop.f32.mrb[88].mxu0  ;;  %5189 = vmatmul.mubr.bf16.gmra.mrb[100].mxu0 %v6648_v22  ;;  %5204 = vmatprep.subr.bf16.mxu1 %v2375_v6 }
 0x32c   : > { %v2192_v12 = vpop.f32.mrb[89].mxu0  ;;  %5205 = vmatpush3.bf16.msra.mxu1 %v2375_v6  ;;  %5192 = vmatprep.mubr.bf16.mxu0 %v6652_v28  ;;  %v6737_v24 = vadd.f32 %v5098_v56, %v6541_v35 }
 0x32d   : > { %v5099_v16 = vpop.f32.mrb[90].mxu0  ;;  %5206 = vmatprep.subr.bf16.mxu1 %v2376_v15  ;;  %v6743_v43 = vadd.f32 %v6541_v35, %v2192_v12 }
 0x32e   : > { %v6740_v20 = vadd.f32 %v5099_v16, %v6541_v35  ;;  %v2195_v30 = vpop.f32.mrb[91].mxu0 }
 0x32f   : > { %v6746_v38 = vadd.f32 %v6541_v35, %v2195_v30 }
 0x330   : > { %v2378_v1 = vpack.c.bf16 %v6740_v20, %v6737_v24  ;;  %5207 = vmatpush3.bf16.msra.mxu1 %v2376_v15 }
 0x331   : > { %7863 = vst [vmem:[#allocation8_spill] sm:$0xff] %v6746_v38  ;;  %v2377_v23 = vpack.c.bf16 %v6746_v38, %v6743_v43 }
 0x333   : > { %v5102_v63 = vpop.f32.mrb[92].mxu0  ;;  %5193 = vmatmul.mubr.bf16.gmra.mrb[104].mxu0 %v6672_v31  ;;  %5208 = vmatprep.subr.bf16.mxu1 %v2377_v23 }
 0x334   : > { %v2208_v45 = vpop.f32.mrb[93].mxu0  ;;  %5209 = vmatpush3.bf16.msra.mxu1 %v2377_v23  ;;  %5196 = vmatprep.mubr.bf16.mxu0 %v6676_v37  ;;  %v6755_v6 = vadd.f32 %v5102_v63, %v6541_v35 }
 0x335   : > { %v5103_v17 = vpop.f32.mrb[94].mxu0  ;;  %5210 = vmatprep.subr.bf16.mxu1 %v2378_v1  ;;  %v6761_v12 = vadd.f32 %v6541_v35, %v2208_v45 }
 0x336   : > { %7864 = vst [vmem:[#allocation13_spill] sm:$0xff] %v6755_v6  ;;  %v6758_v56 = vadd.f32 %v5103_v17, %v6541_v35  ;;  %v2211_v15 = vpop.f32.mrb[95].mxu0 }
 0x337   : > { %7866 = vst [vmem:[#allocation15_spill] sm:$0xff] %v6761_v12  ;;  %v6764_v16 = vadd.f32 %v6541_v35, %v2211_v15 }
 0x338   : > { %7865 = vst [vmem:[#allocation9_spill] sm:$0xff] %v6758_v56  ;;  %v2380_v30 = vpack.c.bf16 %v6758_v56, %v6755_v6  ;;  %5211 = vmatpush3.bf16.msra.mxu1 %v2378_v1 }
 0x339   : > { %7867 = vst [vmem:[#allocation14_spill] sm:$0xff] %v6764_v16  ;;  %v2379_v23 = vpack.c.bf16 %v6764_v16, %v6761_v12 }
 0x33b   : > { %v5106_v38 = vpop.f32.mrb[112].mxu1  ;;  %5197 = vmatmul.mubr.bf16.gmra.mrb[108].mxu0 %v6696_v36  ;;  %5212 = vmatprep.subr.bf16.mxu1 %v2379_v23 }
 0x33c   : > { %v2224_v63 = vpop.f32.mrb[113].mxu1  ;;  %5213 = vmatpush3.bf16.msra.mxu1 %v2379_v23  ;;  %5248 = vmatprep.mubr.bf16.mxu0 %v6490_v2  ;;  %v6773_v17 = vadd.f32 %v5106_v38, %v6541_v35 }
 0x33d   : > { %v5107_v45 = vpop.f32.mrb[114].mxu1  ;;  %5214 = vmatprep.subr.bf16.mxu1 %v2380_v30  ;;  %v6779_v56 = vadd.f32 %v6541_v35, %v2224_v63 }
 0x33e   : > { %7868 = vst [vmem:[#allocation11_spill] sm:$0xff] %v6773_v17  ;;  %v6776_v15 = vadd.f32 %v5107_v45, %v6541_v35  ;;  %v2227_v1 = vpop.f32.mrb[115].mxu1 }
 0x33f   : > { %7870 = vst [vmem:[#allocation16_spill] sm:$0xff] %v6779_v56  ;;  %v6782_v16 = vadd.f32 %v6541_v35, %v2227_v1 }
 0x340   : > { %7869 = vst [vmem:[#allocation10_spill] sm:$0xff] %v6776_v15  ;;  %v2382_v23 = vpack.c.bf16 %v6776_v15, %v6773_v17  ;;  %5215 = vmatpush3.bf16.msra.mxu1 %v2380_v30 }
 0x341   : > { %7871 = vst [vmem:[#allocation12_spill] sm:$0xff] %v6782_v16  ;;  %v2381_v12 = vpack.c.bf16 %v6782_v16, %v6779_v56 }
 0x343   : > { %v5110_v6 = vpop.f32.mrb[116].mxu1  ;;  %5217 = vmatmul.mubr.bf16.vlgmr.msra.gmra.mrb[160].mxu1 %v6624_v61  ;;  %5232 = vmatprep.subr.bf16.mxu0 %v2381_v12 }
 0x344   : > { %v2240_v38 = vpop.f32.mrb[117].mxu1  ;;  %5233 = vmatpush3.bf16.msra.mxu0 %v2381_v12  ;;  %5220 = vmatprep.mubr.bf16.mxu1 %v6628_v27  ;;  %v6791_v45 = vadd.f32 %v5110_v6, %v6541_v35 }
 0x345   : > { %v5111_v63 = vpop.f32.mrb[118].mxu1  ;;  %5234 = vmatprep.subr.bf16.mxu0 %v2382_v23  ;;  %v6797_v15 = vadd.f32 %v6541_v35, %v2240_v38 }
 0x346   : > { %7872 = vst [vmem:[#allocation21_spill] sm:$0xff] %v6791_v45  ;;  %v6794_v1 = vadd.f32 %v5111_v63, %v6541_v35  ;;  %v2243_v30 = vpop.f32.mrb[119].mxu1 }
 0x347   : > { %7874 = vst [vmem:[#allocation23_spill] sm:$0xff] %v6797_v15  ;;  %v6800_v16 = vadd.f32 %v6541_v35, %v2243_v30 }
 0x348   : > { %7873 = vst [vmem:[#allocation17_spill] sm:$0xff] %v6794_v1  ;;  %v2384_v12 = vpack.c.bf16 %v6794_v1, %v6791_v45  ;;  %5235 = vmatpush3.bf16.msra.mxu0 %v2382_v23 }
 0x349   : > { %7875 = vst [vmem:[#allocation22_spill] sm:$0xff] %v6800_v16  ;;  %v2383_v56 = vpack.c.bf16 %v6800_v16, %v6797_v15 }
 0x34b   : > { %v5114_v17 = vpop.f32.mrb[120].mxu1  ;;  %5221 = vmatmul.mubr.bf16.gmra.mrb[164].mxu1 %v6648_v22  ;;  %5236 = vmatprep.subr.bf16.mxu0 %v2383_v56 }
 0x34c   : > { %v2256_v6 = vpop.f32.mrb[121].mxu1  ;;  %5237 = vmatpush3.bf16.msra.mxu0 %v2383_v56  ;;  %5224 = vmatprep.mubr.bf16.mxu1 %v6652_v28  ;;  %v6809_v63 = vadd.f32 %v5114_v17, %v6541_v35 }
 0x34d   : > { %v5115_v38 = vpop.f32.mrb[122].mxu1  ;;  %5238 = vmatprep.subr.bf16.mxu0 %v2384_v12  ;;  %v6815_v1 = vadd.f32 %v6541_v35, %v2256_v6 }
 0x34e   : > { %7876 = vst [vmem:[#allocation19_spill] sm:$0xff] %v6809_v63  ;;  %v6812_v30 = vadd.f32 %v5115_v38, %v6541_v35  ;;  %v2259_v23 = vpop.f32.mrb[123].mxu1 }
 0x34f   : > { %7878 = vst [vmem:[#allocation24_spill] sm:$0xff] %v6815_v1  ;;  %v6818_v16 = vadd.f32 %v6541_v35, %v2259_v23 }
 0x350   : > { %7877 = vst [vmem:[#allocation18_spill] sm:$0xff] %v6812_v30  ;;  %v2386_v56 = vpack.c.bf16 %v6812_v30, %v6809_v63  ;;  %5239 = vmatpush3.bf16.msra.mxu0 %v2384_v12 }
 0x351   : > { %7879 = vst [vmem:[#allocation20_spill] sm:$0xff] %v6818_v16  ;;  %v2385_v15 = vpack.c.bf16 %v6818_v16, %v6815_v1 }
 0x353   : > { %v5118_v45 = vpop.f32.mrb[124].mxu1  ;;  %5225 = vmatmul.mubr.bf16.gmra.mrb[168].mxu1 %v6672_v31  ;;  %5240 = vmatprep.subr.bf16.mxu0 %v2385_v15 }
 0x354   : > { %v2272_v17 = vpop.f32.mrb[125].mxu1  ;;  %5241 = vmatpush3.bf16.msra.mxu0 %v2385_v15  ;;  %5228 = vmatprep.mubr.bf16.mxu1 %v6676_v37  ;;  %v6827_v38 = vadd.f32 %v5118_v45, %v6541_v35 }
 0x355   : > { %v5119_v6 = vpop.f32.mrb[126].mxu1  ;;  %5242 = vmatprep.subr.bf16.mxu0 %v2386_v56  ;;  %v6833_v30 = vadd.f32 %v6541_v35, %v2272_v17 }
 0x356   : > { %v6830_v23 = vadd.f32 %v5119_v6, %v6541_v35  ;;  %v2275_v12 = vpop.f32.mrb[127].mxu1  ;;  %v5451_v6 = vld [vmem:[%s7722_s7] sm:$0xff]  }
 0x357   : > { %7881 = vst [vmem:[#allocation26_spill] sm:$0xff] %v6833_v30  ;;  %v6836_v16 = vadd.f32 %v6541_v35, %v2275_v12 }
 0x358   : > { %7880 = vst [vmem:[#allocation25_spill] sm:$0xff] %v6830_v23  ;;  %v2388_v15 = vpack.c.bf16 %v6830_v23, %v6827_v38  ;;  %5243 = vmatpush3.bf16.msra.mxu0 %v2386_v56 }
 0x359   : > { %7882 = vst [vmem:[#allocation28_spill] sm:$0xff] %v6836_v16  ;;  %v2387_v1 = vpack.c.bf16 %v6836_v16, %v6833_v30 }
 0x35b   : > { %v5122_v63 = vpop.f32.mrb[128].mxu1  ;;  %5229 = vmatmul.mubr.bf16.gmra.mrb[172].mxu1 %v6696_v36  ;;  %5244 = vmatprep.subr.bf16.mxu0 %v2387_v1 }
 0x35c   : > { %v2288_v45 = vpop.f32.mrb[129].mxu1  ;;  %5245 = vmatpush3.bf16.msra.mxu0 %v2387_v1  ;;  %5280 = vmatprep.mubr.bf16.mxu1 %v6490_v2  ;;  %v6848_v12 = vadd.f32 %v5122_v63, %v6541_v35 }
 0x35d   : > { %v5123_v17 = vpop.f32.mrb[130].mxu1  ;;  %5246 = vmatprep.subr.bf16.mxu0 %v2388_v15  ;;  %v6854_v23 = vadd.f32 %v6541_v35, %v2288_v45 }
 0x35e   : > { %7883 = vst [vmem:[#allocation27_spill] sm:$0xff] %v6848_v12  ;;  %v6851_v56 = vadd.f32 %v5123_v17, %v6541_v35  ;;  %v2291_v16 = vpop.f32.mrb[131].mxu1 }
 0x35f   : > { %7885 = vst [vmem:[#allocation29_spill] sm:$0xff] %v6854_v23  ;;  %v6857_v1 = vadd.f32 %v6541_v35, %v2291_v16 }
 0x360   : > { %7884 = vst [vmem:[#allocation31_spill] sm:$0xff] %v6851_v56  ;;  %v2390_v2 = vpack.c.bf16 %v6851_v56, %v6848_v12  ;;  %5247 = vmatpush3.bf16.msra.mxu0 %v2388_v15 }
 0x361   : > { %7886 = vst [vmem:[#allocation32_spill] sm:$0xff] %v6857_v1  ;;  %v2389_v30 = vpack.c.bf16 %v6857_v1, %v6854_v23  ;;  %5296 = vmatprep.subr.bf16.mxu0 %v5451_v6 }
 0x363   : > { %v5126_v63 = vpop.f32.mrb[132].mxu1  ;;  %5249 = vmatmul.mubr.bf16.vlgmr.msra.gmra.mrb[112].mxu0 %v6624_v61  ;;  %5264 = vmatprep.subr.bf16.mxu1 %v2389_v30 }
 0x364   : > { %v2304_v17 = vpop.f32.mrb[133].mxu1  ;;  %5265 = vmatpush3.bf16.msra.mxu1 %v2389_v30  ;;  %5252 = vmatprep.mubr.bf16.mxu0 %v6628_v27  ;;  %v6866_v16 = vadd.f32 %v5126_v63, %v6541_v35 }
 0x365   : > { %v5127_v45 = vpop.f32.mrb[134].mxu1  ;;  %5266 = vmatprep.subr.bf16.mxu1 %v2390_v2  ;;  %5297 = vmatpush3.bf16.msra.mxu0 %v5451_v6  ;;  %v6872_v1 = vadd.f32 %v6541_v35, %v2304_v17 }
 0x366   : > { %7887 = vst [vmem:[#allocation30_spill] sm:$0xff] %v6866_v16  ;;  %v6869_v15 = vadd.f32 %v5127_v45, %v6541_v35  ;;  %v2307_v56 = vpop.f32.mrb[135].mxu1 }
 0x367   : > { %7889 = vst [vmem:[#allocation33_spill] sm:$0xff] %v6872_v1  ;;  %v6875_v23 = vadd.f32 %v6541_v35, %v2307_v56 }
 0x368   : > { %7888 = vst [vmem:[#allocation35_spill] sm:$0xff] %v6869_v15  ;;  %v2392_v30 = vpack.c.bf16 %v6869_v15, %v6866_v16  ;;  %5267 = vmatpush3.bf16.msra.mxu1 %v2390_v2 }
 0x369   : > { %7890 = vst [vmem:[#allocation36_spill] sm:$0xff] %v6875_v23  ;;  %v2391_v6 = vpack.c.bf16 %v6875_v23, %v6872_v1 }
 0x36b   : > { %v5130_v12 = vpop.f32.mrb[136].mxu1  ;;  %5253 = vmatmul.mubr.bf16.gmra.mrb[116].mxu0 %v6648_v22  ;;  %5268 = vmatprep.subr.bf16.mxu1 %v2391_v6 }
 0x36c   : > { %v2320_v63 = vpop.f32.mrb[137].mxu1  ;;  %5269 = vmatpush3.bf16.msra.mxu1 %v2391_v6  ;;  %5256 = vmatprep.mubr.bf16.mxu0 %v6652_v28  ;;  %v6884_v56 = vadd.f32 %v5130_v12, %v6541_v35 }
 0x36d   : > { %v5131_v17 = vpop.f32.mrb[138].mxu1  ;;  %5270 = vmatprep.subr.bf16.mxu1 %v2392_v30  ;;  %v6890_v15 = vadd.f32 %v6541_v35, %v2320_v63 }
 0x36e   : > { %v6887_v45 = vadd.f32 %v5131_v17, %v6541_v35  ;;  %v2323_v2 = vpop.f32.mrb[139].mxu1 }
 0x36f   : > { %7892 = vst [vmem:[#allocation39_spill] sm:$0xff] %v6890_v15  ;;  %v6893_v23 = vadd.f32 %v6541_v35, %v2323_v2 }
 0x370   : > { %7891 = vst [vmem:[#allocation34_spill] sm:$0xff] %v6887_v45  ;;  %v2394_v6 = vpack.c.bf16 %v6887_v45, %v6884_v56  ;;  %5271 = vmatpush3.bf16.msra.mxu1 %v2392_v30 }
 0x371   : > { %7893 = vst [vmem:[#allocation37_spill] sm:$0xff] %v6893_v23  ;;  %v2393_v1 = vpack.c.bf16 %v6893_v23, %v6890_v15 }
 0x373   : > { %v5134_v16 = vpop.f32.mrb[140].mxu1  ;;  %5257 = vmatmul.mubr.bf16.gmra.mrb[120].mxu0 %v6672_v31  ;;  %5272 = vmatprep.subr.bf16.mxu1 %v2393_v1 }
 0x374   : > { %v2336_v12 = vpop.f32.mrb[141].mxu1  ;;  %5273 = vmatpush3.bf16.msra.mxu1 %v2393_v1  ;;  %5260 = vmatprep.mubr.bf16.mxu0 %v6676_v37  ;;  %v6902_v17 = vadd.f32 %v5134_v16, %v6541_v35 }
 0x375   : > { %v5135_v63 = vpop.f32.mrb[142].mxu1  ;;  %5274 = vmatprep.subr.bf16.mxu1 %v2394_v6  ;;  %v6908_v45 = vadd.f32 %v6541_v35, %v2336_v12 }
 0x376   : > { %v6905_v2 = vadd.f32 %v5135_v63, %v6541_v35  ;;  %v2339_v30 = vpop.f32.mrb[143].mxu1 }
 0x377   : > { %v6911_v23 = vadd.f32 %v6541_v35, %v2339_v30  ;;  %v2496_v35 = vmul.f32 1.0193458, %v6544_v44  ;;  %v2498_v44 = vmul.f32 1.0193458, %v6566_v26  ;;  %v2502_v26 = vmul.f32 1.0193458, %v6582_v58 }
 0x378   : > { %v2396_v1 = vpack.c.bf16 %v6905_v2, %v6902_v17  ;;  %5275 = vmatpush3.bf16.msra.mxu1 %v2394_v6  ;;  %v2506_v58 = vmul.f32 1.0193458, %v6598_v9  ;;  %v2623_v9 = vmul.f32 1.0193458, %v6614_v21  ;;  %v2627_v21 = vmul.f32 1.0193458, %v6638_v52 }
 0x379   : > { %7894 = vst [vmem:[#allocation40_spill] sm:$0xff] %v6911_v23  ;;  %v2395_v15 = vpack.c.bf16 %v6911_v23, %v6908_v45  ;;  %v2631_v52 = vmul.f32 1.0193458, %v6662_v13  ;;  %v2635_v13 = vmul.f32 1.0193458, %v6686_v29 }
 0x37a   : > { %v2752_v29 = vmul.f32 1.0193458, %v6707_v47  ;;  %v2756_v47 = vmul.f32 1.0193458, %v6725_v57  ;;  %v2760_v57 = vmul.f32 1.0193458, %v6743_v43 }
 0x37b   : > { %5261 = vmatmul.mubr.bf16.gmra.mrb[124].mxu0 %v6696_v36  ;;  %5276 = vmatprep.subr.bf16.mxu1 %v2395_v15  ;;  %v7897_v43 = vld [vmem:[#allocation15_spill] sm:$0xff] }
 0x37c   : > { %5277 = vmatpush3.bf16.msra.mxu1 %v2395_v15  ;;  %v2494_v15 = vmul.f32 1.0193458, %v6550_v48 }
 0x37d   : > { %5278 = vmatprep.subr.bf16.mxu1 %v2396_v1 }
 0x380   : > { %5279 = vmatpush3.bf16.msra.mxu1 %v2396_v1 }
 0x383   : > { %5281 = vmatmul.mubr.bf16.vlgmr.msra.gmra.mrb[176].mxu1 %v6624_v61  ;;  %v2497_v61 = vmul.f32 1.0193458, %v6547_v46  ;;  %v2501_v46 = vmul.f32 1.0193458, %v6563_v59  ;;  %v2505_v59 = vmul.f32 1.0193458, %v6579_v3 }
 0x384   : > { %5284 = vmatprep.mubr.bf16.mxu1 %v6628_v27  ;;  %v2509_v3 = vmul.f32 1.0193458, %v6595_v18  ;;  %v2626_v18 = vmul.f32 1.0193458, %v6611_v25  ;;  %v2630_v25 = vmul.f32 1.0193458, %v6635_v41 }
 0x385   : > { %v2634_v41 = vmul.f32 1.0193458, %v6659_v40  ;;  %v2638_v40 = vmul.f32 1.0193458, %v6683_v4  ;;  %v2755_v4 = vmul.f32 1.0193458, %v6704_v11 }
 0x386   : > { %v2759_v11 = vmul.f32 1.0193458, %v6722_v62  ;;  %v2763_v62 = vmul.f32 1.0193458, %v6740_v20  ;;  %v7898_v20 = vld [vmem:[#allocation9_spill] sm:$0xff] }
 0x38b   : > { %5285 = vmatmul.mubr.bf16.gmra.mrb[180].mxu1 %v6648_v22  ;;  %v2495_v22 = vmul.f32 1.0193458, %v6553_v33 }
 0x38c   : > { %5288 = vmatprep.mubr.bf16.mxu1 %v6652_v28 }
 0x393   : > { %5289 = vmatmul.mubr.bf16.gmra.mrb[184].mxu1 %v6672_v31 }
 0x394   : > { %5292 = vmatprep.mubr.bf16.mxu1 %v6676_v37 }
 0x39b   : > { %5293 = vmatmul.mubr.bf16.gmra.mrb[188].mxu1 %v6696_v36  ;;  %v2500_v36 = vmul.f32 1.0193458, %v6560_v53 }
 0x3d6   : > { %v5154_v16 = vpop.f32.mrb[144].mxu1 }
 0x3d7   : > { %v2512_v6 = vadd.f32 %v5154_v16, %v2496_v35  ;;  %v2431_v12 = vpop.f32.mrb[145].mxu1 }
 0x3d8   : > { %v2510_v27 = vadd.f32 %v2494_v15, %v2431_v12  ;;  %v5155_v63 = vpop.f32.mrb[146].mxu1  ;;  %v2499_v15 = vmul.f32 1.0193458, %v6569_v7 }
 0x3d9   : > { %v2513_v28 = vadd.f32 %v5155_v63, %v2497_v61  ;;  %v2434_v30 = vpop.f32.mrb[147].mxu1  ;;  %v2504_v63 = vmul.f32 1.0193458, %v6576_v60 }
 0x3da   : > { %v2511_v31 = vadd.f32 %v2495_v22, %v2434_v30 }
 0x3db   : > { %v3043_v1 = vpack.c.bf16 %v2513_v28, %v2512_v6 }
 0x3dc   : > { %v3042_v37 = vpack.c.bf16 %v2511_v31, %v2510_v27  ;;  %v2503_v31 = vmul.f32 1.0193458, %v6585_v14 }
 0x3de   : > { %v5158_v23 = vpop.f32.mrb[148].mxu1  ;;  %5298 = vmatprep.mubr.msk.bf16.mxu0 %vm1877_vm2, %v3042_v37 }
 0x3df   : > { %v2516_v48 = vadd.f32 %v5158_v23, %v2500_v36  ;;  %v2447_v35 = vpop.f32.mrb[149].mxu1  ;;  %5299 = vmatmul.mubr.msk.bf16.vlgmr.msra.gmra.mrb[128].mxu0 %vm1877_vm2, %v3043_v1 }
 0x3e0   : > { %v2514_v16 = vadd.f32 %v2498_v44, %v2447_v35  ;;  %v5159_v33 = vpop.f32.mrb[150].mxu1 }
 0x3e1   : > { %v2517_v12 = vadd.f32 %v5159_v33, %v2501_v46  ;;  %v2450_v6 = vpop.f32.mrb[151].mxu1 }
 0x3e2   : > { %v2515_v61 = vadd.f32 %v2499_v15, %v2450_v6  ;;  %v2507_v15 = vmul.f32 1.0193458, %v6601_v51 }
 0x3e3   : > { %v3045_v27 = vpack.c.bf16 %v2517_v12, %v2516_v48  ;;  %v2508_v48 = vmul.f32 1.0193458, %v6592_v54 }
 0x3e4   : > { %v3044_v53 = vpack.c.bf16 %v2515_v61, %v2514_v16 }
 0x3e6   : > { %v5162_v22 = vpop.f32.mrb[152].mxu1  ;;  %5302 = vmatprep.mubr.msk.bf16.mxu0 %vm1877_vm2, %v3044_v53  ;;  %v2625_v53 = vmul.f32 1.0193458, %v6608_v5 }
 0x3e7   : > { %v2520_v23 = vadd.f32 %v5162_v22, %v2504_v63  ;;  %v2463_v28 = vpop.f32.mrb[153].mxu1  ;;  %5303 = vmatmul.mubr.msk.bf16.gmra.mrb[132].mxu0 %vm1877_vm2, %v3045_v27 }
 0x3e8   : > { %v2518_v30 = vadd.f32 %v2502_v26, %v2463_v28  ;;  %v5163_v7 = vpop.f32.mrb[154].mxu1  ;;  %v2624_v28 = vmul.f32 1.0193458, %v6617_v39 }
 0x3e9   : > { %v2521_v1 = vadd.f32 %v5163_v7, %v2505_v59  ;;  %v2466_v37 = vpop.f32.mrb[155].mxu1 }
 0x3ea   : > { %v2519_v36 = vadd.f32 %v2503_v31, %v2466_v37 }
 0x3eb   : > { %v3047_v44 = vpack.c.bf16 %v2521_v1, %v2520_v23  ;;  %v2629_v1 = vmul.f32 1.0193458, %v6632_v50 }
 0x3ec   : > { %v3046_v60 = vpack.c.bf16 %v2519_v36, %v2518_v30 }
 0x3ee   : > { %v5166_v35 = vpop.f32.mrb[156].mxu1  ;;  %5306 = vmatprep.mubr.msk.bf16.mxu0 %vm1877_vm2, %v3046_v60 }
 0x3ef   : > { %v2524_v46 = vadd.f32 %v5166_v35, %v2508_v48  ;;  %v2479_v16 = vpop.f32.mrb[157].mxu1  ;;  %5307 = vmatmul.mubr.msk.bf16.gmra.mrb[136].mxu0 %vm1877_vm2, %v3047_v44  ;;  %v2628_v48 = vmul.f32 1.0193458, %v6641_v49 }
 0x3f0   : > { %v2522_v33 = vadd.f32 %v2506_v58, %v2479_v16  ;;  %v5167_v14 = vpop.f32.mrb[158].mxu1 }
 0x3f1   : > { %v2525_v12 = vadd.f32 %v5167_v14, %v2509_v3  ;;  %v2482_v6 = vpop.f32.mrb[159].mxu1  ;;  %v2633_v3 = vmul.f32 1.0193458, %v6656_v0 }
 0x3f2   : > { %v2523_v61 = vadd.f32 %v2507_v15, %v2482_v6  ;;  %v2632_v6 = vmul.f32 1.0193458, %v6665_v8 }
 0x3f3   : > { %v3049_v27 = vpack.c.bf16 %v2525_v12, %v2524_v46 }
 0x3f4   : > { %v3048_v54 = vpack.c.bf16 %v2523_v61, %v2522_v33 }
 0x3f6   : > { %v5186_v63 = vpop.f32.mrb[96].mxu0  ;;  %5310 = vmatprep.mubr.msk.bf16.mxu0 %vm1877_vm2, %v3048_v54 }
 0x3f7   : > { %v2641_v22 = vadd.f32 %v5186_v63, %v2625_v53  ;;  %v2560_v26 = vpop.f32.mrb[97].mxu0  ;;  %5311 = vmatmul.mubr.msk.bf16.gmra.mrb[140].mxu0 %vm1877_vm2, %v3049_v27  ;;  %v2637_v63 = vmul.f32 1.0193458, %v6680_v34 }
 0x3f8   : > { %v2639_v23 = vadd.f32 %v2623_v9, %v2560_v26  ;;  %v5187_v51 = vpop.f32.mrb[98].mxu0 }
 0x3f9   : > { %v2642_v59 = vadd.f32 %v5187_v51, %v2626_v18  ;;  %v2563_v30 = vpop.f32.mrb[99].mxu0 }
 0x3fa   : > { %v2640_v7 = vadd.f32 %v2624_v28, %v2563_v30 }
 0x3fb   : > { %v3051_v31 = vpack.c.bf16 %v2642_v59, %v2641_v22 }
 0x3fc   : > { %v3050_v5 = vpack.c.bf16 %v2640_v7, %v2639_v23  ;;  %v2636_v23 = vmul.f32 1.0193458, %v6689_v10  ;;  %v2754_v7 = vmul.f32 1.0193458, %v6701_v19 }
 0x3fe   : > { %v5190_v37 = vpop.f32.mrb[100].mxu0  ;;  %5314 = vmatprep.mubr.msk.bf16.mxu0 %vm1877_vm2, %v3050_v5 }
 0x3ff   : > { %v2645_v36 = vadd.f32 %v5190_v37, %v2629_v1  ;;  %v2576_v44 = vpop.f32.mrb[101].mxu0  ;;  %5315 = vmatmul.mubr.msk.bf16.gmra.mrb[144].mxu0 %vm1877_vm2, %v3051_v31 }
 0x400   : > { %v2643_v60 = vadd.f32 %v2627_v21, %v2576_v44  ;;  %v5191_v39 = vpop.f32.mrb[102].mxu0  ;;  %v2753_v21 = vmul.f32 1.0193458, %v6710_v32 }
 0x401   : > { %v2646_v35 = vadd.f32 %v5191_v39, %v2630_v25  ;;  %v2579_v58 = vpop.f32.mrb[103].mxu0  ;;  %v2758_v39 = vmul.f32 1.0193458, %v6719_v55 }
 0x402   : > { %v2644_v46 = vadd.f32 %v2628_v48, %v2579_v58 }
 0x403   : > { %v3053_v16 = vpack.c.bf16 %v2646_v35, %v2645_v36 }
 0x404   : > { %v3052_v50 = vpack.c.bf16 %v2644_v46, %v2643_v60 }
 0x406   : > { %v5194_v33 = vpop.f32.mrb[104].mxu0  ;;  %5318 = vmatprep.mubr.msk.bf16.mxu0 %vm1877_vm2, %v3052_v50 }
 0x407   : > { %v2649_v14 = vadd.f32 %v5194_v33, %v2633_v3  ;;  %v2592_v15 = vpop.f32.mrb[105].mxu0  ;;  %5319 = vmatmul.mubr.msk.bf16.gmra.mrb[148].mxu0 %vm1877_vm2, %v3053_v16  ;;  %v2757_v16 = vmul.f32 1.0193458, %v6728_v42 }
 0x408   : > { %v2647_v12 = vadd.f32 %v2631_v52, %v2592_v15  ;;  %v5195_v49 = vpop.f32.mrb[106].mxu0 }
 0x409   : > { %v2650_v61 = vadd.f32 %v5195_v49, %v2634_v41  ;;  %v2595_v27 = vpop.f32.mrb[107].mxu0 }
 0x40a   : > { %v2648_v54 = vadd.f32 %v2632_v6, %v2595_v27  ;;  %v7895_v6 = vld [vmem:[#allocation8_spill] sm:$0xff] }
 0x40b   : > { %v3055_v53 = vpack.c.bf16 %v2650_v61, %v2649_v14  ;;  %v2762_v14 = vmul.f32 1.0193458, %v6737_v24  ;;  %v2761_v61 = vmul.f32 1.0193458, %v7895_v6 }
 0x40c   : > { %v3054_v0 = vpack.c.bf16 %v2648_v54, %v2647_v12 }
 0x40e   : > { %v5198_v9 = vpop.f32.mrb[108].mxu0  ;;  %5322 = vmatprep.mubr.msk.bf16.mxu0 %vm1877_vm2, %v3054_v0 }
 0x40f   : > { %v2653_v22 = vadd.f32 %v5198_v9, %v2637_v63  ;;  %v2608_v26 = vpop.f32.mrb[109].mxu0  ;;  %5323 = vmatmul.mubr.msk.bf16.gmra.mrb[152].mxu0 %vm1877_vm2, %v3055_v53  ;;  %v7896_v63 = vld [vmem:[#allocation13_spill] sm:$0xff] }
 0x410   : > { %v2651_v18 = vadd.f32 %v2635_v13, %v2608_v26  ;;  %v5199_v8 = vpop.f32.mrb[110].mxu0  ;;  %v2766_v9 = vmul.f32 1.0193458, %v7896_v63 }
 0x411   : > { %v2654_v51 = vadd.f32 %v5199_v8, %v2638_v40  ;;  %v2611_v28 = vpop.f32.mrb[111].mxu0 }
 0x412   : > { %v2652_v59 = vadd.f32 %v2636_v23, %v2611_v28 }
 0x413   : > { %v3057_v30 = vpack.c.bf16 %v2654_v51, %v2653_v22  ;;  %v2764_v22 = vmul.f32 1.0193458, %v7897_v43  ;;  %v7899_v51 = vld [vmem:[#allocation14_spill] sm:$0xff] }
 0x414   : > { %v3056_v34 = vpack.c.bf16 %v2652_v59, %v2651_v18  ;;  %v2767_v18 = vmul.f32 1.0193458, %v7898_v20  ;;  %v2765_v28 = vmul.f32 1.0193458, %v7899_v51 }
 0x416   : > { %v5218_v31 = vpop.f32.mrb[160].mxu1  ;;  %5326 = vmatprep.mubr.msk.bf16.mxu0 %vm1877_vm2, %v3056_v34 }
 0x417   : > { %v2770_v5 = vadd.f32 %v5218_v31, %v2754_v7  ;;  %v2689_v1 = vpop.f32.mrb[161].mxu1  ;;  %5327 = vmatmul.mubr.msk.bf16.gmra.mrb[156].mxu0 %vm1877_vm2, %v3057_v30 }
 0x418   : > { %v2768_v37 = vadd.f32 %v2752_v29, %v2689_v1  ;;  %v5219_v10 = vpop.f32.mrb[162].mxu1  ;;  %v7900_v29 = vld [vmem:[#allocation11_spill] sm:$0xff] }
 0x419   : > { %v2771_v36 = vadd.f32 %v5219_v10, %v2755_v4  ;;  %v2692_v44 = vpop.f32.mrb[163].mxu1  ;;  %v7901_v4 = vld [vmem:[#allocation16_spill] sm:$0xff] }
 0x41a   : > { %v2769_v25 = vadd.f32 %v2753_v21, %v2692_v44 }
 0x41b   : > { %v3059_v60 = vpack.c.bf16 %v2771_v36, %v2770_v5  ;;  %v2883_v5 = vmul.f32 1.0193458, %v7900_v29  ;;  %v7902_v36 = vld [vmem:[#allocation10_spill] sm:$0xff] }
 0x41c   : > { %v3058_v19 = vpack.c.bf16 %v2769_v25, %v2768_v37  ;;  %v2881_v37 = vmul.f32 1.0193458, %v7901_v4  ;;  %v2884_v44 = vmul.f32 1.0193458, %v7902_v36 }
 0x41e   : > { %v5222_v48 = vpop.f32.mrb[164].mxu1  ;;  %5330 = vmatprep.mubr.msk.bf16.mxu0 %vm1877_vm2, %v3058_v19  ;;  %v7903_v19 = vld [vmem:[#allocation12_spill] sm:$0xff] }
 0x41f   : > { %v2774_v35 = vadd.f32 %v5222_v48, %v2758_v39  ;;  %v2705_v58 = vpop.f32.mrb[165].mxu1  ;;  %5331 = vmatmul.mubr.msk.bf16.gmra.mrb[160].mxu0 %vm1877_vm2, %v3059_v60  ;;  %v2882_v39 = vmul.f32 1.0193458, %v7903_v19  ;;  %v7915_v19 = vld [vmem:[#allocation27_spill] sm:$0xff] }
 0x420   : > { %v2772_v46 = vadd.f32 %v2756_v47, %v2705_v58  ;;  %v5223_v32 = vpop.f32.mrb[166].mxu1 }
 0x421   : > { %v2775_v50 = vadd.f32 %v5223_v32, %v2759_v11  ;;  %v2708_v3 = vpop.f32.mrb[167].mxu1 }
 0x422   : > { %v2773_v33 = vadd.f32 %v2757_v16, %v2708_v3 }
 0x423   : > { %v3061_v52 = vpack.c.bf16 %v2775_v50, %v2774_v35  ;;  %v7905_v50 = vld [vmem:[#allocation23_spill] sm:$0xff] }
 0x424   : > { %v3060_v55 = vpack.c.bf16 %v2773_v33, %v2772_v46  ;;  %v7904_v46 = vld [vmem:[#allocation21_spill] sm:$0xff]  ;;  %v2885_v3 = vmul.f32 1.0193458, %v7905_v50 }
 0x425   : > { %v2887_v32 = vmul.f32 1.0193458, %v7904_v46  ;;  %v7917_v46 = vld [vmem:[#allocation31_spill] sm:$0xff] }
 0x426   : > { %v5226_v15 = vpop.f32.mrb[168].mxu1  ;;  %5334 = vmatprep.mubr.msk.bf16.mxu0 %vm1877_vm2, %v3060_v55  ;;  %v7906_v55 = vld [vmem:[#allocation17_spill] sm:$0xff] }
 0x427   : > { %v2778_v41 = vadd.f32 %v5226_v15, %v2762_v14  ;;  %v2721_v12 = vpop.f32.mrb[169].mxu1  ;;  %5335 = vmatmul.mubr.msk.bf16.gmra.mrb[164].mxu0 %vm1877_vm2, %v3061_v52  ;;  %v2888_v14 = vmul.f32 1.0193458, %v7906_v55 }
 0x428   : > { %v2776_v49 = vadd.f32 %v2760_v57, %v2721_v12  ;;  %v5227_v42 = vpop.f32.mrb[170].mxu1 }
 0x429   : > { %v2779_v27 = vadd.f32 %v5227_v42, %v2763_v62  ;;  %v2724_v54 = vpop.f32.mrb[171].mxu1 }
 0x42a   : > { %v2777_v53 = vadd.f32 %v2761_v61, %v2724_v54 }
 0x42b   : > { %v3063_v0 = vpack.c.bf16 %v2779_v27, %v2778_v41  ;;  %v7907_v41 = vld [vmem:[#allocation22_spill] sm:$0xff]  ;;  %v7908_v27 = vld [vmem:[#allocation19_spill] sm:$0xff] }
 0x42c   : > { %v3062_v24 = vpack.c.bf16 %v2777_v53, %v2776_v49  ;;  %v2886_v12 = vmul.f32 1.0193458, %v7907_v41  ;;  %v2891_v54 = vmul.f32 1.0193458, %v7908_v27  ;;  %v7919_v41 = vld [vmem:[#allocation30_spill] sm:$0xff]  ;;  %v7921_v27 = vld [vmem:[#allocation35_spill] sm:$0xff] }
 0x42e   : > { %v5230_v13 = vpop.f32.mrb[172].mxu1  ;;  %5338 = vmatprep.mubr.msk.bf16.mxu0 %vm1877_vm2, %v3062_v24 }
 0x42f   : > { %v2782_v26 = vadd.f32 %v5230_v13, %v2766_v9  ;;  %v2737_v40 = vpop.f32.mrb[173].mxu1  ;;  %5339 = vmatmul.mubr.msk.bf16.gmra.mrb[168].mxu0 %vm1877_vm2, %v3063_v0  ;;  %v7909_v0 = vld [vmem:[#allocation24_spill] sm:$0xff]  ;;  %v7910_v13 = vld [vmem:[#allocation18_spill] sm:$0xff] }
 0x430   : > { %v2780_v8 = vadd.f32 %v2764_v22, %v2737_v40  ;;  %v5231_v23 = vpop.f32.mrb[174].mxu1  ;;  %v2889_v24 = vmul.f32 1.0193458, %v7909_v0  ;;  %v2892_v43 = vmul.f32 1.0193458, %v7910_v13  ;;  %v7911_v40 = vld [vmem:[#allocation20_spill] sm:$0xff] }
 0x431   : > { %v2783_v59 = vadd.f32 %v5231_v23, %v2767_v18  ;;  %v2740_v30 = vpop.f32.mrb[175].mxu1  ;;  %v2890_v20 = vmul.f32 1.0193458, %v7911_v40  ;;  %v3020_v40 = vmul.f32 1.0193458, %v6884_v56 }
 0x432   : > { %v2781_v34 = vadd.f32 %v2765_v28, %v2740_v30 }
 0x433   : > { %v3065_v7 = vpack.c.bf16 %v2783_v59, %v2782_v26  ;;  %v2895_v59 = vmul.f32 1.0193458, %v6827_v38 }
 0x434   : > { %v3064_v31 = vpack.c.bf16 %v2781_v34, %v2780_v8  ;;  %v7912_v34 = vld [vmem:[#allocation26_spill] sm:$0xff] }
 0x436   : > { %v5250_v1 = vpop.f32.mrb[112].mxu0  ;;  %5342 = vmatprep.mubr.msk.bf16.mxu0 %vm1877_vm2, %v3064_v31 }
 0x437   : > { %v2899_v10 = vadd.f32 %v5250_v1, %v2883_v5  ;;  %v2818_v21 = vpop.f32.mrb[113].mxu0  ;;  %5343 = vmatmul.mubr.msk.bf16.gmra.mrb[172].mxu0 %vm1877_vm2, %v3065_v7  ;;  %v2893_v7 = vmul.f32 1.0193458, %v7912_v34  ;;  %v7913_v5 = vld [vmem:[#allocation25_spill] sm:$0xff] }
 0x438   : > { %v2897_v25 = vadd.f32 %v2881_v37, %v2818_v21  ;;  %v5251_v60 = vpop.f32.mrb[114].mxu0  ;;  %v2896_v1 = vmul.f32 1.0193458, %v7913_v5 }
 0x439   : > { %v2900_v48 = vadd.f32 %v5251_v60, %v2884_v44  ;;  %v2821_v47 = vpop.f32.mrb[115].mxu0 }
 0x43a   : > { %v2898_v35 = vadd.f32 %v2882_v39, %v2821_v47  ;;  %v3012_v39 = vmul.f32 1.0193458, %v7915_v19  ;;  %v7916_v47 = vld [vmem:[#allocation29_spill] sm:$0xff]  ;;  %v7926_v19 = vld [vmem:[#allocation40_spill] sm:$0xff] }
 0x43b   : > { %v3067_v58 = vpack.c.bf16 %v2900_v48, %v2899_v10  ;;  %v7914_v10 = vld [vmem:[#allocation28_spill] sm:$0xff] }
 0x43c   : > { %v3066_v11 = vpack.c.bf16 %v2898_v35, %v2897_v25  ;;  %v2894_v21 = vmul.f32 1.0193458, %v7914_v10  ;;  %v3010_v35 = vmul.f32 1.0193458, %v7916_v47 }
 0x43e   : > { %v5254_v16 = vpop.f32.mrb[116].mxu0  ;;  %5346 = vmatprep.mubr.msk.bf16.mxu0 %vm1877_vm2, %v3066_v11 }
 0x43f   : > { %v2903_v33 = vadd.f32 %v5254_v16, %v2887_v32  ;;  %v2834_v52 = vpop.f32.mrb[117].mxu0  ;;  %5347 = vmatmul.mubr.msk.bf16.gmra.mrb[176].mxu0 %vm1877_vm2, %v3067_v58  ;;  %v3013_v32 = vmul.f32 1.0193458, %v7917_v46 }
 0x440   : > { %v2901_v15 = vadd.f32 %v2885_v3, %v2834_v52  ;;  %v5255_v57 = vpop.f32.mrb[118].mxu0  ;;  %v7918_v3 = vld [vmem:[#allocation32_spill] sm:$0xff] }
 0x441   : > { %v2904_v62 = vadd.f32 %v5255_v57, %v2888_v14  ;;  %v2837_v49 = vpop.f32.mrb[119].mxu0 }
 0x442   : > { %v2902_v42 = vadd.f32 %v2886_v12, %v2837_v49  ;;  %v3016_v12 = vmul.f32 1.0193458, %v7919_v41  ;;  %v7920_v49 = vld [vmem:[#allocation33_spill] sm:$0xff] }
 0x443   : > { %v3069_v6 = vpack.c.bf16 %v2904_v62, %v2903_v33  ;;  %v3011_v33 = vmul.f32 1.0193458, %v7918_v3 }
 0x444   : > { %v3068_v61 = vpack.c.bf16 %v2902_v42, %v2901_v15  ;;  %v3014_v42 = vmul.f32 1.0193458, %v7920_v49  ;;  %v7076_v49 = vld [vmem:[%s7723_s8] ss:$0 sm:$0xff] }
 0x446   : > { %v5258_v53 = vpop.f32.mrb[120].mxu0  ;;  %5350 = vmatprep.mubr.msk.bf16.mxu0 %vm1877_vm2, %v3068_v61 }
 0x447   : > { %v2907_v63 = vadd.f32 %v5258_v53, %v2891_v54  ;;  %v2850_v9 = vpop.f32.mrb[121].mxu0  ;;  %5351 = vmatmul.mubr.msk.bf16.gmra.mrb[180].mxu0 %vm1877_vm2, %v3069_v6  ;;  %v3017_v54 = vmul.f32 1.0193458, %v7921_v27 }
 0x448   : > { %v2905_v22 = vadd.f32 %v2889_v24, %v2850_v9  ;;  %v5259_v26 = vpop.f32.mrb[122].mxu0  ;;  %v7922_v24 = vld [vmem:[#allocation36_spill] sm:$0xff] }
 0x449   : > { %v2908_v18 = vadd.f32 %v5259_v26, %v2892_v43  ;;  %v2853_v8 = vpop.f32.mrb[123].mxu0 }
 0x44a   : > { %v2906_v23 = vadd.f32 %v2890_v20, %v2853_v8 }
 0x44b   : > { %v3071_v51 = vpack.c.bf16 %v2908_v18, %v2907_v63  ;;  %v3015_v63 = vmul.f32 1.0193458, %v7922_v24  ;;  %v7923_v18 = vld [vmem:[#allocation39_spill] sm:$0xff] }
 0x44c   : > { %v3070_v28 = vpack.c.bf16 %v2906_v23, %v2905_v22  ;;  %v3018_v8 = vmul.f32 1.0193458, %v7923_v18 }
 0x44e   : > { %v5262_v30 = vpop.f32.mrb[124].mxu0  ;;  %5354 = vmatprep.mubr.msk.bf16.mxu0 %vm1877_vm2, %v3070_v28  ;;  %v7924_v28 = vld [vmem:[#allocation34_spill] sm:$0xff] }
 0x44f   : > { %v2911_v31 = vadd.f32 %v5262_v30, %v2895_v59  ;;  %v2866_v29 = vpop.f32.mrb[125].mxu0  ;;  %5355 = vmatmul.mubr.msk.bf16.gmra.mrb[184].mxu0 %vm1877_vm2, %v3071_v51  ;;  %v3021_v59 = vmul.f32 1.0193458, %v7924_v28 }
 0x450   : > { %v2909_v4 = vadd.f32 %v2893_v7, %v2866_v29  ;;  %v5263_v37 = vpop.f32.mrb[126].mxu0  ;;  %v7925_v7 = vld [vmem:[#allocation37_spill] sm:$0xff] }
 0x451   : > { %v2912_v36 = vadd.f32 %v5263_v37, %v2896_v1  ;;  %v2869_v44 = vpop.f32.mrb[127].mxu0  ;;  %v3024_v37 = vmul.f32 1.0193458, %v6902_v17 }
 0x452   : > { %v2910_v25 = vadd.f32 %v2894_v21, %v2869_v44  ;;  %v3022_v21 = vmul.f32 1.0193458, %v6908_v45 }
 0x453   : > { %v3073_v60 = vpack.c.bf16 %v2912_v36, %v2911_v31  ;;  %v3019_v31 = vmul.f32 1.0193458, %v7925_v7 }
 0x454   : > { %v3072_v38 = vpack.c.bf16 %v2910_v25, %v2909_v4  ;;  %v3025_v25 = vmul.f32 1.0193458, %v6905_v2  ;;  %v5452_v2 = vld [vmem:[%s7724_s9] sm:$0xff]  }
 0x455   : > { %5378 = vmatprep.subr.bf16.mxu1 %v5452_v2 }
 0x456   : > { %v5282_v48 = vpop.f32.mrb[176].mxu1  ;;  %5358 = vmatprep.mubr.msk.bf16.mxu0 %vm1877_vm2, %v3072_v38  ;;  %5379 = vmatpush3.bf16.msra.mxu1 %v5452_v2 }
 0x457   : > { %v3028_v58 = vadd.f32 %v5282_v48, %v3012_v39  ;;  %v2947_v11 = vpop.f32.mrb[177].mxu1  ;;  %5359 = vmatmul.mubr.msk.bf16.gmra.mrb[188].mxu0 %vm1877_vm2, %v3073_v60  ;;  %v3023_v39 = vmul.f32 1.0193458, %v7926_v19 }
 0x458   : > { %v3026_v16 = vadd.f32 %v3010_v35, %v2947_v11  ;;  %v5283_v50 = vpop.f32.mrb[178].mxu1 }
 0x459   : > { %v3029_v52 = vadd.f32 %v5283_v50, %v3013_v32  ;;  %v2950_v55 = vpop.f32.mrb[179].mxu1 }
 0x45a   : > { %v3027_v14 = vadd.f32 %v3011_v33, %v2950_v55 }
 0x45b   : > { %v3075_v15 = vpack.c.bf16 %v3029_v52, %v3028_v58  ;;  %v3647_v52 = vlaneseq }
 0x45c   : > { %v3074_v57 = vpack.c.bf16 %v3027_v14, %v3026_v16 }
 0x45d   : > { %v7061_v14 = vshrl.u32 %v3647_v52, 7 }
 0x45e   : > { %v5286_v62 = vpop.f32.mrb[180].mxu1  ;;  %5362 = vmatprep.mubr.msk.bf16.mxu0 %vm1877_vm2, %v3074_v57 }
 0x45f   : > { %v3032_v6 = vadd.f32 %v5286_v62, %v3016_v12  ;;  %v2963_v61 = vpop.f32.mrb[181].mxu1  ;;  %5363 = vmatmul.mubr.msk.bf16.gmra.mrb[192].mxu0 %vm1877_vm2, %v3075_v15  ;;  %v3650_v12 = vadd.s32 16, %v7061_v14  ;;  %v7071_v62 = vstv %s4503_s14  ;;  %v3665_v18 = vadd.s32 136, %v7061_v14  ;;  %s7645_s14 = scalar_lea.vmem [#allocation4], %s4366_s28  ;;  %s5480_s28 = scalar_lea.vmem %s5479_s21, 4096 }
 0x460   : > { %v3030_v53 = vadd.f32 %v3014_v42, %v2963_v61  ;;  %v5287_v0 = vpop.f32.mrb[182].mxu1  ;;  %v7079_v42 = vadd.s32 24, %v7061_v14  ;;  %v7085_v61 = vadd.s32 8, %v7061_v14  ;;  %vm3730_vm4 = vcmp.lt.s32.totalorder %v7061_v14, %v7071_v62  ;;  %s4288_s15 = sshll.u32 %s7645_s14, 4  ;;  %s7667_s15 = int_to_ptr.vmem [resolvable:$true] %s4288_s15 }
 0x461   : > { %v3033_v9 = vadd.f32 %v5287_v0, %v3017_v54  ;;  %v2966_v13 = vpop.f32.mrb[183].mxu1  ;;  %vm3732_vm3 = vcmp.lt.s32.totalorder %v3650_v12, %v7071_v62  ;;  %v7092_v54 = vadd.s32 48, %v7061_v14  ;;  %v7098_v0 = vadd.s32 56, %v7061_v14  ;;  %p5481_p5 = scmp.lt.s32.totalorder %s7667_s15, %s5479_s21 }
 0x462   : > { %v3031_v43 = vadd.f32 %v3015_v63, %v2966_v13  ;;  %v7107_v13 = vadd.s32 80, %v7061_v14  ;;  %vm3733_vm5 = vcmp.lt.s32.totalorder %v7079_v42, %v7071_v62  ;;  %vm3731_vm6 = vcmp.lt.s32.totalorder %v7085_v61, %v7071_v62 }
 0x463   : > { %v3077_v22 = vpack.c.bf16 %v3033_v9, %v3032_v6  ;;  %v7104_v9 = vadd.s32 40, %v7061_v14  ;;  %v7130_v28 = vadd.s32 112, %v7061_v14  ;;  %v7142_v7 = vadd.s32 176, %v7061_v14 }
 0x464   : > { %v3076_v26 = vpack.c.bf16 %v3031_v43, %v3030_v53  ;;  %v7095_v53 = vadd.s32 32, %v7061_v14  ;;  %vm3747_vm10 = vcmp.lt.s32.totalorder %v3665_v18, %v7071_v62  ;;  %vm3736_vm11 = vcmp.lt.s32.totalorder %v7092_v54, %v7071_v62 }
 0x465   : > { %vm3752_vm13 = vcmp.lt.s32.totalorder %v7142_v7, %v7071_v62  ;;  %v7174_v19 = vadd.s32 216, %v7061_v14  ;;  %vm3737_vm14 = vcmp.lt.s32.totalorder %v7098_v0, %v7071_v62  ;;  %vm3735_vm0 = vcmp.lt.s32.totalorder %v7104_v9, %v7071_v62 }
 0x466   : > { %v5290_v20 = vpop.f32.mrb[184].mxu1  ;;  %5366 = vmatprep.mubr.msk.bf16.mxu0 %vm1877_vm2, %v3076_v26  ;;  %v7115_v26 = vadd.s32 64, %v7061_v14  ;;  %vm3734_vm12 = vcmp.lt.s32.totalorder %v7095_v53, %v7071_v62  ;;  %vm3740_vm1 = vcmp.lt.s32.totalorder %v7107_v13, %v7071_v62 }
 0x467   : > { %v3036_v23 = vadd.f32 %v5290_v20, %v3020_v40  ;;  %v2979_v51 = vpop.f32.mrb[185].mxu1  ;;  %5367 = vmatmul.mubr.msk.bf16.gmra.mrb[196].mxu0 %vm1877_vm2, %v3077_v22  ;;  %v3666_v22 = vadd.s32 144, %v7061_v14  ;;  %v3664_v40 = vadd.s32 128, %v7061_v14  ;;  %v3667_v20 = vadd.s32 152, %v7061_v14 }
 0x468   : > { %v3034_v30 = vadd.f32 %v3018_v8, %v2979_v51  ;;  %v5291_v34 = vpop.f32.mrb[186].mxu1  ;;  %v7127_v51 = vadd.s32 72, %v7061_v14 }
 0x469   : > { %v3037_v29 = vadd.f32 %v5291_v34, %v3021_v59  ;;  %v2982_v5 = vpop.f32.mrb[187].mxu1  ;;  %v7133_v59 = vadd.s32 96, %v7061_v14  ;;  %v7139_v34 = vadd.s32 104, %v7061_v14  ;;  %vm3748_vm7 = vcmp.lt.s32.totalorder %v3666_v22, %v7071_v62 }
 0x46a   : > { %v3035_v1 = vadd.f32 %v3019_v31, %v2982_v5  ;;  %v7147_v5 = vadd.s32 160, %v7061_v14  ;;  %vm3746_vm8 = vcmp.lt.s32.totalorder %v3664_v40, %v7071_v62  ;;  %vm3749_vm9 = vcmp.lt.s32.totalorder %v3667_v20, %v7071_v62 }
 0x46b   : > { %v3079_v4 = vpack.c.bf16 %v3037_v29, %v3036_v23  ;;  %v7124_v23 = vadd.s32 88, %v7061_v14 }
 0x46c   : > { %v3078_v56 = vpack.c.bf16 %v3035_v1, %v3034_v30  ;;  %v7136_v30 = vadd.s32 120, %v7061_v14  ;;  %vm3750_vm15 = vcmp.lt.s32.totalorder %v7147_v5, %v7071_v62 }
 0x46e   : > { %v5294_v10 = vpop.f32.mrb[188].mxu1  ;;  %5370 = vmatprep.mubr.msk.bf16.mxu0 %vm1877_vm2, %v3078_v56 }
 0x46f   : > { %v3040_v36 = vadd.f32 %v5294_v10, %v3024_v37  ;;  %v2995_v44 = vpop.f32.mrb[189].mxu1  ;;  %5371 = vmatmul.mubr.msk.bf16.gmra.mrb[200].mxu0 %vm1877_vm2, %v3079_v4 }
 0x470   : > { %v3038_v60 = vadd.f32 %v3022_v21, %v2995_v44  ;;  %v5295_v38 = vpop.f32.mrb[190].mxu1  ;;  %v7157_v21 = vadd.s32 184, %v7061_v14 }
 0x471   : > { %v3041_v48 = vadd.f32 %v5295_v38, %v3025_v25  ;;  %v2998_v47 = vpop.f32.mrb[191].mxu1  ;;  %v7171_v38 = vadd.s32 192, %v7061_v14 }
 0x472   : > { %v3039_v35 = vadd.f32 %v3023_v39, %v2998_v47 }
 0x473   : > { %v3081_v17 = vpack.c.bf16 %v3041_v48, %v3040_v36  ;;  %v7160_v36 = vadd.s32 168, %v7061_v14 }
 0x474   : > { %v3080_v58 = vpack.c.bf16 %v3039_v35, %v3038_v60  ;;  %v7168_v60 = vadd.s32 208, %v7061_v14 }
 0x476   : > { %5374 = vmatprep.mubr.msk.bf16.mxu0 %vm1877_vm2, %v3080_v58 }
 0x477   : > { %5375 = vmatmul.mubr.msk.bf16.gmra.mrb[204].mxu0 %vm1877_vm2, %v3081_v17 }
 0x4b2   : > { %v5300_v45 = vpop.f32.mrb[128].mxu0 }
 0x4b3   : > { %v3248_v11 = vpop.f32.mrb[129].mxu0  ;;  %v3257_v63 = vadd.f32 %v5300_v45, %v7076_v49 }
 0x4b4   : > { %v5301_v46 = vpop.f32.mrb[130].mxu0  ;;  %v3249_v8 = vadd.f32 %v7076_v49, %v3248_v11 }
 0x4b5   : > { %v3251_v32 = vpop.f32.mrb[131].mxu0  ;;  %v3569_v31 = vmax.f32 %v3257_v63, 0.0  ;;  %v3260_v29 = vadd.f32 %v5301_v46, %v7076_v49 }
 0x4b6   : > { %v3252_v1 = vadd.f32 %v7076_v49, %v3251_v32  ;;  %v3567_v56 = vmax.f32 %v3249_v8, 0.0 }
 0x4b7   : > { %v3972_v39 = vsel %vm3732_vm3, %v3569_v31, 0.0  ;;  %v3570_v48 = vmax.f32 %v3260_v29, 0.0  ;;  %vm3753_vm3 = vcmp.lt.s32.totalorder %v7157_v21, %v7071_v62 }
 0x4b8   : > { %v3568_v58 = vmax.f32 %v3252_v1, 0.0  ;;  %v3970_v32 = vsel %vm3730_vm4, %v3567_v56, 0.0  ;;  %vm3738_vm4 = vcmp.lt.s32.totalorder %v7115_v26, %v7071_v62 }
 0x4b9   : > { %v3973_v29 = vsel %vm3733_vm5, %v3570_v48, 0.0  ;;  %vm3751_vm5 = vcmp.lt.s32.totalorder %v7160_v36, %v7071_v62  ;;  %v3676_v36 = vadd.s32 224, %v7061_v14 }
 0x4ba   : > { %v7045_v16 = vpop.f32.mrb[132].mxu0 }
 0x4bb   : > { %v7050_v50 = vpop.f32.mrb[133].mxu0  ;;  %v3273_v45 = vadd.f32 %v7045_v16, %v7076_v49 }
 0x4bc   : > { %v7052_v3 = vpop.f32.mrb[134].mxu0  ;;  %v3265_v2 = vadd.f32 %v7076_v49, %v7050_v50 }
 0x4bd   : > { %v7057_v33 = vpop.f32.mrb[135].mxu0  ;;  %v3276_v16 = vadd.f32 %v7052_v3, %v7076_v49  ;;  %v3971_v3 = vsel %vm3731_vm6, %v3568_v58, 0.0  ;;  %vm3756_vm6 = vcmp.lt.s32.totalorder %v7168_v60, %v7071_v62 }
 0x4be   : > { %v3268_v50 = vadd.f32 %v7076_v49, %v7057_v33 }
 0x4bf   : > { %v3574_v61 = vmax.f32 %v3276_v16, 0.0 }
 0x4c2   : > { %v7059_v55 = vpop.f32.mrb[136].mxu0 }
 0x4c3   : > { %v7063_v15 = vpop.f32.mrb[137].mxu0  ;;  %v3289_v58 = vadd.f32 %v7059_v55, %v7076_v49 }
 0x4c4   : > { %v7065_v57 = vpop.f32.mrb[138].mxu0  ;;  %v3281_v54 = vadd.f32 %v7076_v49, %v7063_v15 }
 0x4c5   : > { %v7068_v41 = vpop.f32.mrb[139].mxu0  ;;  %v3292_v7 = vadd.f32 %v7065_v57, %v7076_v49 }
 0x4ca   : > { %v7081_v6 = vpop.f32.mrb[140].mxu0 }
 0x4cb   : > { %v7087_v27 = vpop.f32.mrb[141].mxu0 }
 0x4cc   : > { %v7100_v24 = vpop.f32.mrb[142].mxu0 }
 0x4cd   : > { %v7109_v43 = vpop.f32.mrb[143].mxu0 }
 0x4d2   : > { %v5316_v4 = vpop.f32.mrb[144].mxu0 }
 0x4d3   : > { %v3321_v37 = vadd.f32 %v5316_v4, %v7076_v49  ;;  %v3312_v10 = vpop.f32.mrb[145].mxu0  ;;  %v3573_v4 = vmax.f32 %v3273_v45, 0.0 }
 0x4d4   : > { %v3313_v44 = vadd.f32 %v7076_v49, %v3312_v10  ;;  %v5317_v25 = vpop.f32.mrb[146].mxu0 }
 0x4d5   : > { %v3585_v47 = vmax.f32 %v3321_v37, 0.0  ;;  %v3324_v35 = vadd.f32 %v5317_v25, %v7076_v49  ;;  %v3315_v17 = vpop.f32.mrb[147].mxu0  ;;  %v3571_v37 = vmax.f32 %v3265_v2, 0.0  ;;  %v3572_v25 = vmax.f32 %v3268_v50, 0.0 }
 0x4d6   : > { %v3583_v11 = vmax.f32 %v3313_v44, 0.0  ;;  %v3316_v46 = vadd.f32 %v7076_v49, %v3315_v17  ;;  %v3976_v17 = vsel %vm3736_vm11, %v3573_v4, 0.0  ;;  %v3977_v2 = vsel %vm3737_vm14, %v3574_v61, 0.0 }
 0x4d7   : > { %v3988_v52 = vsel %vm3748_vm7, %v3585_v47, 0.0  ;;  %v3586_v12 = vmax.f32 %v3324_v35, 0.0  ;;  %vm3754_vm7 = vcmp.lt.s32.totalorder %v7171_v38, %v7071_v62  ;;  %v7235_v35 = vadd.s32 200, %v7061_v14 }
 0x4d8   : > { %v7197_v63 = vadd.f32 %v3988_v52, %v3972_v39  ;;  %v3986_v8 = vsel %vm3746_vm8, %v3583_v11, 0.0  ;;  %v3584_v31 = vmax.f32 %v3316_v46, 0.0  ;;  %vm3741_vm8 = vcmp.lt.s32.totalorder %v7124_v23, %v7071_v62 }
 0x4d9   : > { %v7206_v1 = vadd.f32 %v3986_v8, %v3970_v32  ;;  %v3989_v22 = vsel %vm3749_vm9, %v3586_v12, 0.0  ;;  %vm3757_vm9 = vcmp.lt.s32.totalorder %v7174_v19, %v7071_v62  ;;  %v3974_v46 = vsel %vm3734_vm12, %v3571_v37, 0.0 }
 0x4da   : > { %v7213_v40 = vadd.f32 %v3989_v22, %v3973_v29  ;;  %v3987_v56 = vsel %vm3747_vm10, %v3584_v31, 0.0  ;;  %v5320_v42 = vpop.f32.mrb[148].mxu0  ;;  %vm3739_vm10 = vcmp.lt.s32.totalorder %v7127_v51, %v7071_v62  ;;  %v3975_v15 = vsel %vm3735_vm0, %v3572_v25, 0.0 }
 0x4db   : > { %v7219_v33 = vadd.f32 %v3987_v56, %v3971_v3  ;;  %v3337_v20 = vadd.f32 %v5320_v42, %v7076_v49  ;;  %v3328_v10 = vpop.f32.mrb[149].mxu0  ;;  %v3577_v8 = vmax.f32 %v3289_v58, 0.0  ;;  %v3284_v31 = vadd.f32 %v7076_v49, %v7068_v41 }
 0x4dc   : > { %v3329_v18 = vadd.f32 %v7076_v49, %v3328_v10  ;;  %v5321_v44 = vpop.f32.mrb[150].mxu0  ;;  %v3575_v50 = vmax.f32 %v3281_v54, 0.0  ;;  %vm3755_vm11 = vcmp.lt.s32.totalorder %v7235_v35, %v7071_v62  ;;  %vm3744_vm12 = vcmp.lt.s32.totalorder %v7130_v28, %v7071_v62 }
 0x4dd   : > { %v3589_v39 = vmax.f32 %v3337_v20, 0.0  ;;  %v3340_v48 = vadd.f32 %v5321_v44, %v7076_v49  ;;  %v3331_v47 = vpop.f32.mrb[151].mxu0  ;;  %v3678_v4 = vadd.s32 240, %v7061_v14  ;;  %v3679_v56 = vadd.s32 248, %v7061_v14 }
 0x4de   : > { %v3587_v45 = vmax.f32 %v3329_v18, 0.0  ;;  %v3332_v11 = vadd.f32 %v7076_v49, %v3331_v47  ;;  %v3578_v42 = vmax.f32 %v3292_v7, 0.0  ;;  %v3677_v61 = vadd.s32 232, %v7061_v14 }
 0x4df   : > { %v3992_v55 = vsel %vm3752_vm13, %v3589_v39, 0.0  ;;  %v3590_v32 = vmax.f32 %v3340_v48, 0.0  ;;  %vm3742_vm13 = vcmp.lt.s32.totalorder %v7133_v59, %v7071_v62  ;;  %v3980_v18 = vsel %vm3740_vm1, %v3577_v8, 0.0 }
 0x4e0   : > { %v7260_v52 = vadd.f32 %v3992_v55, %v3976_v17  ;;  %v3990_v53 = vsel %vm3750_vm15, %v3587_v45, 0.0  ;;  %v3588_v12 = vmax.f32 %v3332_v11, 0.0  ;;  %v3576_v44 = vmax.f32 %v3284_v31, 0.0 }
 0x4e1   : > { %v7270_v16 = vadd.f32 %v3990_v53, %v3974_v46  ;;  %v3993_v0 = vsel %vm3753_vm3, %v3590_v32, 0.0  ;;  %vm3745_vm14 = vcmp.lt.s32.totalorder %v7136_v30, %v7071_v62  ;;  %v3978_v48 = vsel %vm3738_vm4, %v3575_v50, 0.0 }
 0x4e2   : > { %v7277_v5 = vadd.f32 %v3993_v0, %v3977_v2  ;;  %v3991_v9 = vsel %vm3751_vm5, %v3588_v12, 0.0  ;;  %v5324_v29 = vpop.f32.mrb[152].mxu0  ;;  %v3305_v47 = vadd.f32 %v7081_v6, %v7076_v49  ;;  %v3297_v58 = vadd.f32 %v7076_v49, %v7087_v27 }
 0x4e3   : > { %v7282_v22 = vadd.f32 %v3991_v9, %v3975_v15  ;;  %v3353_v57 = vadd.f32 %v5324_v29, %v7076_v49  ;;  %v3344_v3 = vpop.f32.mrb[153].mxu0  ;;  %v3981_v26 = vsel %vm3741_vm8, %v3578_v42, 0.0  ;;  %v3308_v6 = vadd.f32 %v7100_v24, %v7076_v49 }
 0x4e4   : > { %v3345_v41 = vadd.f32 %v7076_v49, %v3344_v3  ;;  %v5325_v21 = vpop.f32.mrb[154].mxu0  ;;  %v3979_v54 = vsel %vm3739_vm10, %v3576_v44, 0.0  ;;  %v3300_v38 = vadd.f32 %v7076_v49, %v7109_v43  ;;  %v3581_v32 = vmax.f32 %v3305_v47, 0.0 }
 0x4e5   : > { %v3593_v37 = vmax.f32 %v3353_v57, 0.0  ;;  %v3356_v20 = vadd.f32 %v5325_v21, %v7076_v49  ;;  %v3347_v10 = vpop.f32.mrb[155].mxu0  ;;  %vm3743_vm15 = vcmp.lt.s32.totalorder %v7139_v34, %v7071_v62  ;;  %v3579_v53 = vmax.f32 %v3297_v58, 0.0 }
 0x4e6   : > { %v3591_v25 = vmax.f32 %v3345_v41, 0.0  ;;  %v3348_v39 = vadd.f32 %v7076_v49, %v3347_v10  ;;  %vm3760_vm0 = vcmp.lt.s32.totalorder %v3678_v4, %v7071_v62  ;;  %vm3758_vm1 = vcmp.lt.s32.totalorder %v3676_v36, %v7071_v62 }
 0x4e7   : > { %v3996_v17 = vsel %vm3756_vm6, %v3593_v37, 0.0  ;;  %v3594_v13 = vmax.f32 %v3356_v20, 0.0  ;;  %v3582_v35 = vmax.f32 %v3308_v6, 0.0  ;;  %vm3761_vm3 = vcmp.lt.s32.totalorder %v3679_v56, %v7071_v62 }
 0x4e8   : > { %v7313_v45 = vadd.f32 %v3996_v17, %v3980_v18  ;;  %v3994_v11 = vsel %vm3754_vm7, %v3591_v25, 0.0  ;;  %v3592_v46 = vmax.f32 %v3348_v39, 0.0  ;;  %v3580_v8 = vmax.f32 %v3300_v38, 0.0 }
 0x4e9   : > { %v7323_v60 = vadd.f32 %v3994_v11, %v3978_v48  ;;  %v3997_v27 = vsel %vm3757_vm9, %v3594_v13, 0.0  ;;  %vm3759_vm4 = vcmp.lt.s32.totalorder %v3677_v61, %v7071_v62  ;;  %v3984_v29 = vsel %vm3744_vm12, %v3581_v32, 0.0 }
 0x4ea   : > { %v7333_v55 = vadd.f32 %v3997_v27, %v3981_v26  ;;  %v3995_v23 = vsel %vm3755_vm11, %v3592_v46, 0.0  ;;  %v5328_v24 = vpop.f32.mrb[156].mxu0  ;;  %v3682_v3 = vadd.s32 272, %v7061_v14  ;;  %v3982_v41 = vsel %vm3742_vm13, %v3579_v53, 0.0 }
 0x4eb   : > { %v7340_v19 = vadd.f32 %v3995_v23, %v3979_v54  ;;  %v3369_v2 = vadd.f32 %v5328_v24, %v7076_v49  ;;  %v3360_v51 = vpop.f32.mrb[157].mxu0  ;;  %v3985_v37 = vsel %vm3745_vm14, %v3582_v35, 0.0  ;;  %v3680_v10 = vadd.s32 256, %v7061_v14 }
 0x4ec   : > { %v3361_v43 = vadd.f32 %v7076_v49, %v3360_v51  ;;  %v5329_v12 = vpop.f32.mrb[158].mxu0  ;;  %v3983_v59 = vsel %vm3743_vm15, %v3580_v8, 0.0  ;;  %v3683_v44 = vadd.s32 280, %v7061_v14  ;;  %v3681_v56 = vadd.s32 264, %v7061_v14 }
 0x4ed   : > { %v3597_v15 = vmax.f32 %v3369_v2, 0.0  ;;  %v3372_v7 = vadd.f32 %v5329_v12, %v7076_v49  ;;  %v3363_v0 = vpop.f32.mrb[159].mxu0  ;;  %vm3764_vm5 = vcmp.lt.s32.totalorder %v3682_v3, %v7071_v62  ;;  %vm3762_vm6 = vcmp.lt.s32.totalorder %v3680_v10, %v7071_v62 }
 0x4ee   : > { %v3595_v31 = vmax.f32 %v3361_v43, 0.0  ;;  %v3364_v9 = vadd.f32 %v7076_v49, %v3363_v0  ;;  %vm3765_vm7 = vcmp.lt.s32.totalorder %v3683_v44, %v7071_v62  ;;  %vm3763_vm8 = vcmp.lt.s32.totalorder %v3681_v56, %v7071_v62 }
 0x4ef   : > { %v4000_v50 = vsel %vm3760_vm0, %v3597_v15, 0.0  ;;  %v3598_v57 = vmax.f32 %v3372_v7, 0.0  ;;  %v3686_v38 = vadd.s32 304, %v7061_v14  ;;  %v3684_v32 = vadd.s32 288, %v7061_v14 }
 0x4f0   : > { %v7357_v21 = vadd.f32 %v4000_v50, %v3984_v29  ;;  %v3998_v4 = vsel %vm3758_vm1, %v3595_v31, 0.0  ;;  %v3596_v42 = vmax.f32 %v3364_v9, 0.0  ;;  %v3687_v43 = vadd.s32 312, %v7061_v14 }
 0x4f1   : > { %v7364_v28 = vadd.f32 %v3998_v4, %v3982_v41  ;;  %v4001_v20 = vsel %vm3761_vm3, %v3598_v57, 0.0  ;;  %v3685_v15 = vadd.s32 296, %v7061_v14  ;;  %vm3768_vm9 = vcmp.lt.s32.totalorder %v3686_v38, %v7071_v62 }
 0x4f2   : > { %v7372_v61 = vadd.f32 %v4001_v20, %v3985_v37  ;;  %v3999_v36 = vsel %vm3759_vm4, %v3596_v42, 0.0  ;;  %v5332_v18 = vpop.f32.mrb[160].mxu0  ;;  %vm3766_vm10 = vcmp.lt.s32.totalorder %v3684_v32, %v7071_v62  ;;  %vm3769_vm11 = vcmp.lt.s32.totalorder %v3687_v43, %v7071_v62 }
 0x4f3   : > { %v7375_v25 = vadd.f32 %v3999_v36, %v3983_v59  ;;  %v3385_v30 = vadd.f32 %v5332_v18, %v7076_v49  ;;  %v3376_v39 = vpop.f32.mrb[161].mxu0  ;;  %vm3767_vm12 = vcmp.lt.s32.totalorder %v3685_v15, %v7071_v62  ;;  %v3690_v41 = vadd.s32 336, %v7061_v14 }
 0x4f4   : > { %v3377_v48 = vadd.f32 %v7076_v49, %v3376_v39  ;;  %v5333_v47 = vpop.f32.mrb[162].mxu0  ;;  %v3688_v37 = vadd.s32 320, %v7061_v14  ;;  %v3691_v36 = vadd.s32 344, %v7061_v14 }
 0x4f5   : > { %v3601_v34 = vmax.f32 %v3385_v30, 0.0  ;;  %v3388_v17 = vadd.f32 %v5333_v47, %v7076_v49  ;;  %v3379_v13 = vpop.f32.mrb[163].mxu0  ;;  %v3689_v30 = vadd.s32 328, %v7061_v14  ;;  %vm3772_vm13 = vcmp.lt.s32.totalorder %v3690_v41, %v7071_v62 }
 0x4f6   : > { %v3599_v58 = vmax.f32 %v3377_v48, 0.0  ;;  %v3380_v11 = vadd.f32 %v7076_v49, %v3379_v13  ;;  %vm3770_vm14 = vcmp.lt.s32.totalorder %v3688_v37, %v7071_v62  ;;  %vm3773_vm15 = vcmp.lt.s32.totalorder %v3691_v36, %v7071_v62 }
 0x4f7   : > { %v4004_v46 = vsel %vm3764_vm5, %v3601_v34, 0.0  ;;  %v3602_v26 = vmax.f32 %v3388_v17, 0.0  ;;  %vm3771_vm0 = vcmp.lt.s32.totalorder %v3689_v30, %v7071_v62 }
 0x4f8   : > { %v7387_v6 = vadd.f32 %v7197_v63, %v4004_v46  ;;  %v4002_v27 = vsel %vm3762_vm6, %v3599_v58, 0.0  ;;  %v3600_v54 = vmax.f32 %v3380_v11, 0.0  ;;  %v3694_v46 = vadd.s32 368, %v7061_v14 }
 0x4f9   : > { %v7391_v23 = vadd.f32 %v7206_v1, %v4002_v27  ;;  %v4005_v24 = vsel %vm3765_vm7, %v3602_v26, 0.0 }
 0x4fa   : > { %v7395_v2 = vadd.f32 %v7213_v40, %v4005_v24  ;;  %v4003_v51 = vsel %vm3763_vm8, %v3600_v54, 0.0  ;;  %v5336_v53 = vpop.f32.mrb[164].mxu0  ;;  %v3692_v54 = vadd.s32 352, %v7061_v14  ;;  %vm3776_vm1 = vcmp.lt.s32.totalorder %v3694_v46, %v7071_v62 }
 0x4fb   : > { %v7399_v63 = vadd.f32 %v7219_v33, %v4003_v51  ;;  %v3401_v12 = vadd.f32 %v5336_v53, %v7076_v49  ;;  %v3392_v35 = vpop.f32.mrb[165].mxu0  ;;  %v3695_v51 = vadd.s32 376, %v7061_v14 }
 0x4fc   : > { %v3393_v1 = vadd.f32 %v7076_v49, %v3392_v35  ;;  %v5337_v7 = vpop.f32.mrb[166].mxu0  ;;  %vm3774_vm3 = vcmp.lt.s32.totalorder %v3692_v54, %v7071_v62 }
 0x4fd   : > { %v3605_v0 = vmax.f32 %v3401_v12, 0.0  ;;  %v3404_v40 = vadd.f32 %v5337_v7, %v7076_v49  ;;  %v3395_v8 = vpop.f32.mrb[167].mxu0  ;;  %v3693_v12 = vadd.s32 360, %v7061_v14  ;;  %vm3777_vm4 = vcmp.lt.s32.totalorder %v3695_v51, %v7071_v62 }
 0x4fe   : > { %v3603_v31 = vmax.f32 %v3393_v1, 0.0  ;;  %v3396_v33 = vadd.f32 %v7076_v49, %v3395_v8 }
 0x4ff   : > { %v4008_v9 = vsel %vm3768_vm9, %v3605_v0, 0.0  ;;  %v3606_v29 = vmax.f32 %v3404_v40, 0.0  ;;  %vm3775_vm5 = vcmp.lt.s32.totalorder %v3693_v12, %v7071_v62 }
 0x500   : > { %v7411_v50 = vadd.f32 %v7260_v52, %v4008_v9  ;;  %v4006_v57 = vsel %vm3766_vm10, %v3603_v31, 0.0  ;;  %v3604_v3 = vmax.f32 %v3396_v33, 0.0  ;;  %v3698_v9 = vadd.s32 400, %v7061_v14 }
 0x501   : > { %v7415_v4 = vadd.f32 %v7270_v16, %v4006_v57  ;;  %v4009_v42 = vsel %vm3769_vm11, %v3606_v29, 0.0 }
 0x502   : > { %v7419_v20 = vadd.f32 %v7277_v5, %v4009_v42  ;;  %v4007_v10 = vsel %vm3767_vm12, %v3604_v3, 0.0  ;;  %v5340_v59 = vpop.f32.mrb[168].mxu0  ;;  %v3696_v3 = vadd.s32 384, %v7061_v14  ;;  %vm3780_vm6 = vcmp.lt.s32.totalorder %v3698_v9, %v7071_v62 }
 0x503   : > { %v7423_v52 = vadd.f32 %v7282_v22, %v4007_v10  ;;  %v3417_v18 = vadd.f32 %v5340_v59, %v7076_v49  ;;  %v3408_v44 = vpop.f32.mrb[169].mxu0  ;;  %v3699_v10 = vadd.s32 408, %v7061_v14 }
 0x504   : > { %v3409_v16 = vadd.f32 %v7076_v49, %v3408_v44  ;;  %v5341_v39 = vpop.f32.mrb[170].mxu0  ;;  %vm3778_vm7 = vcmp.lt.s32.totalorder %v3696_v3, %v7071_v62 }
 0x505   : > { %v3609_v56 = vmax.f32 %v3417_v18, 0.0  ;;  %v3420_v5 = vadd.f32 %v5341_v39, %v7076_v49  ;;  %v3411_v48 = vpop.f32.mrb[171].mxu0  ;;  %v3697_v18 = vadd.s32 392, %v7061_v14  ;;  %vm3781_vm8 = vcmp.lt.s32.totalorder %v3699_v10, %v7071_v62 }
 0x506   : > { %v3607_v47 = vmax.f32 %v3409_v16, 0.0  ;;  %v3412_v22 = vadd.f32 %v7076_v49, %v3411_v48 }
 0x507   : > { %v4012_v34 = vsel %vm3772_vm13, %v3609_v56, 0.0  ;;  %v3610_v17 = vmax.f32 %v3420_v5, 0.0  ;;  %vm3779_vm9 = vcmp.lt.s32.totalorder %v3697_v18, %v7071_v62 }
 0x508   : > { %v7435_v13 = vadd.f32 %v7313_v45, %v4012_v34  ;;  %v4010_v58 = vsel %vm3770_vm14, %v3607_v47, 0.0  ;;  %v3608_v11 = vmax.f32 %v3412_v22, 0.0  ;;  %v3702_v34 = vadd.s32 432, %v7061_v14 }
 0x509   : > { %v7439_v26 = vadd.f32 %v7323_v60, %v4010_v58  ;;  %v4013_v27 = vsel %vm3773_vm15, %v3610_v17, 0.0 }
 0x50a   : > { %v7443_v38 = vadd.f32 %v7333_v55, %v4013_v27  ;;  %v4011_v24 = vsel %vm3771_vm0, %v3608_v11, 0.0  ;;  %v5344_v32 = vpop.f32.mrb[172].mxu0  ;;  %v3700_v11 = vadd.s32 416, %v7061_v14  ;;  %vm3784_vm10 = vcmp.lt.s32.totalorder %v3702_v34, %v7071_v62 }
 0x50b   : > { %v7447_v45 = vadd.f32 %v7340_v19, %v4011_v24  ;;  %v3433_v53 = vadd.f32 %v5344_v32, %v7076_v49  ;;  %v3424_v43 = vpop.f32.mrb[173].mxu0  ;;  %v3703_v24 = vadd.s32 440, %v7061_v14 }
 0x50c   : > { %v3425_v60 = vadd.f32 %v7076_v49, %v3424_v43  ;;  %v5345_v35 = vpop.f32.mrb[174].mxu0  ;;  %vm3782_vm11 = vcmp.lt.s32.totalorder %v3700_v11, %v7071_v62 }
 0x50d   : > { %v3613_v15 = vmax.f32 %v3433_v53, 0.0  ;;  %v3436_v55 = vadd.f32 %v5345_v35, %v7076_v49  ;;  %v3427_v1 = vpop.f32.mrb[175].mxu0  ;;  %v3701_v53 = vadd.s32 424, %v7061_v14  ;;  %vm3785_vm12 = vcmp.lt.s32.totalorder %v3703_v24, %v7071_v62 }
 0x50e   : > { %v3611_v7 = vmax.f32 %v3425_v60, 0.0  ;;  %v3428_v19 = vadd.f32 %v7076_v49, %v3427_v1 }
 0x50f   : > { %v4016_v0 = vsel %vm3776_vm1, %v3613_v15, 0.0  ;;  %v3614_v40 = vmax.f32 %v3436_v55, 0.0  ;;  %vm3783_vm13 = vcmp.lt.s32.totalorder %v3701_v53, %v7071_v62 }
 0x510   : > { %v7459_v8 = vadd.f32 %v7357_v21, %v4016_v0  ;;  %v4014_v31 = vsel %vm3774_vm3, %v3611_v7, 0.0  ;;  %v3612_v33 = vmax.f32 %v3428_v19, 0.0  ;;  %v3706_v0 = vadd.s32 464, %v7061_v14 }
 0x511   : > { %v7463_v29 = vadd.f32 %v7364_v28, %v4014_v31  ;;  %v4017_v57 = vsel %vm3777_vm4, %v3614_v40, 0.0 }
 0x512   : > { %v7467_v41 = vadd.f32 %v7372_v61, %v4017_v57  ;;  %v4015_v42 = vsel %vm3775_vm5, %v3612_v33, 0.0  ;;  %v5348_v37 = vpop.f32.mrb[176].mxu0  ;;  %v3704_v33 = vadd.s32 448, %v7061_v14  ;;  %vm3788_vm14 = vcmp.lt.s32.totalorder %v3706_v0, %v7071_v62 }
 0x513   : > { %v7471_v21 = vadd.f32 %v7375_v25, %v4015_v42  ;;  %v3449_v59 = vadd.f32 %v5348_v37, %v7076_v49  ;;  %v3440_v36 = vpop.f32.mrb[177].mxu0  ;;  %v3707_v42 = vadd.s32 472, %v7061_v14 }
 0x514   : > { %v3441_v28 = vadd.f32 %v7076_v49, %v3440_v36  ;;  %v5349_v44 = vpop.f32.mrb[178].mxu0  ;;  %vm3786_vm15 = vcmp.lt.s32.totalorder %v3704_v33, %v7071_v62 }
 0x515   : > { %v3617_v30 = vmax.f32 %v3449_v59, 0.0  ;;  %v3452_v61 = vadd.f32 %v5349_v44, %v7076_v49  ;;  %v3443_v16 = vpop.f32.mrb[179].mxu0  ;;  %v3705_v59 = vadd.s32 456, %v7061_v14  ;;  %vm3789_vm0 = vcmp.lt.s32.totalorder %v3707_v42, %v7071_v62 }
 0x516   : > { %v3615_v39 = vmax.f32 %v3441_v28, 0.0  ;;  %v3444_v25 = vadd.f32 %v7076_v49, %v3443_v16 }
 0x517   : > { %v4020_v56 = vsel %vm3780_vm6, %v3617_v30, 0.0  ;;  %v3618_v5 = vmax.f32 %v3452_v61, 0.0  ;;  %vm3787_vm1 = vcmp.lt.s32.totalorder %v3705_v59, %v7071_v62 }
 0x518   : > { %v7483_v48 = vadd.f32 %v7387_v6, %v4020_v56  ;;  %v4018_v47 = vsel %vm3778_vm7, %v3615_v39, 0.0  ;;  %v3616_v22 = vmax.f32 %v3444_v25, 0.0  ;;  %v3710_v56 = vadd.s32 496, %v7061_v14 }
 0x519   : > { %v7487_v17 = vadd.f32 %v7391_v23, %v4018_v47  ;;  %v4021_v58 = vsel %vm3781_vm8, %v3618_v5, 0.0 }
 0x51a   : > { %v7491_v46 = vadd.f32 %v7395_v2, %v4021_v58  ;;  %v4019_v27 = vsel %vm3779_vm9, %v3616_v22, 0.0  ;;  %v5352_v54 = vpop.f32.mrb[180].mxu0  ;;  %v3708_v22 = vadd.s32 480, %v7061_v14  ;;  %vm3792_vm3 = vcmp.lt.s32.totalorder %v3710_v56, %v7071_v62 }
 0x51b   : > { %v7495_v6 = vadd.f32 %v7399_v63, %v4019_v27  ;;  %v3465_v32 = vadd.f32 %v5352_v54, %v7076_v49  ;;  %v3456_v51 = vpop.f32.mrb[181].mxu0  ;;  %v3711_v27 = vadd.s32 504, %v7061_v14 }
 0x51c   : > { %v3457_v23 = vadd.f32 %v7076_v49, %v3456_v51  ;;  %v5353_v43 = vpop.f32.mrb[182].mxu0  ;;  %vm3790_vm4 = vcmp.lt.s32.totalorder %v3708_v22, %v7071_v62 }
 0x51d   : > { %v3621_v12 = vmax.f32 %v3465_v32, 0.0  ;;  %v3468_v2 = vadd.f32 %v5353_v43, %v7076_v49  ;;  %v3459_v60 = vpop.f32.mrb[183].mxu0  ;;  %v3709_v32 = vadd.s32 488, %v7061_v14  ;;  %vm3793_vm5 = vcmp.lt.s32.totalorder %v3711_v27, %v7071_v62 }
 0x51e   : > { %v3619_v35 = vmax.f32 %v3457_v23, 0.0  ;;  %v3460_v63 = vadd.f32 %v7076_v49, %v3459_v60 }
 0x51f   : > { %v4024_v15 = vsel %vm3784_vm10, %v3621_v12, 0.0  ;;  %v3622_v55 = vmax.f32 %v3468_v2, 0.0  ;;  %vm3791_vm6 = vcmp.lt.s32.totalorder %v3709_v32, %v7071_v62 }
 0x520   : > { %v7507_v1 = vadd.f32 %v7411_v50, %v4024_v15  ;;  %v4022_v7 = vsel %vm3782_vm11, %v3619_v35, 0.0  ;;  %v3620_v19 = vmax.f32 %v3460_v63, 0.0  ;;  %v3714_v15 = vadd.s32 528, %v7061_v14 }
 0x521   : > { %v7511_v40 = vadd.f32 %v7415_v4, %v4022_v7  ;;  %v4025_v31 = vsel %vm3785_vm12, %v3622_v55, 0.0 }
 0x522   : > { %v7515_v9 = vadd.f32 %v7419_v20, %v4025_v31  ;;  %v4023_v57 = vsel %vm3783_vm13, %v3620_v19, 0.0  ;;  %v5356_v3 = vpop.f32.mrb[184].mxu0  ;;  %v3712_v19 = vadd.s32 512, %v7061_v14  ;;  %vm3796_vm7 = vcmp.lt.s32.totalorder %v3714_v15, %v7071_v62 }
 0x523   : > { %v7519_v50 = vadd.f32 %v7423_v52, %v4023_v57  ;;  %v3481_v37 = vadd.f32 %v5356_v3, %v7076_v49  ;;  %v3472_v10 = vpop.f32.mrb[185].mxu0  ;;  %v3715_v57 = vadd.s32 536, %v7061_v14 }
 0x524   : > { %v3473_v4 = vadd.f32 %v7076_v49, %v3472_v10  ;;  %v5357_v36 = vpop.f32.mrb[186].mxu0  ;;  %vm3794_vm8 = vcmp.lt.s32.totalorder %v3712_v19, %v7071_v62 }
 0x525   : > { %v3625_v18 = vmax.f32 %v3481_v37, 0.0  ;;  %v3484_v20 = vadd.f32 %v5357_v36, %v7076_v49  ;;  %v3475_v28 = vpop.f32.mrb[187].mxu0  ;;  %v3713_v37 = vadd.s32 520, %v7061_v14  ;;  %vm3797_vm9 = vcmp.lt.s32.totalorder %v3715_v57, %v7071_v62 }
 0x526   : > { %v3623_v44 = vmax.f32 %v3473_v4, 0.0  ;;  %v3476_v52 = vadd.f32 %v7076_v49, %v3475_v28  ;;  %v3723_v57 = vadd.s32 600, %v7061_v14 }
 0x527   : > { %v4028_v30 = vsel %vm3788_vm14, %v3625_v18, 0.0  ;;  %v3626_v61 = vmax.f32 %v3484_v20, 0.0  ;;  %vm3795_vm10 = vcmp.lt.s32.totalorder %v3713_v37, %v7071_v62  ;;  %v3721_v37 = vadd.s32 584, %v7061_v14 }
 0x528   : > { %v7531_v16 = vadd.f32 %v7435_v13, %v4028_v30  ;;  %v4026_v39 = vsel %vm3786_vm15, %v3623_v44, 0.0  ;;  %v3624_v25 = vmax.f32 %v3476_v52, 0.0  ;;  %v3718_v30 = vadd.s32 560, %v7061_v14 }
 0x529   : > { %v7535_v5 = vadd.f32 %v7439_v26, %v4026_v39  ;;  %v4029_v47 = vsel %vm3789_vm0, %v3626_v61, 0.0 }
 0x52a   : > { %v7539_v34 = vadd.f32 %v7443_v38, %v4029_v47  ;;  %v4027_v58 = vsel %vm3787_vm1, %v3624_v25, 0.0  ;;  %v5360_v11 = vpop.f32.mrb[188].mxu0  ;;  %v3716_v25 = vadd.s32 544, %v7061_v14  ;;  %vm3800_vm11 = vcmp.lt.s32.totalorder %v3718_v30, %v7071_v62 }
 0x52b   : > { %v7543_v13 = vadd.f32 %v7447_v45, %v4027_v58  ;;  %v3497_v54 = vadd.f32 %v5360_v11, %v7076_v49  ;;  %v3488_v24 = vpop.f32.mrb[189].mxu0  ;;  %v3719_v58 = vadd.s32 568, %v7061_v14  ;;  %vm3805_vm1 = vcmp.lt.s32.totalorder %v3723_v57, %v7071_v62 }
 0x52c   : > { %v3489_v26 = vadd.f32 %v7076_v49, %v3488_v24  ;;  %v5361_v51 = vpop.f32.mrb[190].mxu0  ;;  %vm3798_vm12 = vcmp.lt.s32.totalorder %v3716_v25, %v7071_v62 }
 0x52d   : > { %v3629_v53 = vmax.f32 %v3497_v54, 0.0  ;;  %v3500_v38 = vadd.f32 %v5361_v51, %v7076_v49  ;;  %v3491_v23 = vpop.f32.mrb[191].mxu0  ;;  %v3717_v54 = vadd.s32 552, %v7061_v14  ;;  %vm3801_vm13 = vcmp.lt.s32.totalorder %v3719_v58, %v7071_v62 }
 0x52e   : > { %v3627_v43 = vmax.f32 %v3489_v26, 0.0  ;;  %v3492_v45 = vadd.f32 %v7076_v49, %v3491_v23 }
 0x52f   : > { %v4032_v12 = vsel %vm3792_vm3, %v3629_v53, 0.0  ;;  %v3630_v2 = vmax.f32 %v3500_v38, 0.0  ;;  %vm3799_vm14 = vcmp.lt.s32.totalorder %v3717_v54, %v7071_v62  ;;  %vm3803_vm3 = vcmp.lt.s32.totalorder %v3721_v37, %v7071_v62 }
 0x530   : > { %v7555_v60 = vadd.f32 %v7459_v8, %v4032_v12  ;;  %v4030_v35 = vsel %vm3790_vm4, %v3627_v43, 0.0  ;;  %v3628_v63 = vmax.f32 %v3492_v45, 0.0 }
 0x531   : > { %v7559_v55 = vadd.f32 %v7463_v29, %v4030_v35  ;;  %v4033_v7 = vsel %vm3793_vm5, %v3630_v2, 0.0  ;;  %v3722_v35 = vadd.s32 592, %v7061_v14 }
 0x532   : > { %v7563_v0 = vadd.f32 %v7467_v41, %v4033_v7  ;;  %v4031_v31 = vsel %vm3791_vm6, %v3628_v63, 0.0  ;;  %v5364_v33 = vpop.f32.mrb[192].mxu0  ;;  %v3720_v7 = vadd.s32 576, %v7061_v14 }
 0x533   : > { %v7567_v8 = vadd.f32 %v7471_v21, %v4031_v31  ;;  %v3513_v3 = vadd.f32 %v5364_v33, %v7076_v49  ;;  %v3504_v42 = vpop.f32.mrb[193].mxu0  ;;  %vm3804_vm15 = vcmp.lt.s32.totalorder %v3722_v35, %v7071_v62 }
 0x534   : > { %v3505_v29 = vadd.f32 %v7076_v49, %v3504_v42  ;;  %v5365_v10 = vpop.f32.mrb[194].mxu0  ;;  %vm3802_vm0 = vcmp.lt.s32.totalorder %v3720_v7, %v7071_v62 }
 0x535   : > { %v3633_v59 = vmax.f32 %v3513_v3, 0.0  ;;  %v3516_v41 = vadd.f32 %v5365_v10, %v7076_v49  ;;  %v3507_v4 = vpop.f32.mrb[195].mxu0 }
 0x536   : > { %v3631_v36 = vmax.f32 %v3505_v29, 0.0  ;;  %v3508_v21 = vadd.f32 %v7076_v49, %v3507_v4 }
 0x537   : > { %v4036_v18 = vsel %vm3796_vm7, %v3633_v59, 0.0  ;;  %v3634_v20 = vmax.f32 %v3516_v41, 0.0 }
 0x538   : > { %v4100_v28 = vadd.f32 %v7483_v48, %v4036_v18  ;;  %v4034_v44 = vsel %vm3794_vm8, %v3631_v36, 0.0  ;;  %v3632_v52 = vmax.f32 %v3508_v21, 0.0 }
 0x539   : > { %v4098_v61 = vadd.f32 %v7487_v17, %v4034_v44  ;;  %v4037_v39 = vsel %vm3797_vm9, %v3634_v20, 0.0 }
 0x53a   : > { %v4101_v56 = vadd.f32 %v7491_v46, %v4037_v39  ;;  %v4035_v47 = vsel %vm3795_vm10, %v3632_v52, 0.0  ;;  %v5368_v22 = vpop.f32.mrb[196].mxu0  ;;  %v3726_v52 = vadd.s32 624, %v7061_v14  ;;  %v3724_v39 = vadd.s32 608, %v7061_v14 }
 0x53b   : > { %v4099_v11 = vadd.f32 %v7495_v6, %v4035_v47  ;;  %v3529_v27 = vadd.f32 %v5368_v22, %v7076_v49  ;;  %v3520_v48 = vpop.f32.mrb[197].mxu0  ;;  %v3727_v47 = vadd.s32 632, %v7061_v14 }
 0x53c   : > { %v4115_v24 = vpack.c.bf16 %v4101_v56, %v4100_v28  ;;  %v3521_v17 = vadd.f32 %v7076_v49, %v3520_v48  ;;  %v5369_v32 = vpop.f32.mrb[198].mxu0  ;;  %vm3808_vm4 = vcmp.lt.s32.totalorder %v3726_v52, %v7071_v62  ;;  %vm3806_vm5 = vcmp.lt.s32.totalorder %v3724_v39, %v7071_v62 }
 0x53d   : > { %v4114_v26 = vpack.c.bf16 %v4099_v11, %v4098_v61  ;;  %v3637_v51 = vmax.f32 %v3529_v27, 0.0  ;;  %v3532_v46 = vadd.f32 %v5369_v32, %v7076_v49  ;;  %v3523_v53 = vpop.f32.mrb[199].mxu0  ;;  %v3725_v27 = vadd.s32 616, %v7061_v14 }
 0x53e   : > { %v3635_v38 = vmax.f32 %v3521_v17, 0.0  ;;  %v3524_v6 = vadd.f32 %v7076_v49, %v3523_v53  ;;  %vm3809_vm6 = vcmp.lt.s32.totalorder %v3727_v47, %v7071_v62 }
 0x53f   : > { %v4040_v23 = vsel %vm3800_vm11, %v3637_v51, 0.0  ;;  %v3638_v43 = vmax.f32 %v3532_v46, 0.0  ;;  %5380 = vmatprep.mubr.msk.bf16.mxu1 %vm1877_vm2, %v4114_v26  ;;  %vm3807_vm7 = vcmp.lt.s32.totalorder %v3725_v27, %v7071_v62 }
 0x540   : > { %v4104_v45 = vadd.f32 %v7507_v1, %v4040_v23  ;;  %v4038_v12 = vsel %vm3798_vm12, %v3635_v38, 0.0  ;;  %v3636_v2 = vmax.f32 %v3524_v6, 0.0  ;;  %5381 = vmatmul.mubr.msk.bf16.vlgmr.msra.gmra.mrb[192].mxu1 %vm1877_vm2, %v4115_v24 }
 0x541   : > { %v4102_v63 = vadd.f32 %v7511_v40, %v4038_v12  ;;  %v4041_v15 = vsel %vm3801_vm13, %v3638_v43, 0.0 }
 0x542   : > { %v4105_v19 = vadd.f32 %v7515_v9, %v4041_v15  ;;  %v4039_v31 = vsel %vm3799_vm14, %v3636_v2, 0.0  ;;  %v5372_v33 = vpop.f32.mrb[200].mxu0 }
 0x543   : > { %v4103_v3 = vadd.f32 %v7519_v50, %v4039_v31  ;;  %v3545_v1 = vadd.f32 %v5372_v33, %v7076_v49  ;;  %v3536_v42 = vpop.f32.mrb[201].mxu0 }
 0x544   : > { %v4117_v29 = vpack.c.bf16 %v4105_v19, %v4104_v45  ;;  %v3537_v40 = vadd.f32 %v7076_v49, %v3536_v42  ;;  %v5373_v10 = vpop.f32.mrb[202].mxu0 }
 0x545   : > { %v4116_v59 = vpack.c.bf16 %v4103_v3, %v4102_v63  ;;  %v3641_v41 = vmax.f32 %v3545_v1, 0.0  ;;  %v3548_v9 = vadd.f32 %v5373_v10, %v7076_v49  ;;  %v3539_v4 = vpop.f32.mrb[203].mxu0  ;;  %v4123_v63 = vstv %s4122_s20  ;;  %s5474_s20 = scalar_lea.vmem %s7667_s15, 2048 }
 0x546   : > { %v3639_v36 = vmax.f32 %v3537_v40, 0.0  ;;  %v3540_v50 = vadd.f32 %v7076_v49, %v3539_v4  ;;  %p5475_p2 = scmp.ne.s32.totalorder %s7667_s15, %s5474_s20  ;;  %p5482_p6 = scmp.lt.s32.totalorder %s5480_s28, %s5474_s20 }
 0x547   : > { %v4044_v21 = vsel %vm3804_vm15, %v3641_v41, 0.0  ;;  %v3642_v18 = vmax.f32 %v3548_v9, 0.0  ;;  %5384 = vmatprep.mubr.msk.bf16.mxu1 %vm1877_vm2, %v4116_v59 }
 0x548   : > { %v4108_v20 = vadd.f32 %v7531_v16, %v4044_v21  ;;  %v4042_v28 = vsel %vm3802_vm0, %v3639_v36, 0.0  ;;  %v3640_v44 = vmax.f32 %v3540_v50, 0.0  ;;  %5385 = vmatmul.mubr.msk.bf16.gmra.mrb[196].mxu1 %vm1877_vm2, %v4117_v29  ;;  %v5461_v16 = vld [vmem:[%s7723_s8] ss:$0 sm:$0xff]  ;;  %p5476_p3 = pnand %p5475_p2, %p5645_p10  ;;  %p5483_p7 = por %p5482_p6, %p5481_p5 }
 0x549   : > { %v4106_v30 = vadd.f32 %v7535_v5, %v4042_v28  ;;  %v4045_v61 = vsel %vm3805_vm1, %v3642_v18, 0.0 }
 0x54a   : > { %v4109_v49 = vadd.f32 %v7539_v34, %v4045_v61  ;;  %v4043_v25 = vsel %vm3803_vm3, %v3640_v44, 0.0  ;;  %v5376_v56 = vpop.f32.mrb[204].mxu0  ;;  %p5477_p4 = pneg %p5476_p3 }
 0x54b   : > { %v4107_v22 = vadd.f32 %v7543_v13, %v4043_v25  ;;  %v3561_v58 = vadd.f32 %v5461_v16, %v5376_v56  ;;  %v3552_v11 = vpop.f32.mrb[205].mxu0 }
 0x54c   : > { %v4119_v5 = vpack.c.bf16 %v4109_v49, %v4108_v20  ;;  %v3553_v48 = vadd.f32 %v5461_v16, %v3552_v11  ;;  %v5377_v54 = vpop.f32.mrb[206].mxu0  ;;  %p5484_p8 = pnand %p5483_p7, %p5477_p4 }
 0x54d   : > { %v4118_v34 = vpack.c.bf16 %v4107_v22, %v4106_v30  ;;  %v3645_v24 = vmax.f32 %v3561_v58, 0.0  ;;  %v3564_v17 = vadd.f32 %v5461_v16, %v5377_v54  ;;  %v3555_v32 = vpop.f32.mrb[207].mxu0 }
 0x54e   : > { %v3643_v13 = vmax.f32 %v3553_v48, 0.0  ;;  %v3556_v26 = vadd.f32 %v5461_v16, %v3555_v32 }
 0x54f   : > { %v4048_v51 = vsel %vm3808_vm4, %v3645_v24, 0.0  ;;  %v3646_v46 = vmax.f32 %v3564_v17, 0.0  ;;  %5388 = vmatprep.mubr.msk.bf16.mxu1 %vm1877_vm2, %v4118_v34 }
 0x550   : > { %v4112_v53 = vadd.f32 %v7555_v60, %v4048_v51  ;;  %v4046_v38 = vsel %vm3806_vm5, %v3643_v13, 0.0  ;;  %v3644_v6 = vmax.f32 %v3556_v26, 0.0  ;;  %5389 = vmatmul.mubr.msk.bf16.gmra.mrb[200].mxu1 %vm1877_vm2, %v4119_v5  ;;  %v2356_v60 = vld [vmem:[%s7725_s10] sm:$0x1] }
 0x551   : > { %v4110_v23 = vadd.f32 %v7559_v55, %v4046_v38  ;;  %v4049_v43 = vsel %vm3809_vm6, %v3646_v46, 0.0  ;;  %v4124_v15 = vmul.f32 %v4123_v63, %v2356_v60  ;;  %v4128_v55 = vsub.s32 0, %v7061_v14 }
 0x552   : > { %v4113_v45 = vadd.f32 %v7563_v0, %v4049_v43  ;;  %v4047_v12 = vsel %vm3807_vm7, %v3644_v6, 0.0 }
 0x553   : > { %v4111_v2 = vadd.f32 %v7567_v8, %v4047_v12  ;;  %v4129_v0 = vrot.slane %v4124_v15, %v4128_v55 }
 0x554   : > { %v4121_v35 = vpack.c.bf16 %v4113_v45, %v4112_v53 }
 0x555   : > { %v4120_v62 = vpack.c.bf16 %v4111_v2, %v4110_v23 }
 0x557   : > { %5392 = vmatprep.mubr.msk.bf16.mxu1 %vm1877_vm2, %v4120_v62 }
 0x558   : > { %5393 = vmatmul.mubr.msk.bf16.gmra.mrb[204].mxu1 %vm1877_vm2, %v4121_v35 }
 0x613   : > { %v5382_v8 = vpop.f32.mrb[192].mxu1 }
 0x614   : > { %v4204_v7 = vadd.f32 %v5382_v8, %v4129_v0  ;;  %v4195_v19 = vpop.f32.mrb[193].mxu1 }
 0x615   : > { %v4196_v31 = vadd.f32 %v4195_v19, %v4129_v0  ;;  %v5383_v33 = vpop.f32.mrb[194].mxu1 }
 0x616   : > { %4260 = vst [vmem:[%s7645_s14 + $0x10] sm:$0xff] %v4204_v7  ;;  %v4207_v57 = vadd.f32 %v5383_v33, %v4129_v0  ;;  %v4198_v14 = vpop.f32.mrb[195].mxu1 }
 0x617   : > { %4258 = vst [vmem:[%s7645_s14] sm:$0xff] %v4196_v31  ;;  %v4199_v3 = vadd.f32 %v4198_v14, %v4129_v0 }
 0x618   : > { %4261 = vst [vmem:[%s7645_s14 + $0x18] sm:$0xff] %v4207_v57 }
 0x619   : > { %4259 = vst [vmem:[%s7645_s14 + $0x8] sm:$0xff] %v4199_v3 }
 0x61b   : > { %v5386_v1 = vpop.f32.mrb[196].mxu1 }
 0x61c   : > { %v4220_v42 = vadd.f32 %v5386_v1, %v4129_v0  ;;  %v4211_v37 = vpop.f32.mrb[197].mxu1 }
 0x61d   : > { %v4212_v29 = vadd.f32 %v4211_v37, %v4129_v0  ;;  %v5387_v40 = vpop.f32.mrb[198].mxu1 }
 0x61e   : > { %4264 = vst [vmem:[%s7645_s14 + $0x30] sm:$0xff] %v4220_v42  ;;  %v4223_v10 = vadd.f32 %v5387_v40, %v4129_v0  ;;  %v4214_v59 = vpop.f32.mrb[199].mxu1 }
 0x61f   : > { %4262 = vst [vmem:[%s7645_s14 + $0x20] sm:$0xff] %v4212_v29  ;;  %v4215_v41 = vadd.f32 %v4214_v59, %v4129_v0 }
 0x620   : > { %4265 = vst [vmem:[%s7645_s14 + $0x38] sm:$0xff] %v4223_v10 }
 0x621   : > { %4263 = vst [vmem:[%s7645_s14 + $0x28] sm:$0xff] %v4215_v41 }
 0x623   : > { %v5390_v9 = vpop.f32.mrb[200].mxu1 }
 0x624   : > { %v4236_v4 = vadd.f32 %v5390_v9, %v4129_v0  ;;  %v4227_v36 = vpop.f32.mrb[201].mxu1 }
 0x625   : > { %v4228_v50 = vadd.f32 %v4227_v36, %v4129_v0  ;;  %v5391_v21 = vpop.f32.mrb[202].mxu1 }
 0x626   : > { %4268 = vst [vmem:[%s7645_s14 + $0x50] sm:$0xff] %v4236_v4  ;;  %v4239_v18 = vadd.f32 %v5391_v21, %v4129_v0  ;;  %v4230_v20 = vpop.f32.mrb[203].mxu1 }
 0x627   : > { %4266 = vst [vmem:[%s7645_s14 + $0x40] sm:$0xff] %v4228_v50  ;;  %v4231_v28 = vadd.f32 %v4230_v20, %v4129_v0 }
 0x628   : > { %4269 = vst [vmem:[%s7645_s14 + $0x58] sm:$0xff] %v4239_v18 }
 0x629   : > { %4267 = vst [vmem:[%s7645_s14 + $0x48] sm:$0xff] %v4231_v28 }
 0x62b   : > { %v5394_v44 = vpop.f32.mrb[204].mxu1 }
 0x62c   : > { %v4252_v52 = vadd.f32 %v5394_v44, %v4129_v0  ;;  %v4243_v30 = vpop.f32.mrb[205].mxu1 }
 0x62d   : > { %v4244_v61 = vadd.f32 %v4243_v30, %v4129_v0  ;;  %v5395_v39 = vpop.f32.mrb[206].mxu1 }
 0x62e   : > { %4272 = vst [vmem:[%s7645_s14 + $0x70] sm:$0xff] %v4252_v52  ;;  %v4255_v49 = vadd.f32 %v5395_v39, %v4129_v0  ;;  %v4246_v25 = vpop.f32.mrb[207].mxu1 }
 0x62f   : > { %4270 = vst [vmem:[%s7645_s14 + $0x60] sm:$0xff] %v4244_v61  ;;  %v4247_v56 = vadd.f32 %v4246_v25, %v4129_v0 }
 0x630   : > { %4273 = vst [vmem:[%s7645_s14 + $0x78] sm:$0xff] %v4255_v49 }
 0x631   : > { %4271 = vst [vmem:[%s7645_s14 + $0x68] sm:$0xff] %v4247_v56 }
 0x632   : > { %5487 = shalt.err (!%p5484_p8)
}
 0x633   : > { %s5488_s26 = scalar_lea.hbm %s7665_s18, 2048  ;;  %s5492_s16 = scalar_lea.hbm %s7726_s11, 4096 }
 0x634   : > { %p5489_p9 = scmp.ne.s32.totalorder %s7665_s18, %s5488_s26  ;;  %p5493_p0 = scmp.lt.u32.totalorder %s7665_s18, %s7726_s11 }
 0x635   : > { %p5494_p1 = scmp.lt.u32.totalorder %s5492_s16, %s5488_s26  ;;  %p5496_p3 = scmp.lt.u32.totalorder %s5488_s26, %s7665_s18 }
 0x636   : > { %p5490_p12 = pnand %p5489_p9, %p5645_p10 }
 0x637   : > { %p5495_p2 = por %p5494_p1, %p5493_p0 }
 0x638   : > { %p5491_p13 = pneg %p5490_p12 }
 0x639   : > { %p5497_p4 = por %p5496_p3, %p5495_p2 }
 0x63b   : > { %p5498_p5 = pnand %p5497_p4, %p5491_p13 }
 0x63d   : > { %5501 = shalt.err (!%p5498_p5)
}
 0x63e   : > { %s5542_s20 = smov 128   ;;  %s5543_s21 = smov 8  }
 0x63f   : > { %5400 = dma.vmem_to_hbm [thread:$0]  (%p5645_p10), %s7667_s15, 2048, %s7665_s18, %s7674_s25, %s5542_s20, %s5542_s20, %s5543_s21  }
 0x640 PF: > { %p5406_p6 = scmp.ge.s32.totalorder %s5538_s24, 2  ;;  %s4303_s28 = sand.u32 1, %s5526_s22  }
 0x641   : > { %s4304_s26 = scalar_lea.sflag [#allocation5], %s4303_s28 }
 0x642   : > { %p5403_p7 = pnand %p5406_p6, %p5649_p11 }
 0x644   : > { %5521 = dma.done.wait (!%p5403_p7), %s4304_s26, 2048  }
 0x645   : > { %5523 = vsyncadd (!%p5403_p7), %s4304_s26, 4294965248  ;;  %p27_p8 = scmp.ge.s32.totalorder %s5632_s27, 4   ;;  %s7927_s22 = smov %s5530_s23 }
 0x646   : > { %s7928_s23 = smov %s5534_s0  ;;  %s7929_s0 = smov %s5643_s30 }
 0x647   : > { %s7930_s24 = smov %s5632_s27  ;;  %29 = sbr.rel (!%p27_p8) target bundleno = 18 (0x12), region = 98 }
 0x64e   :  { %4309 = vsyncpa [#allocation5], 1 }
 0x64f   :  { %4311 = vsyncpa [#allocation5 + $0x1], 1 }

</bundles_post_ra>
